<compile_context>
chip_gen: v7x
topology: tpu7x:2x2x1
jax: 0.10.0
libtpu: 0.0.40
codegen_flags: <defaults>
</compile_context>

<pallas_src>
import jax
import jax.numpy as jnp
from jax.experimental import pallas as pl
from jax.experimental.pallas import tpu as pltpu

# ---------------- model dimensions (small, synthetic) ----------------
B = 2          # number of prompts (batch)
S = 8          # context length (seq)
D = 32         # transformer width
H = 4          # attention heads
HD = D // H    # head dim
FF = 4 * D     # MLP hidden (= 128, also the width of the packed "small" slab)
LAYERS = 2     # transformer depth
E = 32         # text_projection output dim (embed dim)
DT = jnp.float32   # clip_model.dtype (synthetic; fp32 here)

# rows of the packed per-layer "small" slab (LAYERS, 8, FF) f32
R_LN1G, R_LN1B, R_LN2G, R_LN2B, R_BQKV, R_BO, R_BFC, R_BPR = range(8)


# ---------------- in-kernel helpers ----------------
def _layernorm(x, g, b, eps=1e-5):
    mu = jnp.mean(x, axis=-1, keepdims=True)
    var = jnp.mean((x - mu) ** 2, axis=-1, keepdims=True)
    return (x - mu) * jax.lax.rsqrt(var + eps) * g + b


# ---------------- fused kernel (one invocation does the whole forward) ----------------
def fused_text_encoder_kernel(
        eot_ref,                                   # SMEM (B,) int32 [scalar prefetch]
        prompts_ref, pos_ref,                      # (B,S,D) f32, (S,D) f32
        wqkv_ref,                                  # (LAYERS, D, 3D) bf16 (scale folded into q)
        small_ref,                                 # (LAYERS, 8, FF) f32  LN params + biases
        wo_ref, wfc_ref, wpr_ref,                  # (LAYERS,D,D) (LAYERS,D,FF) (LAYERS,FF,D) bf16
        lnf_ref,                                   # (2, D) f32  [gamma; beta]
        proj_ref,                                  # (D, E) bf16
        o_ref):                                    # (B, E) out

    # ---- x = prompts + positional_embedding, kept 2-D (B*S, D) f32 ----
    x = (prompts_ref[...].astype(jnp.float32)
         + pos_ref[...][None, :, :].astype(jnp.float32)).reshape(B * S, D)

    # ---- causal mask: built once, reused by every layer ----
    qi = jax.lax.broadcasted_iota(jnp.int32, (S, S), 0)
    ki = jax.lax.broadcasted_iota(jnp.int32, (S, S), 1)
    causal = (ki <= qi)[None, :, :]                # (1, S_q, S_k), broadcasts over B*H
    neg = jnp.float32(-1e9)

    def to_heads(t):                               # (B*S, D) -> (B*H, S, HD) bf16
        return (t.reshape(B, S, H, HD).transpose(0, 2, 1, 3)
                 .reshape(B * H, S, HD).astype(jnp.bfloat16))

    # ---- residual attention blocks: static unroll over LAYERS ----
    for l in range(LAYERS):
        sm = small_ref[l]                          # (8, FF) f32
        ln1_g = sm[R_LN1G, :D]
        ln1_b = sm[R_LN1B, :D]
        ln2_g = sm[R_LN2G, :D]
        ln2_b = sm[R_LN2B, :D]
        bqkv = sm[R_BQKV, :3 * D]
        bo = sm[R_BO, :D]
        bfc = sm[R_BFC, :FF]
        bpr = sm[R_BPR, :D]

        # -- multi-head causal self-attention: x + attn(ln1(x)) --
        xn = _layernorm(x, ln1_g, ln1_b)
        # ONE fused QKV projection (1/sqrt(HD) pre-folded into q columns/bias).
        qkv = (jnp.dot(xn.astype(jnp.bfloat16), wqkv_ref[l],
                       preferred_element_type=jnp.float32) + bqkv)   # (B*S, 3D) f32
        q = qkv[:, 0 * D:1 * D]
        k = qkv[:, 1 * D:2 * D]
        v = qkv[:, 2 * D:3 * D]

        qh, kh, vh = to_heads(q), to_heads(k), to_heads(v)           # (B*H, S, HD)
        s = jnp.einsum('bqd,bkd->bqk', qh, kh,
                       preferred_element_type=jnp.float32)           # (B*H, S, S)
        s = jnp.where(causal, s, neg)
        s = s - jnp.max(s, axis=-1, keepdims=True)
        p = jnp.exp(s)
        p = p * pl.reciprocal(jnp.sum(p, axis=-1, keepdims=True), approx=True)
        oh = jnp.einsum('bqk,bkd->bqd', p.astype(jnp.bfloat16), vh,
                        preferred_element_type=jnp.float32)          # (B*H, S, HD)
        # head concat = plain reshape back to (B*S, D); ONE full-W_o matmul.
        attn = (oh.reshape(B, H, S, HD).transpose(0, 2, 1, 3)
                  .reshape(B * S, D))
        x = x + (jnp.dot(attn.astype(jnp.bfloat16), wo_ref[l],
                         preferred_element_type=jnp.float32) + bo)

        # -- MLP (QuickGELU): x + mlp(ln2(x)) --
        xn = _layernorm(x, ln2_g, ln2_b)
        hid = (jnp.dot(xn.astype(jnp.bfloat16), wfc_ref[l],
                       preferred_element_type=jnp.float32) + bfc)    # (B*S, FF) f32
        hid = hid * jax.nn.sigmoid(1.702 * hid)                      # QuickGELU
        x = x + (jnp.dot(hid.astype(jnp.bfloat16), wpr_ref[l],
                         preferred_element_type=jnp.float32) + bpr)

    # ---- epilogue: EOT gather (index from SMEM), ln_final, text projection ----
    row_idx = jax.lax.broadcasted_iota(jnp.int32, (B * S, 1), 0)     # (B*S, 1)
    rows = []
    for b in range(B):                              # B=2, static
        sel = (row_idx == (b * S + eot_ref[b])).astype(jnp.float32)  # one-hot rows
        rows.append(jnp.sum(x * sel, axis=0, keepdims=True))         # (1, D)
    eot = jnp.concatenate(rows, axis=0)                              # (B, D)
    eot = _layernorm(eot, lnf_ref[0], lnf_ref[1])
    # single full-block write (no per-row stores)
    o_ref[...] = jnp.dot(eot.astype(jnp.bfloat16), proj_ref[...],
                         preferred_element_type=jnp.float32).astype(o_ref.dtype)


# ---------------- wrapper ----------------
def _const_spec(shape):
    nd = len(shape)
    return pl.BlockSpec(tuple(shape), lambda i, eot: (0,) * nd)


@jax.jit
def text_encoder_forward(prompts, tokenized_prompts, packed):
    eot_idx = jnp.argmax(tokenized_prompts, axis=-1).astype(jnp.int32)   # (B,)

    arrays = [prompts, packed["pos_emb"], packed["wqkv"], packed["small"],
              packed["wo"], packed["wfc"], packed["wpr"], packed["lnf"],
              packed["text_proj"]]
    in_specs = [_const_spec(a.shape) for a in arrays]

    grid_spec = pltpu.PrefetchScalarGridSpec(
        num_scalar_prefetch=1,
        grid=(1,),                                  # whole forward = one grid step
        in_specs=in_specs,
        out_specs=pl.BlockSpec((B, E), lambda i, eot: (0, 0)),
        scratch_shapes=[],
    )
    return pl.pallas_call(
        fused_text_encoder_kernel,
        out_shape=jax.ShapeDtypeStruct((B, E), DT),
        grid_spec=grid_spec,
        compiler_params=pltpu.CompilerParams(
            dimension_semantics=("arbitrary",)),
    )(eot_idx, *arrays)


# ---------------- host-side weight packing ----------------
def pack_params(params):
    """Fold 1/sqrt(HD) into the q columns of the fused wqkv, stack per-layer
    weights along a leading LAYERS axis, pack all small per-layer tensors
    (LN params + biases) into one (LAYERS, 8, FF) f32 slab, and cast the MXU
    weight operands to bf16."""
    scale = HD ** -0.5
    layers = params["layers"]

    def stack_w(key):
        return jnp.stack([jnp.asarray(lp[key], jnp.float32) for lp in layers])

    wqkv = stack_w("wqkv")
    wqkv = wqkv.at[:, :, :D].multiply(scale)        # fold scale into q columns
    bqkv = stack_w("bqkv")
    bqkv = bqkv.at[:, :D].multiply(scale)           # ... and q bias

    def pad_row(v, width=FF):
        v = jnp.asarray(v, jnp.float32).reshape(-1)
        return jnp.pad(v, (0, width - v.shape[0]))

    small = jnp.stack([
        jnp.stack([pad_row(layers[l]["ln1_g"]), pad_row(layers[l]["ln1_b"]),
                   pad_row(layers[l]["ln2_g"]), pad_row(layers[l]["ln2_b"]),
                   pad_row(bqkv[l]),             pad_row(layers[l]["bo"]),
                   pad_row(layers[l]["bfc"]),    pad_row(layers[l]["bpr"])])
        for l in range(LAYERS)])                    # (LAYERS, 8, FF) f32

    lnf = jnp.stack([jnp.asarray(params["lnf_g"], jnp.float32),
                     jnp.asarray(params["lnf_b"], jnp.float32)])      # (2, D)

    return dict(
        pos_emb=params["pos_emb"].astype(jnp.float32),
        wqkv=wqkv.astype(jnp.bfloat16),
        small=small,
        wo=stack_w("wo").astype(jnp.bfloat16),
        wfc=stack_w("wfc").astype(jnp.bfloat16),
        wpr=stack_w("wpr").astype(jnp.bfloat16),
        lnf=lnf,
        text_proj=params["text_proj"].astype(jnp.bfloat16),
    )


# ---------------- deterministic parameter init ----------------
def init_params(key):
    ks = iter(jax.random.split(key, 8 * LAYERS + 4))

    def nrm(shape, std=0.02):
        return (jax.random.normal(next(ks), shape, jnp.float32) * std).astype(DT)

    layers = []
    for _ in range(LAYERS):
        layers.append(dict(
            ln1_g=jnp.ones((D,), DT), ln1_b=jnp.zeros((D,), DT),
            wqkv=nrm((D, 3 * D)), bqkv=jnp.zeros((3 * D,), DT),
            wo=nrm((D, D)), bo=jnp.zeros((D,), DT),
            ln2_g=jnp.ones((D,), DT), ln2_b=jnp.zeros((D,), DT),
            wfc=nrm((D, FF)), bfc=jnp.zeros((FF,), DT),
            wpr=nrm((FF, D)), bpr=jnp.zeros((D,), DT),
        ))
    return dict(
        pos_emb=nrm((S, D), std=0.01),
        layers=layers,
        lnf_g=jnp.ones((D,), DT), lnf_b=jnp.zeros((D,), DT),
        text_proj=nrm((D, E), std=D ** -0.5),
    )


# ---------------- pure-JAX reference for sanity ----------------
def reference_forward(prompts, tokenized_prompts, params):
    x = prompts + params["pos_emb"][None]
    for lp in params["layers"]:
        xn = _layernorm(x, lp["ln1_g"], lp["ln1_b"])
        qkv = xn @ lp["wqkv"] + lp["bqkv"]
        q, k, v = jnp.split(qkv, 3, axis=-1)
        qh = q.reshape(B, S, H, HD).transpose(0, 2, 1, 3) * (HD ** -0.5)
        kh = k.reshape(B, S, H, HD).transpose(0, 2, 1, 3)
        vh = v.reshape(B, S, H, HD).transpose(0, 2, 1, 3)
        s = jnp.einsum('bhqd,bhkd->bhqk', qh, kh)
        mask = jnp.tril(jnp.ones((S, S), bool))
        s = jnp.where(mask, s, -1e9)
        p = jax.nn.softmax(s, axis=-1)
        a = jnp.einsum('bhqk,bhkd->bhqd', p, vh).transpose(0, 2, 1, 3).reshape(B, S, D)
        x = x + a @ lp["wo"] + lp["bo"]
        xn = _layernorm(x, lp["ln2_g"], lp["ln2_b"])
        hid = xn @ lp["wfc"] + lp["bfc"]
        hid = hid * jax.nn.sigmoid(1.702 * hid)
        x = x + hid @ lp["wpr"] + lp["bpr"]
    x = _layernorm(x, params["lnf_g"], params["lnf_b"])
    eot = x[jnp.arange(B), jnp.argmax(tokenized_prompts, axis=-1)]
    return eot @ params["text_proj"]


if __name__ == "__main__":
    key = jax.random.PRNGKey(0)
    kp, kx = jax.random.split(key)
    params = init_params(kp)
    packed = pack_params(params)

    # prompts: (B, S, D) token embeddings; tokenized_prompts: (B, S) token ids
    prompts = (jax.random.normal(kx, (B, S, D), jnp.float32) * 0.02).astype(DT)
    tokenized_prompts = jnp.zeros((B, S), jnp.int32)
    tokenized_prompts = tokenized_prompts.at[0, 5].set(49407)  # EOT at pos 5
    tokenized_prompts = tokenized_prompts.at[1, 7].set(49407)  # EOT at pos 7

    out = text_encoder_forward(prompts, tokenized_prompts, packed)
    out = jax.block_until_ready(out)

    ref = reference_forward(prompts, tokenized_prompts, params)
    assert out.shape == (B, E)
    # bf16 MXU operands + approx reciprocal => not bit-exact vs f32 reference.
    assert jnp.allclose(out, ref, atol=5e-2, rtol=5e-2)

    print("KERNEL_OK")
</pallas_src>

<mosaic_0001>
module attributes {stable_mosaic.version = 11 : i64} {
  func.func @fused_text_encoder_kernel(%arg0: i32, %arg1: memref<2xi32, #tpu.memory_space<smem>>, %arg2: memref<2x8x32xf32, #tpu.memory_space<vmem>>, %arg3: memref<8x32xf32, #tpu.memory_space<vmem>>, %arg4: memref<2x32x96xbf16, #tpu.memory_space<vmem>>, %arg5: memref<2x8x128xf32, #tpu.memory_space<vmem>>, %arg6: memref<2x32x32xbf16, #tpu.memory_space<vmem>>, %arg7: memref<2x32x128xbf16, #tpu.memory_space<vmem>>, %arg8: memref<2x128x32xbf16, #tpu.memory_space<vmem>>, %arg9: memref<2x32xf32, #tpu.memory_space<vmem>>, %arg10: memref<32x32xbf16, #tpu.memory_space<vmem>>, %arg11: memref<2x32xf32, #tpu.memory_space<vmem>>) attributes {dimension_semantics = [#tpu.dimension_semantics<arbitrary>], iteration_bounds = array<i64: 1>, scalar_prefetch = 1 : i64, scratch_operands = 0 : i64, tpu.core_type = #tpu.core_type<tc>, window_params = [{pipeline_mode = #tpu.pipeline_mode<synchronous>, transform_indices = @transform_0, window_bounds = array<i64: 2, 8, 32>}, {pipeline_mode = #tpu.pipeline_mode<synchronous>, transform_indices = @transform_1, window_bounds = array<i64: 8, 32>}, {pipeline_mode = #tpu.pipeline_mode<synchronous>, transform_indices = @transform_2, window_bounds = array<i64: 2, 32, 96>}, {pipeline_mode = #tpu.pipeline_mode<synchronous>, transform_indices = @transform_3, window_bounds = array<i64: 2, 8, 128>}, {pipeline_mode = #tpu.pipeline_mode<synchronous>, transform_indices = @transform_4, window_bounds = array<i64: 2, 32, 32>}, {pipeline_mode = #tpu.pipeline_mode<synchronous>, transform_indices = @transform_5, window_bounds = array<i64: 2, 32, 128>}, {pipeline_mode = #tpu.pipeline_mode<synchronous>, transform_indices = @transform_6, window_bounds = array<i64: 2, 128, 32>}, {pipeline_mode = #tpu.pipeline_mode<synchronous>, transform_indices = @transform_7, window_bounds = array<i64: 2, 32>}, {pipeline_mode = #tpu.pipeline_mode<synchronous>, transform_indices = @transform_8, window_bounds = array<i64: 32, 32>}, {pipeline_mode = #tpu.pipeline_mode<synchronous>, transform_indices = @transform_9, window_bounds = array<i64: 2, 32>}]} {
    %c0 = arith.constant 0 : index
    %c0_0 = arith.constant 0 : index
    %c0_1 = arith.constant 0 : index
    %0 = vector.load %arg2[%c0, %c0_0, %c0_1] : memref<2x8x32xf32, #tpu.memory_space<vmem>>, vector<2x8x32xf32>
    %c0_2 = arith.constant 0 : index
    %c0_3 = arith.constant 0 : index
    %1 = vector.load %arg3[%c0_2, %c0_3] : memref<8x32xf32, #tpu.memory_space<vmem>>, vector<8x32xf32>
    %2 = vector.shape_cast %1 : vector<8x32xf32> to vector<1x8x32xf32>
    %3 = vector.broadcast %2 : vector<1x8x32xf32> to vector<2x8x32xf32>
    %4 = arith.addf %0, %3 : vector<2x8x32xf32>
    %5 = vector.shape_cast %4 : vector<2x8x32xf32> to vector<16x32xf32>
    %6 = tpu.iota {dimensions = array<i32: 0>} : vector<8x8xi32>
    %7 = tpu.iota {dimensions = array<i32: 1>} : vector<8x8xi32>
    %8 = arith.cmpi sle, %7, %6 : vector<8x8xi32>
    %9 = vector.shape_cast %8 : vector<8x8xi1> to vector<1x8x8xi1>
    %c0_4 = arith.constant 0 : index
    %c0_5 = arith.constant 0 : index
    %c0_6 = arith.constant 0 : index
    %10 = vector.load %arg5[%c0_4, %c0_5, %c0_6] : memref<2x8x128xf32, #tpu.memory_space<vmem>>, vector<1x8x128xf32>
    %11 = vector.shape_cast %10 : vector<1x8x128xf32> to vector<8x128xf32>
    %12 = vector.extract_strided_slice %11 {offsets = [0, 0], sizes = [1, 32], strides = [1, 1]} : vector<8x128xf32> to vector<1x32xf32>
    %13 = vector.shape_cast %12 : vector<1x32xf32> to vector<32xf32>
    %14 = vector.extract_strided_slice %11 {offsets = [1, 0], sizes = [1, 32], strides = [1, 1]} : vector<8x128xf32> to vector<1x32xf32>
    %15 = vector.shape_cast %14 : vector<1x32xf32> to vector<32xf32>
    %16 = vector.extract_strided_slice %11 {offsets = [2, 0], sizes = [1, 32], strides = [1, 1]} : vector<8x128xf32> to vector<1x32xf32>
    %17 = vector.shape_cast %16 : vector<1x32xf32> to vector<32xf32>
    %18 = vector.extract_strided_slice %11 {offsets = [3, 0], sizes = [1, 32], strides = [1, 1]} : vector<8x128xf32> to vector<1x32xf32>
    %19 = vector.shape_cast %18 : vector<1x32xf32> to vector<32xf32>
    %20 = vector.extract_strided_slice %11 {offsets = [4, 0], sizes = [1, 96], strides = [1, 1]} : vector<8x128xf32> to vector<1x96xf32>
    %21 = vector.shape_cast %20 : vector<1x96xf32> to vector<96xf32>
    %22 = vector.extract_strided_slice %11 {offsets = [5, 0], sizes = [1, 32], strides = [1, 1]} : vector<8x128xf32> to vector<1x32xf32>
    %23 = vector.shape_cast %22 : vector<1x32xf32> to vector<32xf32>
    %24 = vector.extract_strided_slice %11 {offsets = [6, 0], sizes = [1, 128], strides = [1, 1]} : vector<8x128xf32> to vector<1x128xf32>
    %25 = vector.shape_cast %24 : vector<1x128xf32> to vector<128xf32>
    %26 = vector.extract_strided_slice %11 {offsets = [7, 0], sizes = [1, 32], strides = [1, 1]} : vector<8x128xf32> to vector<1x32xf32>
    %27 = vector.shape_cast %26 : vector<1x32xf32> to vector<32xf32>
    %cst = arith.constant dense<0.000000e+00> : vector<16xf32>
    %28 = vector.multi_reduction <add>, %5, %cst [1] : vector<16x32xf32> to vector<16xf32>
    %29 = vector.shape_cast %28 : vector<16xf32> to vector<16x1xf32>
    %cst_7 = arith.constant 3.200000e+01 : f32
    %30 = vector.broadcast %cst_7 : f32 to vector<16x1xf32>
    %31 = arith.divf %29, %30 : vector<16x1xf32>
    %32 = vector.broadcast %31 : vector<16x1xf32> to vector<16x32xf32>
    %33 = arith.subf %5, %32 : vector<16x32xf32>
    %34 = arith.mulf %33, %33 : vector<16x32xf32>
    %cst_8 = arith.constant dense<0.000000e+00> : vector<16xf32>
    %35 = vector.multi_reduction <add>, %34, %cst_8 [1] : vector<16x32xf32> to vector<16xf32>
    %36 = vector.shape_cast %35 : vector<16xf32> to vector<16x1xf32>
    %cst_9 = arith.constant 3.200000e+01 : f32
    %37 = vector.broadcast %cst_9 : f32 to vector<16x1xf32>
    %38 = arith.divf %36, %37 : vector<16x1xf32>
    %39 = vector.broadcast %31 : vector<16x1xf32> to vector<16x32xf32>
    %40 = arith.subf %5, %39 : vector<16x32xf32>
    %cst_10 = arith.constant 9.99999974E-6 : f32
    %41 = vector.broadcast %cst_10 : f32 to vector<16x1xf32>
    %42 = arith.addf %38, %41 : vector<16x1xf32>
    %43 = math.rsqrt %42 : vector<16x1xf32>
    %44 = vector.broadcast %43 : vector<16x1xf32> to vector<16x32xf32>
    %45 = arith.mulf %40, %44 : vector<16x32xf32>
    %46 = vector.shape_cast %13 : vector<32xf32> to vector<1x32xf32>
    %47 = vector.broadcast %46 : vector<1x32xf32> to vector<16x32xf32>
    %48 = arith.mulf %45, %47 : vector<16x32xf32>
    %49 = vector.shape_cast %15 : vector<32xf32> to vector<1x32xf32>
    %50 = vector.broadcast %49 : vector<1x32xf32> to vector<16x32xf32>
    %51 = arith.addf %48, %50 : vector<16x32xf32>
    %52 = arith.truncf %51 : vector<16x32xf32> to vector<16x32xbf16>
    %c0_11 = arith.constant 0 : index
    %c0_12 = arith.constant 0 : index
    %c0_13 = arith.constant 0 : index
    %53 = vector.load %arg4[%c0_11, %c0_12, %c0_13] : memref<2x32x96xbf16, #tpu.memory_space<vmem>>, vector<1x32x96xbf16>
    %54 = vector.shape_cast %53 : vector<1x32x96xbf16> to vector<32x96xbf16>
    %cst_14 = arith.constant dense<0.000000e+00> : vector<16x96xf32>
    %55 = tpu.matmul %52, %54, %cst_14 {dimension_numbers = #tpu.dot_dimension_numbers<[1], [0], [0], [1], [0, 0, 1, 1], [], []>} : vector<16x32xbf16>, vector<32x96xbf16>, vector<16x96xf32> -> vector<16x96xf32>
    %56 = vector.shape_cast %21 : vector<96xf32> to vector<1x96xf32>
    %57 = vector.broadcast %56 : vector<1x96xf32> to vector<16x96xf32>
    %58 = arith.addf %55, %57 : vector<16x96xf32>
    %59 = vector.extract_strided_slice %58 {offsets = [0, 0], sizes = [16, 32], strides = [1, 1]} : vector<16x96xf32> to vector<16x32xf32>
    %60 = vector.extract_strided_slice %58 {offsets = [0, 32], sizes = [16, 32], strides = [1, 1]} : vector<16x96xf32> to vector<16x32xf32>
    %61 = vector.extract_strided_slice %58 {offsets = [0, 64], sizes = [16, 32], strides = [1, 1]} : vector<16x96xf32> to vector<16x32xf32>
    %62 = vector.shape_cast %59 : vector<16x32xf32> to vector<2x8x4x8xf32>
    %63 = tpu.transpose %62, [0, 2, 1, 3] : vector<2x8x4x8xf32> -> vector<2x4x8x8xf32>
    %64 = vector.shape_cast %63 : vector<2x4x8x8xf32> to vector<8x8x8xf32>
    %65 = arith.truncf %64 : vector<8x8x8xf32> to vector<8x8x8xbf16>
    %66 = vector.shape_cast %60 : vector<16x32xf32> to vector<2x8x4x8xf32>
    %67 = tpu.transpose %66, [0, 2, 1, 3] : vector<2x8x4x8xf32> -> vector<2x4x8x8xf32>
    %68 = vector.shape_cast %67 : vector<2x4x8x8xf32> to vector<8x8x8xf32>
    %69 = arith.truncf %68 : vector<8x8x8xf32> to vector<8x8x8xbf16>
    %70 = vector.shape_cast %61 : vector<16x32xf32> to vector<2x8x4x8xf32>
    %71 = tpu.transpose %70, [0, 2, 1, 3] : vector<2x8x4x8xf32> -> vector<2x4x8x8xf32>
    %72 = vector.shape_cast %71 : vector<2x4x8x8xf32> to vector<8x8x8xf32>
    %73 = arith.truncf %72 : vector<8x8x8xf32> to vector<8x8x8xbf16>
    "tpu.trace_start"() <{level = 10 : i32, message = "bqd,bkd->bqk"}> : () -> ()
    %cst_15 = arith.constant dense<0.000000e+00> : vector<8x8x8xf32>
    %74 = tpu.matmul %65, %69, %cst_15 {dimension_numbers = #tpu.dot_dimension_numbers<[2], [2], [1], [1], [0, 0, 0, 1, 1, 1], [0], [0]>} : vector<8x8x8xbf16>, vector<8x8x8xbf16>, vector<8x8x8xf32> -> vector<8x8x8xf32>
    %cst_16 = arith.constant -1.000000e+09 : f32
    "tpu.trace_stop"() : () -> ()
    %75 = vector.shape_cast %9 : vector<1x8x8xi1> to vector<1x8x8xi1>
    %76 = vector.broadcast %75 : vector<1x8x8xi1> to vector<8x8x8xi1>
    %77 = vector.broadcast %cst_16 : f32 to vector<8x8x8xf32>
    %78 = arith.select %76, %74, %77 : vector<8x8x8xi1>, vector<8x8x8xf32>
    %cst_17 = arith.constant dense<0xFF800000> : vector<8x8xf32>
    %79 = vector.multi_reduction <maximumf>, %78, %cst_17 [2] : vector<8x8x8xf32> to vector<8x8xf32>
    %80 = vector.shape_cast %79 : vector<8x8xf32> to vector<8x8x1xf32>
    %81 = vector.broadcast %80 : vector<8x8x1xf32> to vector<8x8x8xf32>
    %82 = arith.subf %78, %81 : vector<8x8x8xf32>
    %83 = math.exp %82 : vector<8x8x8xf32>
    %cst_18 = arith.constant dense<0.000000e+00> : vector<8x8xf32>
    %84 = vector.multi_reduction <add>, %83, %cst_18 [2] : vector<8x8x8xf32> to vector<8x8xf32>
    %85 = vector.shape_cast %84 : vector<8x8xf32> to vector<8x8x1xf32>
    %86 = tpu.reciprocal %85 {approx = true} : vector<8x8x1xf32> -> vector<8x8x1xf32>
    %87 = vector.broadcast %86 : vector<8x8x1xf32> to vector<8x8x8xf32>
    %88 = arith.mulf %83, %87 : vector<8x8x8xf32>
    %89 = arith.truncf %88 : vector<8x8x8xf32> to vector<8x8x8xbf16>
    "tpu.trace_start"() <{level = 10 : i32, message = "bqk,bkd->bqd"}> : () -> ()
    %cst_19 = arith.constant dense<0.000000e+00> : vector<8x8x8xf32>
    %90 = tpu.matmul %89, %73, %cst_19 {dimension_numbers = #tpu.dot_dimension_numbers<[2], [1], [1], [2], [0, 0, 0, 1, 1, 2], [0], [0]>} : vector<8x8x8xbf16>, vector<8x8x8xbf16>, vector<8x8x8xf32> -> vector<8x8x8xf32>
    "tpu.trace_stop"() : () -> ()
    %91 = vector.shape_cast %90 : vector<8x8x8xf32> to vector<2x4x8x8xf32>
    %92 = tpu.transpose %91, [0, 2, 1, 3] : vector<2x4x8x8xf32> -> vector<2x8x4x8xf32>
    %93 = vector.shape_cast %92 : vector<2x8x4x8xf32> to vector<16x32xf32>
    %94 = arith.truncf %93 : vector<16x32xf32> to vector<16x32xbf16>
    %c0_20 = arith.constant 0 : index
    %c0_21 = arith.constant 0 : index
    %c0_22 = arith.constant 0 : index
    %95 = vector.load %arg6[%c0_20, %c0_21, %c0_22] : memref<2x32x32xbf16, #tpu.memory_space<vmem>>, vector<1x32x32xbf16>
    %96 = vector.shape_cast %95 : vector<1x32x32xbf16> to vector<32x32xbf16>
    %cst_23 = arith.constant dense<0.000000e+00> : vector<16x32xf32>
    %97 = tpu.matmul %94, %96, %cst_23 {dimension_numbers = #tpu.dot_dimension_numbers<[1], [0], [0], [1], [0, 0, 1, 1], [], []>} : vector<16x32xbf16>, vector<32x32xbf16>, vector<16x32xf32> -> vector<16x32xf32>
    %98 = vector.shape_cast %23 : vector<32xf32> to vector<1x32xf32>
    %99 = vector.broadcast %98 : vector<1x32xf32> to vector<16x32xf32>
    %100 = arith.addf %97, %99 : vector<16x32xf32>
    %101 = arith.addf %5, %100 : vector<16x32xf32>
    %cst_24 = arith.constant dense<0.000000e+00> : vector<16xf32>
    %102 = vector.multi_reduction <add>, %101, %cst_24 [1] : vector<16x32xf32> to vector<16xf32>
    %103 = vector.shape_cast %102 : vector<16xf32> to vector<16x1xf32>
    %cst_25 = arith.constant 3.200000e+01 : f32
    %104 = vector.broadcast %cst_25 : f32 to vector<16x1xf32>
    %105 = arith.divf %103, %104 : vector<16x1xf32>
    %106 = vector.broadcast %105 : vector<16x1xf32> to vector<16x32xf32>
    %107 = arith.subf %101, %106 : vector<16x32xf32>
    %108 = arith.mulf %107, %107 : vector<16x32xf32>
    %cst_26 = arith.constant dense<0.000000e+00> : vector<16xf32>
    %109 = vector.multi_reduction <add>, %108, %cst_26 [1] : vector<16x32xf32> to vector<16xf32>
    %110 = vector.shape_cast %109 : vector<16xf32> to vector<16x1xf32>
    %cst_27 = arith.constant 3.200000e+01 : f32
    %111 = vector.broadcast %cst_27 : f32 to vector<16x1xf32>
    %112 = arith.divf %110, %111 : vector<16x1xf32>
    %113 = vector.broadcast %105 : vector<16x1xf32> to vector<16x32xf32>
    %114 = arith.subf %101, %113 : vector<16x32xf32>
    %cst_28 = arith.constant 9.99999974E-6 : f32
    %115 = vector.broadcast %cst_28 : f32 to vector<16x1xf32>
    %116 = arith.addf %112, %115 : vector<16x1xf32>
    %117 = math.rsqrt %116 : vector<16x1xf32>
    %118 = vector.broadcast %117 : vector<16x1xf32> to vector<16x32xf32>
    %119 = arith.mulf %114, %118 : vector<16x32xf32>
    %120 = vector.shape_cast %17 : vector<32xf32> to vector<1x32xf32>
    %121 = vector.broadcast %120 : vector<1x32xf32> to vector<16x32xf32>
    %122 = arith.mulf %119, %121 : vector<16x32xf32>
    %123 = vector.shape_cast %19 : vector<32xf32> to vector<1x32xf32>
    %124 = vector.broadcast %123 : vector<1x32xf32> to vector<16x32xf32>
    %125 = arith.addf %122, %124 : vector<16x32xf32>
    %126 = arith.truncf %125 : vector<16x32xf32> to vector<16x32xbf16>
    %c0_29 = arith.constant 0 : index
    %c0_30 = arith.constant 0 : index
    %c0_31 = arith.constant 0 : index
    %127 = vector.load %arg7[%c0_29, %c0_30, %c0_31] : memref<2x32x128xbf16, #tpu.memory_space<vmem>>, vector<1x32x128xbf16>
    %128 = vector.shape_cast %127 : vector<1x32x128xbf16> to vector<32x128xbf16>
    %cst_32 = arith.constant dense<0.000000e+00> : vector<16x128xf32>
    %129 = tpu.matmul %126, %128, %cst_32 {dimension_numbers = #tpu.dot_dimension_numbers<[1], [0], [0], [1], [0, 0, 1, 1], [], []>} : vector<16x32xbf16>, vector<32x128xbf16>, vector<16x128xf32> -> vector<16x128xf32>
    %130 = vector.shape_cast %25 : vector<128xf32> to vector<1x128xf32>
    %131 = vector.broadcast %130 : vector<1x128xf32> to vector<16x128xf32>
    %132 = arith.addf %129, %131 : vector<16x128xf32>
    %cst_33 = arith.constant 1.702000e+00 : f32
    %133 = vector.broadcast %cst_33 : f32 to vector<16x128xf32>
    %134 = arith.mulf %133, %132 : vector<16x128xf32>
    %135 = arith.negf %134 : vector<16x128xf32>
    %136 = math.exp %135 : vector<16x128xf32>
    %cst_34 = arith.constant 1.000000e+00 : f32
    %137 = vector.broadcast %cst_34 : f32 to vector<16x128xf32>
    %138 = arith.addf %137, %136 : vector<16x128xf32>
    %139 = arith.divf %137, %138 : vector<16x128xf32>
    %140 = arith.mulf %132, %139 : vector<16x128xf32>
    %141 = arith.truncf %140 : vector<16x128xf32> to vector<16x128xbf16>
    %c0_35 = arith.constant 0 : index
    %c0_36 = arith.constant 0 : index
    %c0_37 = arith.constant 0 : index
    %142 = vector.load %arg8[%c0_35, %c0_36, %c0_37] : memref<2x128x32xbf16, #tpu.memory_space<vmem>>, vector<1x128x32xbf16>
    %143 = vector.shape_cast %142 : vector<1x128x32xbf16> to vector<128x32xbf16>
    %cst_38 = arith.constant dense<0.000000e+00> : vector<16x32xf32>
    %144 = tpu.matmul %141, %143, %cst_38 {dimension_numbers = #tpu.dot_dimension_numbers<[1], [0], [0], [1], [0, 0, 1, 1], [], []>} : vector<16x128xbf16>, vector<128x32xbf16>, vector<16x32xf32> -> vector<16x32xf32>
    %145 = vector.shape_cast %27 : vector<32xf32> to vector<1x32xf32>
    %146 = vector.broadcast %145 : vector<1x32xf32> to vector<16x32xf32>
    %147 = arith.addf %144, %146 : vector<16x32xf32>
    %148 = arith.addf %101, %147 : vector<16x32xf32>
    %c1 = arith.constant 1 : index
    %c0_39 = arith.constant 0 : index
    %c0_40 = arith.constant 0 : index
    %149 = vector.load %arg5[%c1, %c0_39, %c0_40] : memref<2x8x128xf32, #tpu.memory_space<vmem>>, vector<1x8x128xf32>
    %150 = vector.shape_cast %149 : vector<1x8x128xf32> to vector<8x128xf32>
    %151 = vector.extract_strided_slice %150 {offsets = [0, 0], sizes = [1, 32], strides = [1, 1]} : vector<8x128xf32> to vector<1x32xf32>
    %152 = vector.shape_cast %151 : vector<1x32xf32> to vector<32xf32>
    %153 = vector.extract_strided_slice %150 {offsets = [1, 0], sizes = [1, 32], strides = [1, 1]} : vector<8x128xf32> to vector<1x32xf32>
    %154 = vector.shape_cast %153 : vector<1x32xf32> to vector<32xf32>
    %155 = vector.extract_strided_slice %150 {offsets = [2, 0], sizes = [1, 32], strides = [1, 1]} : vector<8x128xf32> to vector<1x32xf32>
    %156 = vector.shape_cast %155 : vector<1x32xf32> to vector<32xf32>
    %157 = vector.extract_strided_slice %150 {offsets = [3, 0], sizes = [1, 32], strides = [1, 1]} : vector<8x128xf32> to vector<1x32xf32>
    %158 = vector.shape_cast %157 : vector<1x32xf32> to vector<32xf32>
    %159 = vector.extract_strided_slice %150 {offsets = [4, 0], sizes = [1, 96], strides = [1, 1]} : vector<8x128xf32> to vector<1x96xf32>
    %160 = vector.shape_cast %159 : vector<1x96xf32> to vector<96xf32>
    %161 = vector.extract_strided_slice %150 {offsets = [5, 0], sizes = [1, 32], strides = [1, 1]} : vector<8x128xf32> to vector<1x32xf32>
    %162 = vector.shape_cast %161 : vector<1x32xf32> to vector<32xf32>
    %163 = vector.extract_strided_slice %150 {offsets = [6, 0], sizes = [1, 128], strides = [1, 1]} : vector<8x128xf32> to vector<1x128xf32>
    %164 = vector.shape_cast %163 : vector<1x128xf32> to vector<128xf32>
    %165 = vector.extract_strided_slice %150 {offsets = [7, 0], sizes = [1, 32], strides = [1, 1]} : vector<8x128xf32> to vector<1x32xf32>
    %166 = vector.shape_cast %165 : vector<1x32xf32> to vector<32xf32>
    %cst_41 = arith.constant dense<0.000000e+00> : vector<16xf32>
    %167 = vector.multi_reduction <add>, %148, %cst_41 [1] : vector<16x32xf32> to vector<16xf32>
    %168 = vector.shape_cast %167 : vector<16xf32> to vector<16x1xf32>
    %cst_42 = arith.constant 3.200000e+01 : f32
    %169 = vector.broadcast %cst_42 : f32 to vector<16x1xf32>
    %170 = arith.divf %168, %169 : vector<16x1xf32>
    %171 = vector.broadcast %170 : vector<16x1xf32> to vector<16x32xf32>
    %172 = arith.subf %148, %171 : vector<16x32xf32>
    %173 = arith.mulf %172, %172 : vector<16x32xf32>
    %cst_43 = arith.constant dense<0.000000e+00> : vector<16xf32>
    %174 = vector.multi_reduction <add>, %173, %cst_43 [1] : vector<16x32xf32> to vector<16xf32>
    %175 = vector.shape_cast %174 : vector<16xf32> to vector<16x1xf32>
    %cst_44 = arith.constant 3.200000e+01 : f32
    %176 = vector.broadcast %cst_44 : f32 to vector<16x1xf32>
    %177 = arith.divf %175, %176 : vector<16x1xf32>
    %178 = vector.broadcast %170 : vector<16x1xf32> to vector<16x32xf32>
    %179 = arith.subf %148, %178 : vector<16x32xf32>
    %cst_45 = arith.constant 9.99999974E-6 : f32
    %180 = vector.broadcast %cst_45 : f32 to vector<16x1xf32>
    %181 = arith.addf %177, %180 : vector<16x1xf32>
    %182 = math.rsqrt %181 : vector<16x1xf32>
    %183 = vector.broadcast %182 : vector<16x1xf32> to vector<16x32xf32>
    %184 = arith.mulf %179, %183 : vector<16x32xf32>
    %185 = vector.shape_cast %152 : vector<32xf32> to vector<1x32xf32>
    %186 = vector.broadcast %185 : vector<1x32xf32> to vector<16x32xf32>
    %187 = arith.mulf %184, %186 : vector<16x32xf32>
    %188 = vector.shape_cast %154 : vector<32xf32> to vector<1x32xf32>
    %189 = vector.broadcast %188 : vector<1x32xf32> to vector<16x32xf32>
    %190 = arith.addf %187, %189 : vector<16x32xf32>
    %191 = arith.truncf %190 : vector<16x32xf32> to vector<16x32xbf16>
    %c1_46 = arith.constant 1 : index
    %c0_47 = arith.constant 0 : index
    %c0_48 = arith.constant 0 : index
    %192 = vector.load %arg4[%c1_46, %c0_47, %c0_48] : memref<2x32x96xbf16, #tpu.memory_space<vmem>>, vector<1x32x96xbf16>
    %193 = vector.shape_cast %192 : vector<1x32x96xbf16> to vector<32x96xbf16>
    %cst_49 = arith.constant dense<0.000000e+00> : vector<16x96xf32>
    %194 = tpu.matmul %191, %193, %cst_49 {dimension_numbers = #tpu.dot_dimension_numbers<[1], [0], [0], [1], [0, 0, 1, 1], [], []>} : vector<16x32xbf16>, vector<32x96xbf16>, vector<16x96xf32> -> vector<16x96xf32>
    %195 = vector.shape_cast %160 : vector<96xf32> to vector<1x96xf32>
    %196 = vector.broadcast %195 : vector<1x96xf32> to vector<16x96xf32>
    %197 = arith.addf %194, %196 : vector<16x96xf32>
    %198 = vector.extract_strided_slice %197 {offsets = [0, 0], sizes = [16, 32], strides = [1, 1]} : vector<16x96xf32> to vector<16x32xf32>
    %199 = vector.extract_strided_slice %197 {offsets = [0, 32], sizes = [16, 32], strides = [1, 1]} : vector<16x96xf32> to vector<16x32xf32>
    %200 = vector.extract_strided_slice %197 {offsets = [0, 64], sizes = [16, 32], strides = [1, 1]} : vector<16x96xf32> to vector<16x32xf32>
    %201 = vector.shape_cast %198 : vector<16x32xf32> to vector<2x8x4x8xf32>
    %202 = tpu.transpose %201, [0, 2, 1, 3] : vector<2x8x4x8xf32> -> vector<2x4x8x8xf32>
    %203 = vector.shape_cast %202 : vector<2x4x8x8xf32> to vector<8x8x8xf32>
    %204 = arith.truncf %203 : vector<8x8x8xf32> to vector<8x8x8xbf16>
    %205 = vector.shape_cast %199 : vector<16x32xf32> to vector<2x8x4x8xf32>
    %206 = tpu.transpose %205, [0, 2, 1, 3] : vector<2x8x4x8xf32> -> vector<2x4x8x8xf32>
    %207 = vector.shape_cast %206 : vector<2x4x8x8xf32> to vector<8x8x8xf32>
    %208 = arith.truncf %207 : vector<8x8x8xf32> to vector<8x8x8xbf16>
    %209 = vector.shape_cast %200 : vector<16x32xf32> to vector<2x8x4x8xf32>
    %210 = tpu.transpose %209, [0, 2, 1, 3] : vector<2x8x4x8xf32> -> vector<2x4x8x8xf32>
    %211 = vector.shape_cast %210 : vector<2x4x8x8xf32> to vector<8x8x8xf32>
    %212 = arith.truncf %211 : vector<8x8x8xf32> to vector<8x8x8xbf16>
    "tpu.trace_start"() <{level = 10 : i32, message = "bqd,bkd->bqk"}> : () -> ()
    %cst_50 = arith.constant dense<0.000000e+00> : vector<8x8x8xf32>
    %213 = tpu.matmul %204, %208, %cst_50 {dimension_numbers = #tpu.dot_dimension_numbers<[2], [2], [1], [1], [0, 0, 0, 1, 1, 1], [0], [0]>} : vector<8x8x8xbf16>, vector<8x8x8xbf16>, vector<8x8x8xf32> -> vector<8x8x8xf32>
    %cst_51 = arith.constant -1.000000e+09 : f32
    "tpu.trace_stop"() : () -> ()
    %214 = vector.shape_cast %9 : vector<1x8x8xi1> to vector<1x8x8xi1>
    %215 = vector.broadcast %214 : vector<1x8x8xi1> to vector<8x8x8xi1>
    %216 = vector.broadcast %cst_51 : f32 to vector<8x8x8xf32>
    %217 = arith.select %215, %213, %216 : vector<8x8x8xi1>, vector<8x8x8xf32>
    %cst_52 = arith.constant dense<0xFF800000> : vector<8x8xf32>
    %218 = vector.multi_reduction <maximumf>, %217, %cst_52 [2] : vector<8x8x8xf32> to vector<8x8xf32>
    %219 = vector.shape_cast %218 : vector<8x8xf32> to vector<8x8x1xf32>
    %220 = vector.broadcast %219 : vector<8x8x1xf32> to vector<8x8x8xf32>
    %221 = arith.subf %217, %220 : vector<8x8x8xf32>
    %222 = math.exp %221 : vector<8x8x8xf32>
    %cst_53 = arith.constant dense<0.000000e+00> : vector<8x8xf32>
    %223 = vector.multi_reduction <add>, %222, %cst_53 [2] : vector<8x8x8xf32> to vector<8x8xf32>
    %224 = vector.shape_cast %223 : vector<8x8xf32> to vector<8x8x1xf32>
    %225 = tpu.reciprocal %224 {approx = true} : vector<8x8x1xf32> -> vector<8x8x1xf32>
    %226 = vector.broadcast %225 : vector<8x8x1xf32> to vector<8x8x8xf32>
    %227 = arith.mulf %222, %226 : vector<8x8x8xf32>
    %228 = arith.truncf %227 : vector<8x8x8xf32> to vector<8x8x8xbf16>
    "tpu.trace_start"() <{level = 10 : i32, message = "bqk,bkd->bqd"}> : () -> ()
    %cst_54 = arith.constant dense<0.000000e+00> : vector<8x8x8xf32>
    %229 = tpu.matmul %228, %212, %cst_54 {dimension_numbers = #tpu.dot_dimension_numbers<[2], [1], [1], [2], [0, 0, 0, 1, 1, 2], [0], [0]>} : vector<8x8x8xbf16>, vector<8x8x8xbf16>, vector<8x8x8xf32> -> vector<8x8x8xf32>
    "tpu.trace_stop"() : () -> ()
    %230 = vector.shape_cast %229 : vector<8x8x8xf32> to vector<2x4x8x8xf32>
    %231 = tpu.transpose %230, [0, 2, 1, 3] : vector<2x4x8x8xf32> -> vector<2x8x4x8xf32>
    %232 = vector.shape_cast %231 : vector<2x8x4x8xf32> to vector<16x32xf32>
    %233 = arith.truncf %232 : vector<16x32xf32> to vector<16x32xbf16>
    %c1_55 = arith.constant 1 : index
    %c0_56 = arith.constant 0 : index
    %c0_57 = arith.constant 0 : index
    %234 = vector.load %arg6[%c1_55, %c0_56, %c0_57] : memref<2x32x32xbf16, #tpu.memory_space<vmem>>, vector<1x32x32xbf16>
    %235 = vector.shape_cast %234 : vector<1x32x32xbf16> to vector<32x32xbf16>
    %cst_58 = arith.constant dense<0.000000e+00> : vector<16x32xf32>
    %236 = tpu.matmul %233, %235, %cst_58 {dimension_numbers = #tpu.dot_dimension_numbers<[1], [0], [0], [1], [0, 0, 1, 1], [], []>} : vector<16x32xbf16>, vector<32x32xbf16>, vector<16x32xf32> -> vector<16x32xf32>
    %237 = vector.shape_cast %162 : vector<32xf32> to vector<1x32xf32>
    %238 = vector.broadcast %237 : vector<1x32xf32> to vector<16x32xf32>
    %239 = arith.addf %236, %238 : vector<16x32xf32>
    %240 = arith.addf %148, %239 : vector<16x32xf32>
    %cst_59 = arith.constant dense<0.000000e+00> : vector<16xf32>
    %241 = vector.multi_reduction <add>, %240, %cst_59 [1] : vector<16x32xf32> to vector<16xf32>
    %242 = vector.shape_cast %241 : vector<16xf32> to vector<16x1xf32>
    %cst_60 = arith.constant 3.200000e+01 : f32
    %243 = vector.broadcast %cst_60 : f32 to vector<16x1xf32>
    %244 = arith.divf %242, %243 : vector<16x1xf32>
    %245 = vector.broadcast %244 : vector<16x1xf32> to vector<16x32xf32>
    %246 = arith.subf %240, %245 : vector<16x32xf32>
    %247 = arith.mulf %246, %246 : vector<16x32xf32>
    %cst_61 = arith.constant dense<0.000000e+00> : vector<16xf32>
    %248 = vector.multi_reduction <add>, %247, %cst_61 [1] : vector<16x32xf32> to vector<16xf32>
    %249 = vector.shape_cast %248 : vector<16xf32> to vector<16x1xf32>
    %cst_62 = arith.constant 3.200000e+01 : f32
    %250 = vector.broadcast %cst_62 : f32 to vector<16x1xf32>
    %251 = arith.divf %249, %250 : vector<16x1xf32>
    %252 = vector.broadcast %244 : vector<16x1xf32> to vector<16x32xf32>
    %253 = arith.subf %240, %252 : vector<16x32xf32>
    %cst_63 = arith.constant 9.99999974E-6 : f32
    %254 = vector.broadcast %cst_63 : f32 to vector<16x1xf32>
    %255 = arith.addf %251, %254 : vector<16x1xf32>
    %256 = math.rsqrt %255 : vector<16x1xf32>
    %257 = vector.broadcast %256 : vector<16x1xf32> to vector<16x32xf32>
    %258 = arith.mulf %253, %257 : vector<16x32xf32>
    %259 = vector.shape_cast %156 : vector<32xf32> to vector<1x32xf32>
    %260 = vector.broadcast %259 : vector<1x32xf32> to vector<16x32xf32>
    %261 = arith.mulf %258, %260 : vector<16x32xf32>
    %262 = vector.shape_cast %158 : vector<32xf32> to vector<1x32xf32>
    %263 = vector.broadcast %262 : vector<1x32xf32> to vector<16x32xf32>
    %264 = arith.addf %261, %263 : vector<16x32xf32>
    %265 = arith.truncf %264 : vector<16x32xf32> to vector<16x32xbf16>
    %c1_64 = arith.constant 1 : index
    %c0_65 = arith.constant 0 : index
    %c0_66 = arith.constant 0 : index
    %266 = vector.load %arg7[%c1_64, %c0_65, %c0_66] : memref<2x32x128xbf16, #tpu.memory_space<vmem>>, vector<1x32x128xbf16>
    %267 = vector.shape_cast %266 : vector<1x32x128xbf16> to vector<32x128xbf16>
    %cst_67 = arith.constant dense<0.000000e+00> : vector<16x128xf32>
    %268 = tpu.matmul %265, %267, %cst_67 {dimension_numbers = #tpu.dot_dimension_numbers<[1], [0], [0], [1], [0, 0, 1, 1], [], []>} : vector<16x32xbf16>, vector<32x128xbf16>, vector<16x128xf32> -> vector<16x128xf32>
    %269 = vector.shape_cast %164 : vector<128xf32> to vector<1x128xf32>
    %270 = vector.broadcast %269 : vector<1x128xf32> to vector<16x128xf32>
    %271 = arith.addf %268, %270 : vector<16x128xf32>
    %cst_68 = arith.constant 1.702000e+00 : f32
    %272 = vector.broadcast %cst_68 : f32 to vector<16x128xf32>
    %273 = arith.mulf %272, %271 : vector<16x128xf32>
    %274 = arith.negf %273 : vector<16x128xf32>
    %275 = math.exp %274 : vector<16x128xf32>
    %cst_69 = arith.constant 1.000000e+00 : f32
    %276 = vector.broadcast %cst_69 : f32 to vector<16x128xf32>
    %277 = arith.addf %276, %275 : vector<16x128xf32>
    %278 = arith.divf %276, %277 : vector<16x128xf32>
    %279 = arith.mulf %271, %278 : vector<16x128xf32>
    %280 = arith.truncf %279 : vector<16x128xf32> to vector<16x128xbf16>
    %c1_70 = arith.constant 1 : index
    %c0_71 = arith.constant 0 : index
    %c0_72 = arith.constant 0 : index
    %281 = vector.load %arg8[%c1_70, %c0_71, %c0_72] : memref<2x128x32xbf16, #tpu.memory_space<vmem>>, vector<1x128x32xbf16>
    %282 = vector.shape_cast %281 : vector<1x128x32xbf16> to vector<128x32xbf16>
    %cst_73 = arith.constant dense<0.000000e+00> : vector<16x32xf32>
    %283 = tpu.matmul %280, %282, %cst_73 {dimension_numbers = #tpu.dot_dimension_numbers<[1], [0], [0], [1], [0, 0, 1, 1], [], []>} : vector<16x128xbf16>, vector<128x32xbf16>, vector<16x32xf32> -> vector<16x32xf32>
    %284 = vector.shape_cast %166 : vector<32xf32> to vector<1x32xf32>
    %285 = vector.broadcast %284 : vector<1x32xf32> to vector<16x32xf32>
    %286 = arith.addf %283, %285 : vector<16x32xf32>
    %287 = arith.addf %240, %286 : vector<16x32xf32>
    %288 = tpu.iota {dimensions = array<i32: 0>} : vector<16x1xi32>
    %c0_74 = arith.constant 0 : index
    %289 = memref.load %arg1[%c0_74] : memref<2xi32, #tpu.memory_space<smem>>
    %c0_i32 = arith.constant 0 : i32
    %290 = arith.addi %c0_i32, %289 : i32
    %291 = vector.broadcast %290 : i32 to vector<16x1xi32>
    %292 = arith.cmpi eq, %288, %291 : vector<16x1xi32>
    %293 = arith.extui %292 : vector<16x1xi1> to vector<16x1xi32>
    %294 = arith.sitofp %293 : vector<16x1xi32> to vector<16x1xf32>
    %295 = vector.broadcast %294 : vector<16x1xf32> to vector<16x32xf32>
    %296 = arith.mulf %287, %295 : vector<16x32xf32>
    %cst_75 = arith.constant dense<0.000000e+00> : vector<32xf32>
    %297 = vector.multi_reduction <add>, %296, %cst_75 [0] : vector<16x32xf32> to vector<32xf32>
    %298 = vector.shape_cast %297 : vector<32xf32> to vector<1x32xf32>
    %c1_76 = arith.constant 1 : index
    %299 = memref.load %arg1[%c1_76] : memref<2xi32, #tpu.memory_space<smem>>
    %c8_i32 = arith.constant 8 : i32
    %300 = arith.addi %c8_i32, %299 : i32
    %301 = vector.broadcast %300 : i32 to vector<16x1xi32>
    %302 = arith.cmpi eq, %288, %301 : vector<16x1xi32>
    %303 = arith.extui %302 : vector<16x1xi1> to vector<16x1xi32>
    %304 = arith.sitofp %303 : vector<16x1xi32> to vector<16x1xf32>
    %305 = vector.broadcast %304 : vector<16x1xf32> to vector<16x32xf32>
    %306 = arith.mulf %287, %305 : vector<16x32xf32>
    %cst_77 = arith.constant dense<0.000000e+00> : vector<32xf32>
    %307 = vector.multi_reduction <add>, %306, %cst_77 [0] : vector<16x32xf32> to vector<32xf32>
    %308 = vector.shape_cast %307 : vector<32xf32> to vector<1x32xf32>
    %309 = tpu.concatenate %298, %308 in 0 : vector<1x32xf32>, vector<1x32xf32> -> vector<2x32xf32>
    %c0_78 = arith.constant 0 : index
    %c0_79 = arith.constant 0 : index
    %310 = vector.load %arg9[%c0_78, %c0_79] : memref<2x32xf32, #tpu.memory_space<vmem>>, vector<1x32xf32>
    %311 = vector.shape_cast %310 : vector<1x32xf32> to vector<32xf32>
    %c1_80 = arith.constant 1 : index
    %c0_81 = arith.constant 0 : index
    %312 = vector.load %arg9[%c1_80, %c0_81] : memref<2x32xf32, #tpu.memory_space<vmem>>, vector<1x32xf32>
    %313 = vector.shape_cast %312 : vector<1x32xf32> to vector<32xf32>
    %cst_82 = arith.constant dense<0.000000e+00> : vector<2xf32>
    %314 = vector.multi_reduction <add>, %309, %cst_82 [1] : vector<2x32xf32> to vector<2xf32>
    %315 = vector.shape_cast %314 : vector<2xf32> to vector<2x1xf32>
    %cst_83 = arith.constant 3.200000e+01 : f32
    %316 = vector.broadcast %cst_83 : f32 to vector<2x1xf32>
    %317 = arith.divf %315, %316 : vector<2x1xf32>
    %318 = vector.broadcast %317 : vector<2x1xf32> to vector<2x32xf32>
    %319 = arith.subf %309, %318 : vector<2x32xf32>
    %320 = arith.mulf %319, %319 : vector<2x32xf32>
    %cst_84 = arith.constant dense<0.000000e+00> : vector<2xf32>
    %321 = vector.multi_reduction <add>, %320, %cst_84 [1] : vector<2x32xf32> to vector<2xf32>
    %322 = vector.shape_cast %321 : vector<2xf32> to vector<2x1xf32>
    %cst_85 = arith.constant 3.200000e+01 : f32
    %323 = vector.broadcast %cst_85 : f32 to vector<2x1xf32>
    %324 = arith.divf %322, %323 : vector<2x1xf32>
    %325 = vector.broadcast %317 : vector<2x1xf32> to vector<2x32xf32>
    %326 = arith.subf %309, %325 : vector<2x32xf32>
    %cst_86 = arith.constant 9.99999974E-6 : f32
    %327 = vector.broadcast %cst_86 : f32 to vector<2x1xf32>
    %328 = arith.addf %324, %327 : vector<2x1xf32>
    %329 = math.rsqrt %328 : vector<2x1xf32>
    %330 = vector.broadcast %329 : vector<2x1xf32> to vector<2x32xf32>
    %331 = arith.mulf %326, %330 : vector<2x32xf32>
    %332 = vector.shape_cast %311 : vector<32xf32> to vector<1x32xf32>
    %333 = vector.broadcast %332 : vector<1x32xf32> to vector<2x32xf32>
    %334 = arith.mulf %331, %333 : vector<2x32xf32>
    %335 = vector.shape_cast %313 : vector<32xf32> to vector<1x32xf32>
    %336 = vector.broadcast %335 : vector<1x32xf32> to vector<2x32xf32>
    %337 = arith.addf %334, %336 : vector<2x32xf32>
    %338 = arith.truncf %337 : vector<2x32xf32> to vector<2x32xbf16>
    %c0_87 = arith.constant 0 : index
    %c0_88 = arith.constant 0 : index
    %339 = vector.load %arg10[%c0_87, %c0_88] : memref<32x32xbf16, #tpu.memory_space<vmem>>, vector<32x32xbf16>
    %cst_89 = arith.constant dense<0.000000e+00> : vector<2x32xf32>
    %340 = tpu.matmul %338, %339, %cst_89 {dimension_numbers = #tpu.dot_dimension_numbers<[1], [0], [0], [1], [0, 0, 1, 1], [], []>} : vector<2x32xbf16>, vector<32x32xbf16>, vector<2x32xf32> -> vector<2x32xf32>
    %c0_90 = arith.constant 0 : index
    %c0_91 = arith.constant 0 : index
    %341 = vector.load %arg11[%c0_90, %c0_91] : memref<2x32xf32, #tpu.memory_space<vmem>>, vector<2x32xf32>
    tpu.vector_store %arg11[%c0_90, %c0_91], %340 {strides = array<i32>} : memref<2x32xf32, #tpu.memory_space<vmem>>, vector<2x32xf32>,
    return
  }
  func.func @transform_0(%arg0: i32, %arg1: memref<2xi32, #tpu.memory_space<smem>>) -> (i32, i32, i32) {
    %c0_i32 = arith.constant 0 : i32
    %c0_i32_0 = arith.constant 0 : i32
    %c0_i32_1 = arith.constant 0 : i32
    %c0_i32_2 = arith.constant 0 : i32
    return %c0_i32, %c0_i32_0, %c0_i32_1 : i32, i32, i32
  }
  func.func @transform_1(%arg0: i32, %arg1: memref<2xi32, #tpu.memory_space<smem>>) -> (i32, i32) {
    %c0_i32 = arith.constant 0 : i32
    %c0_i32_0 = arith.constant 0 : i32
    %c0_i32_1 = arith.constant 0 : i32
    return %c0_i32, %c0_i32_0 : i32, i32
  }
  func.func @transform_2(%arg0: i32, %arg1: memref<2xi32, #tpu.memory_space<smem>>) -> (i32, i32, i32) {
    %c0_i32 = arith.constant 0 : i32
    %c0_i32_0 = arith.constant 0 : i32
    %c0_i32_1 = arith.constant 0 : i32
    %c0_i32_2 = arith.constant 0 : i32
    return %c0_i32, %c0_i32_0, %c0_i32_1 : i32, i32, i32
  }
  func.func @transform_3(%arg0: i32, %arg1: memref<2xi32, #tpu.memory_space<smem>>) -> (i32, i32, i32) {
    %c0_i32 = arith.constant 0 : i32
    %c0_i32_0 = arith.constant 0 : i32
    %c0_i32_1 = arith.constant 0 : i32
    %c0_i32_2 = arith.constant 0 : i32
    return %c0_i32, %c0_i32_0, %c0_i32_1 : i32, i32, i32
  }
  func.func @transform_4(%arg0: i32, %arg1: memref<2xi32, #tpu.memory_space<smem>>) -> (i32, i32, i32) {
    %c0_i32 = arith.constant 0 : i32
    %c0_i32_0 = arith.constant 0 : i32
    %c0_i32_1 = arith.constant 0 : i32
    %c0_i32_2 = arith.constant 0 : i32
    return %c0_i32, %c0_i32_0, %c0_i32_1 : i32, i32, i32
  }
  func.func @transform_5(%arg0: i32, %arg1: memref<2xi32, #tpu.memory_space<smem>>) -> (i32, i32, i32) {
    %c0_i32 = arith.constant 0 : i32
    %c0_i32_0 = arith.constant 0 : i32
    %c0_i32_1 = arith.constant 0 : i32
    %c0_i32_2 = arith.constant 0 : i32
    return %c0_i32, %c0_i32_0, %c0_i32_1 : i32, i32, i32
  }
  func.func @transform_6(%arg0: i32, %arg1: memref<2xi32, #tpu.memory_space<smem>>) -> (i32, i32, i32) {
    %c0_i32 = arith.constant 0 : i32
    %c0_i32_0 = arith.constant 0 : i32
    %c0_i32_1 = arith.constant 0 : i32
    %c0_i32_2 = arith.constant 0 : i32
    return %c0_i32, %c0_i32_0, %c0_i32_1 : i32, i32, i32
  }
  func.func @transform_7(%arg0: i32, %arg1: memref<2xi32, #tpu.memory_space<smem>>) -> (i32, i32) {
    %c0_i32 = arith.constant 0 : i32
    %c0_i32_0 = arith.constant 0 : i32
    %c0_i32_1 = arith.constant 0 : i32
    return %c0_i32, %c0_i32_0 : i32, i32
  }
  func.func @transform_8(%arg0: i32, %arg1: memref<2xi32, #tpu.memory_space<smem>>) -> (i32, i32) {
    %c0_i32 = arith.constant 0 : i32
    %c0_i32_0 = arith.constant 0 : i32
    %c0_i32_1 = arith.constant 0 : i32
    return %c0_i32, %c0_i32_0 : i32, i32
  }
  func.func @transform_9(%arg0: i32, %arg1: memref<2xi32, #tpu.memory_space<smem>>) -> (i32, i32) {
    %c0_i32 = arith.constant 0 : i32
    %c0_i32_0 = arith.constant 0 : i32
    %c0_i32_1 = arith.constant 0 : i32
    return %c0_i32, %c0_i32_0 : i32, i32
  }
}

</mosaic_0001>

<bundles_post_ra>
// kernel: text_encoder_forward.1
= control target key start
LH: loop header
LB: loop body
LE: loop exit
PB: predicated region body
PF: predicated region fallthrough
CT: control target
= control target key end

     0   :  { %s7090_s0 = inlined_call_operand.vmem [shape: s32[2], index: 0, kind: input, shape index: {}]   ;;  %s7091_s1 = inlined_call_operand.vmem [shape: f32[2,8,32], index: 1, kind: input, shape index: {}]   ;;  %s7092_s2 = inlined_call_operand.vmem [shape: f32[8,32], index: 2, kind: input, shape index: {}]   ;;  %s7093_s3 = inlined_call_operand.vmem [shape: bf16[2,32,96], index: 3, kind: input, shape index: {}]   ;;  %s7094_s4 = inlined_call_operand.vmem [shape: f32[2,8,128], index: 4, kind: input, shape index: {}]   ;;  %s7095_s5 = inlined_call_operand.vmem [shape: bf16[2,32,32], index: 5, kind: input, shape index: {}]   ;;  %s7096_s6 = inlined_call_operand.vmem [shape: bf16[2,32,128], index: 6, kind: input, shape index: {}]   ;;  %s7097_s7 = inlined_call_operand.vmem [shape: bf16[2,128,32], index: 7, kind: input, shape index: {}]   ;;  %s7098_s8 = inlined_call_operand.vmem [shape: f32[2,32], index: 8, kind: input, shape index: {}]   ;;  %s7099_s9 = inlined_call_operand.vmem [shape: bf16[32,32], index: 9, kind: input, shape index: {}]   ;;  %s7100_s10 = inlined_call_operand.hbm [shape: f32[2,32], index: 10, kind: output, shape index: {}]  }
   0x1   :  { %s15_s15 = sshll.u32 %s7090_s0, 4  ;;  %s16_s15 = int_to_ptr.vmem [resolvable:$true] %s15_s15 }
   0x2   :  { %s5817_s16 = scalar_lea.vmem %s16_s15, 16  ;;  %p5822_p1 = scmp.lt.s32.totalorder %s16_s15, %s16_s15 }
   0x3   :  { %p5818_p0 = scmp.ne.s32.totalorder %s16_s15, %s5817_s16  ;;  %p5823_p2 = scmp.lt.s32.totalorder %s5817_s16, %s5817_s16 }
   0x5   :  { %p5824_p3 = por %p5823_p2, %p5822_p1 }
   0x7   :  { %p5825_p4 = pnand %p5824_p3, %p5818_p0 }
   0x9   :  { %5828 = shalt.err (!%p5825_p4)  }
   0xa   :  { %s5855_s17 = smov [#allocation3]  }
   0xb   :  { %18 = dma.vmem_to_smem %s16_s15, 16, %s5855_s17, [#allocation2] }
   0xc   :  { %5851 = dma.done.wait [#allocation2], 16 }
   0xd   :  { %5852 = vsyncadd [#allocation2], 4294967280 }
   0xe   :  { %20 = sfence }
   0xf   :  { %v41_v0 = vld [vmem:[%s7091_s1] sm:$0xff]  ;;  %vm52_vm0 = vcmask 261120   ;;  %v42_v2 = vld [vmem:[%s7091_s1 + $0x8] sm:$0xff] }
  0x10   :  { %v43_v1 = vld [vmem:[%s7092_s2] sm:$0xff] }
  0x11   :  { %v5936_v3 = vadd.f32 %v43_v1, %v41_v0  ;;  %v5938_v4 = vadd.f32 %v43_v1, %v42_v2 }
  0x13   :  { %v53_v5 = vsel %vm52_vm0, %v5936_v3, 0.0  ;;  %v56_v6 = vsel %vm52_vm0, %v5938_v4, 0.0 }
  0x14   :  { %54 = vadd.xlane.f32.xlu0 %v53_v5 }
  0x18   :  { %57 = vadd.xlane.f32.xlu0 %v56_v6 }
  0x19   :  { %21 = vsyncpa [#allocation5], 0  ;;  %v5687_v17 = vld [vmem:[%s7093_s3] sm:$0xff]   ;;  %v5856_v18 = vmov 0.0   ;;  %v5688_v19 = vld [vmem:[%s7093_s3 + $0x8] sm:$0xff]   ;;  %vm5857_vm1 = vmmov 0   ;;  %v46_v24 = vlaneseq }
  0x1a   :  { %5355 = vmatprep.subr.bf16.mxu1 %v5856_v18  ;;  %5369 = vmatprep.subr.bf16.mxu0 %v5856_v18  ;;  %v51_v29 = vld [vmem:[%s7094_s4] sm:$0xff]  ;;  %s5858_s27 = smov 112   ;;  %s5859_s28 = smov 120   ;;  %v5862_v56 = vmov 1983009808   ;;  %vm1065_vm2 = vcmask 64512  }
  0x1b   :  { %5356 = vmatpush3.bf16.msra.mxu1 %v5687_v17  ;;  %5359 = vmatprep.mubr.msk.bf16.mxu1 %vm5857_vm1, %v5856_v18  ;;  %v5963_v27 = vshrl.u32 %v46_v24, 7  ;;  %s5860_s29 = smov 104   ;;  %s5861_s30 = smov 96   ;;  %v180_v57 = vunpack.c.l.s4 %v5862_v56  ;;  %v5863_v59 = vmov 1934713408   ;;  %vm1543_vm4 = vcmask 1043456  }
  0x1c   :  { %5357 = vmatprep.subr.bf16.mxu1 %v5856_v18  ;;  %5371 = vmatprep.mubr.msk.bf16.mxu0 %vm5857_vm1, %v5856_v18  ;;  %v212_v60 = vunpack.c.l.s4 %v5863_v59  ;;  %s5864_s11 = smov 64   ;;  %s5865_s16 = smov 16   ;;  %vm2207_vm5 = vcmask 130048   ;;  %vm2210_vm6 = vcmask 195584   ;;  %vm5008_vm11 = vcmask 1040384  }
  0x1d   :  { %v82_v28 = vsub.s32 0, %v5963_v27  ;;  %v88_v33 = vsub.s32 1, %v5963_v27  ;;  %v99_v42 = vsub.s32 4, %v5963_v27  ;;  %v181_v58 = vunpack.c.0.s8 %v180_v57  ;;  %s5866_s17 = smov 8   ;;  %s5867_s18 = smov 24  }
  0x1e   :  { %v213_v2 = vunpack.c.0.s8 %v212_v60  ;;  %s4969_s13 = sld [smem:[#allocation3]]  ;;  %vm5012_vm12 = vcmask 254976  }
  0x1f   :  { %5358 = vmatpush3.bf16.msra.mxu1 %v5688_v19  ;;  %v83_v32 = vrot.slane %v51_v29, %v82_v28  ;;  %v89_v37 = vrot.slane %v51_v29, %v88_v33  ;;  %v100_v43 = vrot.slane %v51_v29, %v99_v42  ;;  %v6029_v63 = vsub.s32 %v181_v58, %v5963_v27 }
  0x20   :  { %5363 = vmatprep.subr.bf16.mxu1 %v5856_v18 }
  0xa1   :  { %v55_v7 = vpop.xlane.xlu0 %54 }
  0xa2   :  { %v60_v8 = vmul.f32 0.03125, %v55_v7 }
  0xa4   :  { %v62_v9 = vsub.f32 %v5936_v3, %v60_v8 }
  0xa5   :  { %v58_v10 = vpop.xlane.xlu0 %57 }
  0xa6   :  { %v61_v11 = vmul.f32 0.03125, %v58_v10  ;;  %v64_v12 = vmul.f32 %v62_v9, %v62_v9 }
  0xa8   :  { %v63_v13 = vsub.f32 %v5938_v4, %v61_v11  ;;  %v66_v14 = vsel %vm52_vm0, %v64_v12, 0.0 }
  0xa9   :  { %67 = vadd.xlane.f32.xlu1 %v66_v14 }
  0xaa   :  { %v65_v15 = vmul.f32 %v63_v13, %v63_v13 }
  0xac   :  { %v69_v16 = vsel %vm52_vm0, %v65_v15, 0.0 }
  0xad   :  { %70 = vadd.xlane.f32.xlu1 %v69_v16 }
 0x136   :  { %v68_v20 = vpop.xlane.xlu1 %67 }
 0x137   :  { %v72_v21 = vmul.f32 0.03125, %v68_v20 }
 0x139   :  { %v74_v22 = vadd.f32 1e-05, %v72_v21 }
 0x13a   :  { %v71_v23 = vpop.xlane.xlu1 %70 }
 0x13b   :  { %5717 = vrsqrt.f32 %v74_v22  ;;  %v73_v25 = vmul.f32 0.03125, %v71_v23 }
 0x13d   :  { %v75_v26 = vadd.f32 1e-05, %v73_v25 }
 0x13f   :  { %5719 = vrsqrt.f32 %v75_v26 }
 0x145   :  { %v5718_v30 = vpop.eup %5717 }
 0x146   :  { %v78_v31 = vmul.f32 %v5718_v30, %v62_v9  ;;  %v6040_v9 = vsub.s32 %v213_v2, %v5963_v27 }
 0x148   :  { %v84_v36 = vmul.f32 %v83_v32, %v78_v31 }
 0x149   :  { %v5720_v34 = vpop.eup %5719 }
 0x14a   :  { %v79_v35 = vmul.f32 %v5720_v34, %v63_v13  ;;  %v90_v39 = vadd.f32 %v89_v37, %v84_v36 }
 0x14c   :  { %v85_v38 = vmul.f32 %v83_v32, %v79_v35 }
 0x14e   :  { %v91_v40 = vadd.f32 %v89_v37, %v85_v38 }
 0x150   :  { %v92_v41 = vpack.c.bf16 %v91_v40, %v90_v39 }
 0x152   :  { %5360 = vmatmul.mubr.msk.bf16.vlgmr.msra.gmra.mrb[0].mxu1 %vm52_vm0, %v92_v41 }
 0x153   :  { %5365 = vmatprep.mubr.msk.bf16.mxu1 %vm5857_vm1, %v5856_v18 }
 0x225   :  { %v150_v44 = vpop.f32.mrb[0].mxu1 }
 0x226   :  { %v5980_v45 = vadd.f32 %v150_v44, %v100_v43  ;;  %v5361_v46 = vpop.f32.mrb[1].mxu1 }
 0x227   :  { %v153_v47 = vpop.f32.mrb[2].mxu1 }
 0x228   :  { %165 = vrot.lane.b32.xlu1 %v5980_v45, %s5858_s27  ;;  %159 = vrot.lane.b32.xlu0 %v5980_v45, %s5859_s28  ;;  %v5362_v48 = vpop.f32.mrb[3].mxu1  ;;  %v5986_v49 = vadd.f32 %v153_v47, %v100_v43 }
 0x22c   :  { %171 = vrot.lane.b32.xlu1 %v5980_v45, %s5860_s29  ;;  %167 = vrot.lane.b32.xlu0 %v5986_v49, %s5858_s27 }
 0x230   :  { %457 = vrot.lane.b32.xlu0 %v5980_v45, %s5861_s30  ;;  %161 = vrot.lane.b32.xlu1 %v5986_v49, %s5859_s28 }
 0x234   :  { %173 = vrot.lane.b32.xlu1 %v5986_v49, %s5860_s29 }
 0x29a   :  { %v5998_v50 = vpop.permute.xlu1 %165  ;;  %v6000_v51 = vpop.permute.xlu0 %159 }
 0x29b   :  { %465 = vrot.lane.b32.xlu0 %v5998_v50, %s5861_s30  ;;  %461 = vrot.lane.b32.xlu1 %v6000_v51, %s5861_s30  ;;  %v177_v0 = vcombine.low %v5980_v45, %v5998_v50  ;;  %v178_v1 = vcombine.high %v5980_v45, %v5998_v50 }
 0x29d   :  { %v185_v7 = vrot.slane %v177_v0, %v6029_v63  ;;  %v192_v8 = vrot.slane %v178_v1, %v6029_v63 }
 0x29e   :  { %v6006_v52 = vpop.permute.xlu1 %171  ;;  %v6012_v53 = vpop.permute.xlu0 %167 }
 0x29f   :  { %459 = vrot.lane.b32.xlu0 %v5986_v49, %s5861_s30  ;;  %469 = vrot.lane.b32.xlu1 %v6006_v52, %s5861_s30  ;;  %v193_v61 = vcombine.low %v6000_v51, %v6006_v52  ;;  %v194_v62 = vcombine.high %v6000_v51, %v6006_v52  ;;  %v245_v29 = vcombine.low %v5986_v49, %v6012_v53 }
 0x2a0   :  { %v246_v30 = vcombine.high %v5986_v49, %v6012_v53 }
 0x2a1   :  { %v201_v5 = vrot.slane %v193_v61, %v6029_v63  ;;  %v208_v6 = vrot.slane %v194_v62, %v6029_v63  ;;  %v253_v46 = vrot.slane %v245_v29, %v6029_v63 }
 0x2a2   :  { %v6014_v54 = vpop.permute.xlu1 %161  ;;  %v458_v14 = vpop.permute.xlu0 %457  ;;  %v6068_v47 = vrot.slane %v246_v30, %v6029_v63 }
 0x2a3   :  { %467 = vrot.lane.b32.xlu0 %v6012_v53, %s5861_s30  ;;  %463 = vrot.lane.b32.xlu1 %v6014_v54, %s5861_s30  ;;  %v209_v10 = vcombine.low %v185_v7, %v201_v5  ;;  %v210_v11 = vcombine.high %v185_v7, %v201_v5  ;;  %v225_v12 = vcombine.low %v192_v8, %v208_v6 }
 0x2a4   :  { %v226_v13 = vcombine.high %v192_v8, %v208_v6 }
 0x2a5   :  { %v217_v15 = vrot.slane %v209_v10, %v6040_v9  ;;  %v224_v16 = vrot.slane %v210_v11, %v6040_v9  ;;  %v233_v17 = vrot.slane %v225_v12, %v6040_v9 }
 0x2a6   :  { %v6020_v55 = vpop.permute.xlu1 %173  ;;  %v240_v19 = vrot.slane %v226_v13, %v6040_v9 }
 0x2a7   :  { %471 = vrot.lane.b32.xlu1 %v6020_v55, %s5861_s30  ;;  %v313_v22 = vcombine.low %v217_v15, %v224_v16  ;;  %v5114_v23 = vcombine.high %v217_v15, %v224_v16  ;;  %v261_v31 = vcombine.low %v6014_v54, %v6020_v55  ;;  %v262_v32 = vcombine.high %v6014_v54, %v6020_v55 }
 0x2a8   :  { %v329_v25 = vcombine.low %v233_v17, %v240_v19  ;;  %v5115_v26 = vcombine.high %v233_v17, %v240_v19 }
 0x2a9   :  { %v6055_v37 = vrot.slane %v313_v22, %v6029_v63  ;;  %v6058_v38 = vrot.slane %v5114_v23, %v6029_v63  ;;  %v269_v48 = vrot.slane %v261_v31, %v6029_v63  ;;  %v6072_v56 = vrot.slane %v262_v32, %v6029_v63 }
 0x2aa   :  { %v6061_v39 = vrot.slane %v329_v25, %v6029_v63  ;;  %v6064_v40 = vrot.slane %v5115_v26, %v6029_v63 }
 0x2ab   :  { %v345_v62 = vcombine.low %v6055_v37, %v6058_v38  ;;  %v346_v1 = vcombine.high %v6055_v37, %v6058_v38  ;;  %v277_v11 = vcombine.low %v253_v46, %v269_v48  ;;  %v278_v12 = vcombine.high %v253_v46, %v269_v48 }
 0x2ac   :  { %v361_v0 = vcombine.low %v6061_v39, %v6064_v40  ;;  %v362_v2 = vcombine.high %v6061_v39, %v6064_v40  ;;  %v293_v13 = vcombine.low %v6068_v47, %v6072_v56 }
 0x2ad   :  { %v353_v23 = vrot.slane %v345_v62, %v6040_v9  ;;  %v6097_v32 = vrot.slane %v277_v11, %v6040_v9 }
 0x2ae   :  { %v369_v25 = vrot.slane %v361_v0, %v6040_v9 }
 0x30d   :  { %v466_v20 = vpop.permute.xlu0 %465  ;;  %v462_v21 = vpop.permute.xlu1 %461 }
 0x30e   :  { %v481_v34 = vcombine.low %v458_v14, %v466_v20  ;;  %v482_v35 = vcombine.high %v458_v14, %v466_v20  ;;  %v294_v14 = vcombine.high %v6068_v47, %v6072_v56 }
 0x310   :  { %v489_v57 = vrot.slane %v481_v34, %v6029_v63  ;;  %v496_v58 = vrot.slane %v482_v35, %v6029_v63  ;;  %v6100_v34 = vrot.slane %v278_v12, %v6040_v9 }
 0x311   :  { %v460_v36 = vpop.permute.xlu0 %459  ;;  %v470_v41 = vpop.permute.xlu1 %469 }
 0x312   :  { %v497_v43 = vcombine.low %v462_v21, %v470_v41  ;;  %v498_v44 = vcombine.high %v462_v21, %v470_v41 }
 0x314   :  { %v505_v59 = vrot.slane %v497_v43, %v6029_v63  ;;  %v512_v60 = vrot.slane %v498_v44, %v6029_v63 }
 0x315   :  { %v464_v61 = vpop.permute.xlu1 %463  ;;  %v468_v10 = vpop.permute.xlu0 %467 }
 0x316   :  { %v513_v5 = vcombine.low %v489_v57, %v505_v59  ;;  %v514_v6 = vcombine.high %v489_v57, %v505_v59  ;;  %v529_v7 = vcombine.low %v496_v58, %v512_v60  ;;  %v530_v8 = vcombine.high %v496_v58, %v512_v60 }
 0x317   :  { %v549_v20 = vcombine.low %v460_v36, %v468_v10  ;;  %v550_v21 = vcombine.high %v460_v36, %v468_v10 }
 0x318   :  { %v521_v15 = vrot.slane %v513_v5, %v6040_v9  ;;  %v528_v16 = vrot.slane %v514_v6, %v6040_v9  ;;  %v537_v17 = vrot.slane %v529_v7, %v6040_v9  ;;  %v544_v19 = vrot.slane %v530_v8, %v6040_v9 }
 0x319   :  { %v472_v22 = vpop.permute.xlu1 %471  ;;  %v557_v47 = vrot.slane %v549_v20, %v6029_v63  ;;  %v564_v48 = vrot.slane %v550_v21, %v6029_v63  ;;  %v308_v20 = vrot.slane %v294_v14, %v6040_v9 }
 0x31a   :  { %v617_v26 = vcombine.low %v521_v15, %v528_v16  ;;  %v5118_v29 = vcombine.high %v521_v15, %v528_v16  ;;  %v633_v30 = vcombine.low %v537_v17, %v544_v19  ;;  %v5119_v31 = vcombine.high %v537_v17, %v544_v19 }
 0x31b   :  { %v565_v35 = vcombine.low %v464_v61, %v472_v22  ;;  %v566_v41 = vcombine.high %v464_v61, %v472_v22  ;;  %v301_v19 = vrot.slane %v293_v13, %v6040_v9 }
 0x31c   :  { %v624_v36 = vrot.slane %v617_v26, %v6029_v63  ;;  %v632_v43 = vrot.slane %v5118_v29, %v6029_v63  ;;  %v640_v44 = vrot.slane %v633_v30, %v6029_v63  ;;  %v648_v46 = vrot.slane %v5119_v31, %v6029_v63 }
 0x31d   :  { %v573_v56 = vrot.slane %v565_v35, %v6029_v63  ;;  %v580_v57 = vrot.slane %v566_v41, %v6029_v63 }
 0x31e   :  { %v649_v58 = vcombine.low %v624_v36, %v632_v43  ;;  %v665_v59 = vcombine.low %v640_v44, %v648_v46  ;;  %v650_v60 = vcombine.high %v624_v36, %v632_v43  ;;  %v666_v61 = vcombine.high %v640_v44, %v648_v46 }
 0x31f   :  { %v581_v62 = vcombine.low %v557_v47, %v573_v56  ;;  %v582_v0 = vcombine.high %v557_v47, %v573_v56  ;;  %v597_v5 = vcombine.low %v564_v48, %v580_v57  ;;  %v598_v6 = vcombine.high %v564_v48, %v580_v57 }
 0x320   :  { %v657_v7 = vrot.slane %v649_v58, %v6040_v9  ;;  %v673_v8 = vrot.slane %v665_v59, %v6040_v9  ;;  %v664_v10 = vrot.slane %v650_v60, %v6040_v9  ;;  %v680_v11 = vrot.slane %v666_v61, %v6040_v9 }
 0x321   :  { %v589_v12 = vrot.slane %v581_v62, %v6040_v9  ;;  %v596_v15 = vrot.slane %v582_v0, %v6040_v9  ;;  %v605_v16 = vrot.slane %v597_v5, %v6040_v9  ;;  %v612_v17 = vrot.slane %v598_v6, %v6040_v9 }
 0x322   :  { %v681_v21 = vcombine.low %v657_v7, %v673_v8  ;;  %v682_v22 = vcombine.high %v657_v7, %v673_v8  ;;  %v377_v36 = vcombine.low %v353_v23, %v369_v25  ;;  %v683_v43 = vcombine.low %v664_v10, %v680_v11 }
 0x323   :  { %v685_v26 = vcombine.low %v589_v12, %v596_v15  ;;  %v5120_v29 = vcombine.high %v589_v12, %v596_v15  ;;  %v701_v30 = vcombine.low %v605_v16, %v612_v17  ;;  %v5121_v31 = vcombine.high %v605_v16, %v612_v17 }
 0x324   :  { %v753_v35 = vpack.c.bf16 %v681_v21, %v681_v21  ;;  %v754_v41 = vpack.c.bf16 %v682_v22, %v682_v22  ;;  %v378_v56 = vcombine.high %v353_v23, %v369_v25  ;;  %v684_v57 = vcombine.high %v664_v10, %v680_v11 }
 0x325   :  { %v692_v44 = vrot.slane %v685_v26, %v6029_v63  ;;  %v700_v46 = vrot.slane %v5120_v29, %v6029_v63  ;;  %v708_v47 = vrot.slane %v701_v30, %v6029_v63  ;;  %v716_v13 = vrot.slane %v5121_v31, %v6029_v63 }
 0x326   :  { %v1070_v14 = vsel %vm1065_vm2, %v753_v35, 0  ;;  %v1116_v48 = vsel %vm1065_vm2, %v754_v41, 0  ;;  %v381_v58 = vcombine.low %v6097_v32, %v6100_v34  ;;  %v5116_v61 = vcombine.high %v6097_v32, %v6100_v34 }
 0x327   :  { %5364 = vmatpush3.bf16.xpose.msra.mxu1 %v1070_v14  ;;  %5370 = vmatpush3.bf16.xpose.msra.mxu0 %v1116_v48  ;;  %v717_v59 = vcombine.low %v692_v44, %v700_v46  ;;  %v733_v60 = vcombine.low %v708_v47, %v716_v13  ;;  %v397_v62 = vcombine.low %v301_v19, %v308_v20 }
 0x328   :  { %v5117_v0 = vcombine.high %v301_v19, %v308_v20  ;;  %5375 = vmatprep.subr.bf16.mxu1 %v5856_v18  ;;  %5381 = vmatprep.subr.bf16.mxu0 %v5856_v18  ;;  %v755_v5 = vpack.c.bf16 %v683_v43, %v683_v43  ;;  %v756_v6 = vpack.c.bf16 %v684_v57, %v684_v57 }
 0x329   :  { %v725_v23 = vrot.slane %v717_v59, %v6040_v9  ;;  %v741_v25 = vrot.slane %v733_v60, %v6040_v9  ;;  %v449_v7 = vpack.c.bf16 %v377_v36, %v377_v36  ;;  %v450_v8 = vpack.c.bf16 %v378_v56, %v378_v56 }
 0x32a   :  { %v360_v10 = vrot.slane %v346_v1, %v6040_v9  ;;  %v376_v32 = vrot.slane %v362_v2, %v6040_v9  ;;  %v388_v34 = vrot.slane %v381_v58, %v6029_v63  ;;  %v396_v11 = vrot.slane %v5116_v61, %v6029_v63 }
 0x32b   :  { %v404_v12 = vrot.slane %v397_v62, %v6029_v63  ;;  %v412_v15 = vrot.slane %v5117_v0, %v6029_v63  ;;  %v1162_v16 = vsel %vm1065_vm2, %v755_v5, 0  ;;  %v718_v17 = vcombine.high %v692_v44, %v700_v46 }
 0x32c   :  { %v1208_v37 = vsel %vm1065_vm2, %v756_v6, 0  ;;  %v749_v38 = vcombine.low %v725_v23, %v741_v25  ;;  %v750_v39 = vcombine.high %v725_v23, %v741_v25  ;;  %v734_v40 = vcombine.high %v708_v47, %v716_v13 }
 0x32d   :  { %v379_v1 = vcombine.low %v360_v10, %v376_v32  ;;  %v380_v2 = vcombine.high %v360_v10, %v376_v32  ;;  %v413_v19 = vcombine.low %v388_v34, %v396_v11  ;;  %v429_v20 = vcombine.low %v404_v12, %v412_v15 }
 0x32e   :  { %5366 = vmatmul.mubr.msk.bf16.vlgmr.msra.gmra.mrb[4].mxu1 %vm1065_vm2, %v449_v7  ;;  %5372 = vmatmul.mubr.msk.bf16.vlgmr.msra.gmra.mrb[0].mxu0 %vm1065_vm2, %v450_v8  ;;  %v757_v21 = vpack.c.bf16 %v749_v38, %v749_v38  ;;  %v758_v22 = vpack.c.bf16 %v750_v39, %v750_v39  ;;  %v732_v26 = vrot.slane %v718_v17, %v6040_v9  ;;  %v49_v7 = vand.u32 127, %v46_v24 }
 0x32f   :  { %5376 = vmatpush3.bf16.xpose.msra.mxu1 %v1162_v16  ;;  %5382 = vmatpush3.bf16.xpose.msra.mxu0 %v1208_v37  ;;  %v748_v29 = vrot.slane %v734_v40, %v6040_v9  ;;  %v451_v30 = vpack.c.bf16 %v379_v1, %v379_v1  ;;  %v452_v31 = vpack.c.bf16 %v380_v2, %v380_v2 }
 0x330   :  { %5377 = vmatprep.mubr.msk.bf16.mxu1 %vm5857_vm1, %v5856_v18  ;;  %5383 = vmatprep.mubr.msk.bf16.mxu0 %vm5857_vm1, %v5856_v18  ;;  %v421_v35 = vrot.slane %v413_v19, %v6040_v9  ;;  %v437_v41 = vrot.slane %v429_v20, %v6040_v9  ;;  %v1254_v36 = vsel %vm1065_vm2, %v757_v21, 0  ;;  %v1300_v43 = vsel %vm1065_vm2, %v758_v22, 0 }
 0x331   :  { %5387 = vmatprep.subr.bf16.mxu1 %v5856_v18  ;;  %5393 = vmatprep.subr.bf16.mxu0 %v5856_v18  ;;  %v751_v44 = vcombine.low %v732_v26, %v748_v29  ;;  %v752_v46 = vcombine.high %v732_v26, %v748_v29  ;;  %v414_v47 = vcombine.high %v388_v34, %v396_v11 }
 0x332   :  { %v445_v13 = vcombine.low %v421_v35, %v437_v41  ;;  %v446_v14 = vcombine.high %v421_v35, %v437_v41  ;;  %v430_v48 = vcombine.high %v404_v12, %v412_v15  ;;  %vm6190_vm3 = vcmp.le.s32.totalorder %v49_v7, %v5963_v27 }
 0x333   :  { %v759_v56 = vpack.c.bf16 %v751_v44, %v751_v44  ;;  %v760_v57 = vpack.c.bf16 %v752_v46, %v752_v46  ;;  %v428_v60 = vrot.slane %v414_v47, %v6040_v9 }
 0x334   :  { %v453_v58 = vpack.c.bf16 %v445_v13, %v445_v13  ;;  %v454_v59 = vpack.c.bf16 %v446_v14, %v446_v14  ;;  %v444_v61 = vrot.slane %v430_v48, %v6040_v9 }
 0x335   :  { %v1346_v62 = vsel %vm1065_vm2, %v759_v56, 0  ;;  %v1392_v0 = vsel %vm1065_vm2, %v760_v57, 0 }
 0x336   :  { %5378 = vmatmul.mubr.msk.bf16.vlgmr.msra.gmra.mrb[8].mxu1 %vm1065_vm2, %v451_v30  ;;  %5384 = vmatmul.mubr.msk.bf16.vlgmr.msra.gmra.mrb[4].mxu0 %vm1065_vm2, %v452_v31  ;;  %v447_v5 = vcombine.low %v428_v60, %v444_v61  ;;  %v448_v6 = vcombine.high %v428_v60, %v444_v61 }
 0x337   :  { %5388 = vmatpush3.bf16.xpose.msra.mxu1 %v1254_v36  ;;  %5394 = vmatpush3.bf16.xpose.msra.mxu0 %v1300_v43 }
 0x338   :  { %5389 = vmatprep.mubr.msk.bf16.mxu1 %vm5857_vm1, %v5856_v18  ;;  %5395 = vmatprep.mubr.msk.bf16.mxu0 %vm5857_vm1, %v5856_v18  ;;  %v455_v23 = vpack.c.bf16 %v447_v5, %v447_v5  ;;  %v456_v25 = vpack.c.bf16 %v448_v6, %v448_v6 }
 0x339   :  { %5399 = vmatprep.subr.bf16.mxu1 %v5856_v18  ;;  %5405 = vmatprep.subr.bf16.mxu0 %v5856_v18 }
 0x33e   :  { %5390 = vmatmul.mubr.msk.bf16.vlgmr.msra.gmra.mrb[12].mxu1 %vm1065_vm2, %v453_v58  ;;  %5396 = vmatmul.mubr.msk.bf16.vlgmr.msra.gmra.mrb[8].mxu0 %vm1065_vm2, %v454_v59 }
 0x33f   :  { %5400 = vmatpush3.bf16.xpose.msra.mxu1 %v1346_v62  ;;  %5406 = vmatpush3.bf16.xpose.msra.mxu0 %v1392_v0 }
 0x340   :  { %5401 = vmatprep.mubr.msk.bf16.mxu1 %vm5857_vm1, %v5856_v18  ;;  %5407 = vmatprep.mubr.msk.bf16.mxu0 %vm5857_vm1, %v5856_v18 }
 0x341   :  { %5411 = vmatprep.subr.bf16.mxu1 %v5856_v18  ;;  %5417 = vmatprep.subr.bf16.mxu0 %v5856_v18 }
 0x346   :  { %5402 = vmatmul.mubr.msk.bf16.vlgmr.msra.gmra.mrb[16].mxu1 %vm1065_vm2, %v455_v23  ;;  %5408 = vmatmul.mubr.msk.bf16.vlgmr.msra.gmra.mrb[12].mxu0 %vm1065_vm2, %v456_v25 }
 0x347   :  { %5413 = vmatprep.mubr.msk.bf16.mxu1 %vm5857_vm1, %v5856_v18  ;;  %5419 = vmatprep.mubr.msk.bf16.mxu0 %vm5857_vm1, %v5856_v18 }
 0x401   :  { %v1106_v10 = vpop.f32.mrb[4].mxu1  ;;  %v1152_v32 = vpop.f32.mrb[0].mxu0 }
 0x402   :  { %v6196_v34 = vsel %vm6190_vm3, %v1106_v10, -1e+09  ;;  %v1437_v11 = vsel %vm6190_vm3, %v1152_v32, -1e+09  ;;  %v5367_v12 = vpop.f32.mrb[5].mxu1  ;;  %v5373_v15 = vpop.f32.mrb[1].mxu0 }
 0x403   :  { %v1109_v16 = vpop.f32.mrb[6].mxu1  ;;  %v1155_v17 = vpop.f32.mrb[2].mxu0  ;;  %v1447_v24 = vsel %vm1065_vm2, %v1437_v11, -inf  ;;  %v1444_v37 = vsel %vm1065_vm2, %v6196_v34, -inf }
 0x404   :  { %1448 = vmax.xlane.f32.xlu1 %v1447_v24  ;;  %v5374_v38 = vpop.f32.mrb[3].mxu0  ;;  %1445 = vmax.xlane.f32.xlu0 %v1444_v37  ;;  %v5368_v39 = vpop.f32.mrb[7].mxu1 }
 0x409   :  { %v1198_v40 = vpop.f32.mrb[8].mxu1  ;;  %v1244_v1 = vpop.f32.mrb[4].mxu0 }
 0x40a   :  { %v1438_v2 = vsel %vm6190_vm3, %v1198_v40, -1e+09  ;;  %v5379_v19 = vpop.f32.mrb[9].mxu1  ;;  %v5385_v20 = vpop.f32.mrb[5].mxu0  ;;  %v1439_v29 = vsel %vm6190_vm3, %v1244_v1, -1e+09 }
 0x40b   :  { %v1201_v21 = vpop.f32.mrb[10].mxu1  ;;  %v1247_v22 = vpop.f32.mrb[6].mxu0  ;;  %v1450_v26 = vsel %vm1065_vm2, %v1438_v2, -inf  ;;  %v1453_v35 = vsel %vm1065_vm2, %v1439_v29, -inf }
 0x40c   :  { %v5386_v30 = vpop.f32.mrb[7].mxu0  ;;  %1451 = vmax.xlane.f32.xlu0 %v1450_v26  ;;  %v5380_v31 = vpop.f32.mrb[11].mxu1 }
 0x410   :  { %1454 = vmax.xlane.f32.xlu0 %v1453_v35 }
 0x411   :  { %v1290_v41 = vpop.f32.mrb[12].mxu1  ;;  %v1336_v36 = vpop.f32.mrb[8].mxu0 }
 0x412   :  { %v1440_v43 = vsel %vm6190_vm3, %v1290_v41, -1e+09  ;;  %v1441_v44 = vsel %vm6190_vm3, %v1336_v36, -1e+09  ;;  %v5391_v46 = vpop.f32.mrb[13].mxu1  ;;  %v5397_v47 = vpop.f32.mrb[9].mxu0 }
 0x413   :  { %v1293_v13 = vpop.f32.mrb[14].mxu1  ;;  %v1339_v14 = vpop.f32.mrb[10].mxu0  ;;  %v1459_v48 = vsel %vm1065_vm2, %v1441_v44, -inf  ;;  %v1456_v56 = vsel %vm1065_vm2, %v1440_v43, -inf }
 0x414   :  { %1460 = vmax.xlane.f32.xlu1 %v1459_v48  ;;  %v5398_v57 = vpop.f32.mrb[11].mxu0  ;;  %1457 = vmax.xlane.f32.xlu0 %v1456_v56  ;;  %v5392_v58 = vpop.f32.mrb[15].mxu1 }
 0x419   :  { %v1382_v59 = vpop.f32.mrb[16].mxu1  ;;  %v1428_v60 = vpop.f32.mrb[12].mxu0 }
 0x41a   :  { %v6217_v61 = vsel %vm6190_vm3, %v1382_v59, -1e+09  ;;  %v5403_v62 = vpop.f32.mrb[17].mxu1  ;;  %v5409_v0 = vpop.f32.mrb[13].mxu0  ;;  %v1443_v10 = vsel %vm6190_vm3, %v1428_v60, -1e+09 }
 0x41b   :  { %v1385_v5 = vpop.f32.mrb[18].mxu1  ;;  %v1431_v6 = vpop.f32.mrb[14].mxu0  ;;  %v1462_v23 = vsel %vm1065_vm2, %v6217_v61, -inf  ;;  %v1465_v32 = vsel %vm1065_vm2, %v1443_v10, -inf }
 0x41c   :  { %v5410_v25 = vpop.f32.mrb[15].mxu0  ;;  %1463 = vmax.xlane.f32.xlu0 %v1462_v23  ;;  %v5404_v7 = vpop.f32.mrb[19].mxu1 }
 0x425   :  { %765 = vrot.lane.b32.xlu1 %v6000_v51, %s5864_s11 }
 0x429   :  { %769 = vrot.lane.b32.xlu1 %v5998_v50, %s5864_s11 }
 0x432   :  { %761 = vrot.lane.b32.xlu0 %v5980_v45, %s5864_s11 }
 0x44d   :  { %1466 = vmax.xlane.f32.xlu1 %v1465_v32 }
 0x45e   :  { %773 = vrot.lane.b32.xlu1 %v6006_v52, %s5864_s11 }
 0x491   :  { %v1449_v12 = vpop.xlane.xlu1 %1448  ;;  %v1446_v15 = vpop.xlane.xlu0 %1445 }
 0x492   :  { %v1469_v16 = vsub.f32 %v1437_v11, %v1449_v12  ;;  %v1468_v51 = vsub.f32 %v6196_v34, %v1446_v15 }
 0x494   :  { %v1478_v17 = vmul.f32 1.442695, %v1469_v16  ;;  %v1476_v24 = vmul.f32 1.442695, %v1468_v51 }
 0x496   :  { %5721 = vpow2.f32 %v1478_v17 }
 0x497   :  { %5723 = vpow2.f32 %v1476_v24 }
 0x499   :  { %v1452_v50 = vpop.xlane.xlu0 %1451 }
 0x49a   :  { %v1470_v45 = vsub.f32 %v1438_v2, %v1452_v50 }
 0x49c   :  { %v1480_v37 = vmul.f32 1.442695, %v1470_v45 }
 0x49d   :  { %v1455_v38 = vpop.xlane.xlu0 %1454 }
 0x49e   :  { %5725 = vpow2.f32 %v1480_v37  ;;  %v1471_v39 = vsub.f32 %v1439_v29, %v1455_v38 }
 0x4a0   :  { %v6233_v40 = vpop.eup %5721  ;;  %v1482_v1 = vmul.f32 1.442695, %v1471_v39 }
 0x4a1   :  { %v6235_v19 = vpop.eup %5723  ;;  %v1461_v52 = vpop.xlane.xlu1 %1460  ;;  %v1495_v34 = vsel %vm1065_vm2, %v6233_v40, 0.0 }
 0x4a2   :  { %v1458_v20 = vpop.xlane.xlu0 %1457  ;;  %5727 = vpow2.f32 %v1482_v1  ;;  %v1473_v11 = vsub.f32 %v1441_v44, %v1461_v52  ;;  %1496 = vadd.xlane.f32.xlu1 %v1495_v34  ;;  %v1492_v2 = vsel %vm1065_vm2, %v6235_v19, 0.0 }
 0x4a3   :  { %v1472_v21 = vsub.f32 %v1440_v43, %v1458_v20  ;;  %1493 = vadd.xlane.f32.xlu0 %v1492_v2 }
 0x4a4   :  { %v1486_v26 = vmul.f32 1.442695, %v1473_v11 }
 0x4a5   :  { %v1484_v22 = vmul.f32 1.442695, %v1472_v21  ;;  %v766_v46 = vpop.permute.xlu1 %765 }
 0x4a7   :  { %5729 = vpow2.f32 %v1484_v22 }
 0x4a8   :  { %v6241_v29 = vpop.eup %5725  ;;  %5731 = vpow2.f32 %v1486_v26 }
 0x4a9   :  { %v1498_v30 = vsel %vm1065_vm2, %v6241_v29, 0.0  ;;  %v1464_v47 = vpop.xlane.xlu0 %1463  ;;  %v770_v14 = vpop.permute.xlu1 %769 }
 0x4aa   :  { %1499 = vadd.xlane.f32.xlu0 %v1498_v30  ;;  %v1474_v13 = vsub.f32 %v6217_v61, %v1464_v47 }
 0x4ac   :  { %v6245_v31 = vpop.eup %5727  ;;  %v1488_v48 = vmul.f32 1.442695, %v1474_v13 }
 0x4ad   :  { %v1501_v35 = vsel %vm1065_vm2, %v6245_v31, 0.0  ;;  %v762_v56 = vpop.permute.xlu0 %761 }
 0x4ae   :  { %1502 = vadd.xlane.f32.xlu1 %v1501_v35  ;;  %5733 = vpow2.f32 %v1488_v48  ;;  %v786_v59 = vcombine.high %v762_v56, %v770_v14 }
 0x4b1   :  { %v6249_v41 = vpop.eup %5729 }
 0x4b2   :  { %v1504_v36 = vsel %vm1065_vm2, %v6249_v41, 0.0  ;;  %v6253_v43 = vpop.eup %5731 }
 0x4b3   :  { %1505 = vadd.xlane.f32.xlu0 %v1504_v36  ;;  %v1507_v44 = vsel %vm1065_vm2, %v6253_v43, 0.0 }
 0x4b7   :  { %1508 = vadd.xlane.f32.xlu0 %v1507_v44 }
 0x4b8   :  { %v6274_v16 = vpop.eup %5733 }
 0x4b9   :  { %v1510_v20 = vsel %vm1065_vm2, %v6274_v16, 0.0 }
 0x4bf   :  { %767 = vrot.lane.b32.xlu1 %v6014_v54, %s5864_s11  ;;  %v785_v54 = vcombine.low %v762_v56, %v770_v14 }
 0x4c1   :  { %v793_v0 = vrot.slane %v785_v54, %v6029_v63 }
 0x4c3   :  { %771 = vrot.lane.b32.xlu1 %v6012_v53, %s5864_s11 }
 0x4c7   :  { %775 = vrot.lane.b32.xlu1 %v6020_v55, %s5864_s11 }
 0x4cd   :  { %763 = vrot.lane.b32.xlu0 %v5986_v49, %s5864_s11  ;;  %v800_v49 = vrot.slane %v786_v59, %v6029_v63 }
 0x4da   :  { %v1467_v57 = vpop.xlane.xlu1 %1466 }
 0x4db   :  { %v1475_v58 = vsub.f32 %v1443_v10, %v1467_v57 }
 0x4dd   :  { %v1490_v60 = vmul.f32 1.442695, %v1475_v58 }
 0x4de   :  { %v774_v53 = vpop.permute.xlu1 %773 }
 0x4df   :  { %5735 = vpow2.f32 %v1490_v60  ;;  %v801_v62 = vcombine.low %v766_v46, %v774_v53  ;;  %v802_v55 = vcombine.high %v766_v46, %v774_v53 }
 0x4e1   :  { %v809_v5 = vrot.slane %v801_v62, %v6029_v63  ;;  %v816_v61 = vrot.slane %v802_v55, %v6029_v63 }
 0x4e3   :  { %v817_v6 = vcombine.low %v793_v0, %v809_v5  ;;  %v818_v23 = vcombine.high %v793_v0, %v809_v5  ;;  %v833_v25 = vcombine.low %v800_v49, %v816_v61  ;;  %v834_v7 = vcombine.high %v800_v49, %v816_v61 }
 0x4e5   :  { %v825_v10 = vrot.slane %v817_v6, %v6040_v9  ;;  %v832_v32 = vrot.slane %v818_v23, %v6040_v9  ;;  %v841_v12 = vrot.slane %v833_v25, %v6040_v9  ;;  %v848_v15 = vrot.slane %v834_v7, %v6040_v9 }
 0x4e7   :  { %v921_v51 = vcombine.low %v825_v10, %v832_v32  ;;  %v5122_v17 = vcombine.high %v825_v10, %v832_v32  ;;  %v937_v24 = vcombine.low %v841_v12, %v848_v15  ;;  %v5123_v50 = vcombine.high %v841_v12, %v848_v15 }
 0x4e9   :  { %v6276_v45 = vpop.eup %5735  ;;  %v928_v37 = vrot.slane %v921_v51, %v6029_v63  ;;  %v936_v38 = vrot.slane %v5122_v17, %v6029_v63  ;;  %v944_v39 = vrot.slane %v937_v24, %v6029_v63  ;;  %v952_v1 = vrot.slane %v5123_v50, %v6029_v63 }
 0x4ea   :  { %v1513_v52 = vsel %vm1065_vm2, %v6276_v45, 0.0 }
 0x4eb   :  { %1514 = vadd.xlane.f32.xlu1 %v1513_v52  ;;  %v953_v34 = vcombine.low %v928_v37, %v936_v38  ;;  %v969_v11 = vcombine.low %v944_v39, %v952_v1  ;;  %v954_v21 = vcombine.high %v928_v37, %v936_v38  ;;  %v970_v2 = vcombine.high %v944_v39, %v952_v1 }
 0x4ec   :  { %1511 = vadd.xlane.f32.xlu0 %v1510_v20 }
 0x4ed   :  { %v961_v22 = vrot.slane %v953_v34, %v6040_v9  ;;  %v977_v26 = vrot.slane %v969_v11, %v6040_v9  ;;  %v968_v30 = vrot.slane %v954_v21, %v6040_v9  ;;  %v984_v35 = vrot.slane %v970_v2, %v6040_v9 }
 0x4ef   :  { %v985_v36 = vcombine.low %v961_v22, %v977_v26  ;;  %v986_v44 = vcombine.high %v961_v22, %v977_v26  ;;  %v987_v46 = vcombine.low %v968_v30, %v984_v35  ;;  %v988_v47 = vcombine.high %v968_v30, %v984_v35 }
 0x4f1   :  { %v1057_v13 = vpack.c.bf16 %v985_v36, %v985_v36  ;;  %v1058_v14 = vpack.c.bf16 %v986_v44, %v986_v44  ;;  %v1060_v55 = vpack.c.bf16 %v988_v47, %v988_v47  ;;  %v1059_v49 = vpack.c.bf16 %v987_v46, %v987_v46 }
 0x4f3   :  { %v1545_v48 = vsel %vm1543_vm4, %v1057_v13, 0  ;;  %v1591_v56 = vsel %vm1543_vm4, %v1058_v14, 0  ;;  %v1683_v23 = vsel %vm1543_vm4, %v1060_v55, 0  ;;  %v1637_v25 = vsel %vm1543_vm4, %v1059_v49, 0 }
 0x4f4   :  { %5412 = vmatpush3.bf16.msra.mxu1 %v1545_v48  ;;  %5418 = vmatpush3.bf16.msra.mxu0 %v1591_v56 }
 0x4f5   :  { %5423 = vmatprep.subr.bf16.mxu1 %v5856_v18  ;;  %5429 = vmatprep.subr.bf16.mxu0 %v5856_v18 }
 0x52f   :  { %v1497_v57 = vpop.xlane.xlu1 %1496 }
 0x530   :  { %5737 = vrcp.f32 %v1497_v57  ;;  %v1494_v58 = vpop.xlane.xlu0 %1493 }
 0x531   :  { %5739 = vrcp.f32 %v1494_v58 }
 0x537   :  { %v1500_v54 = vpop.xlane.xlu0 %1499 }
 0x538   :  { %5741 = vrcp.f32 %v1500_v54 }
 0x53a   :  { %v5738_v59 = vpop.eup %5737 }
 0x53b   :  { %v5740_v60 = vpop.eup %5739  ;;  %v1525_v53 = vmul.f32 %v5738_v59, %v6233_v40  ;;  %v1503_v62 = vpop.xlane.xlu1 %1502 }
 0x53c   :  { %v1524_v0 = vmul.f32 %v5740_v60, %v6235_v19  ;;  %5743 = vrcp.f32 %v1503_v62 }
 0x53d   :  { %v1533_v5 = vpack.c.bf16 %v1525_v53, %v1525_v53 }
 0x53e   :  { %v1532_v61 = vpack.c.bf16 %v1524_v0, %v1524_v0 }
 0x53f   :  { %v768_v6 = vpop.permute.xlu1 %767  ;;  %5420 = vmatmul.mubr.msk.bf16.vlgmr.msra.gmra.mrb[16].mxu0 %vm1065_vm2, %v1533_v5 }
 0x540   :  { %5414 = vmatmul.mubr.msk.bf16.vlgmr.msra.gmra.mrb[20].mxu1 %vm1065_vm2, %v1532_v61  ;;  %5430 = vmatpush3.bf16.msra.mxu0 %v1683_v23  ;;  %v1506_v7 = vpop.xlane.xlu0 %1505 }
 0x541   :  { %5424 = vmatpush3.bf16.msra.mxu1 %v1637_v25  ;;  %5425 = vmatprep.mubr.msk.bf16.mxu1 %vm5857_vm1, %v5856_v18  ;;  %5745 = vrcp.f32 %v1506_v7 }
 0x542   :  { %v5742_v40 = vpop.eup %5741  ;;  %5431 = vmatprep.mubr.msk.bf16.mxu0 %vm5857_vm1, %v5856_v18  ;;  %5435 = vmatprep.subr.bf16.mxu1 %v5856_v18 }
 0x543   :  { %v1526_v19 = vmul.f32 %v5742_v40, %v6241_v29  ;;  %v772_v10 = vpop.permute.xlu1 %771  ;;  %5441 = vmatprep.subr.bf16.mxu0 %v5856_v18 }
 0x544   :  { %v1509_v32 = vpop.xlane.xlu0 %1508 }
 0x545   :  { %v1534_v12 = vpack.c.bf16 %v1526_v19, %v1526_v19  ;;  %5747 = vrcp.f32 %v1509_v32 }
 0x546   :  { %v5744_v15 = vpop.eup %5743 }
 0x547   :  { %v1527_v51 = vmul.f32 %v5744_v15, %v6245_v31  ;;  %v776_v17 = vpop.permute.xlu1 %775 }
 0x548   :  { %v869_v24 = vcombine.low %v768_v6, %v776_v17  ;;  %v870_v50 = vcombine.high %v768_v6, %v776_v17  ;;  %5426 = vmatmul.mubr.msk.bf16.vlgmr.msra.gmra.mrb[24].mxu1 %vm1065_vm2, %v1534_v12  ;;  %v764_v37 = vpop.permute.xlu0 %763 }
 0x549   :  { %v853_v38 = vcombine.low %v764_v37, %v772_v10  ;;  %v854_v39 = vcombine.high %v764_v37, %v772_v10  ;;  %v1535_v1 = vpack.c.bf16 %v1527_v51, %v1527_v51  ;;  %5437 = vmatprep.mubr.msk.bf16.mxu1 %vm5857_vm1, %v5856_v18 }
 0x54a   :  { %v877_v29 = vrot.slane %v869_v24, %v6029_v63  ;;  %v884_v52 = vrot.slane %v870_v50, %v6029_v63 }
 0x54b   :  { %v861_v20 = vrot.slane %v853_v38, %v6029_v63  ;;  %v868_v31 = vrot.slane %v854_v39, %v6029_v63  ;;  %5432 = vmatmul.mubr.msk.bf16.vlgmr.msra.gmra.mrb[20].mxu0 %vm1065_vm2, %v1535_v1  ;;  %v5746_v60 = vpop.eup %5745 }
 0x54c   :  { %5443 = vmatprep.mubr.msk.bf16.mxu0 %vm5857_vm1, %v5856_v18  ;;  %v1528_v25 = vmul.f32 %v5746_v60, %v6249_v41 }
 0x54d   :  { %v885_v34 = vcombine.low %v861_v20, %v877_v29  ;;  %v886_v11 = vcombine.high %v861_v20, %v877_v29  ;;  %v901_v21 = vcombine.low %v868_v31, %v884_v52  ;;  %v902_v2 = vcombine.high %v868_v31, %v884_v52 }
 0x54e   :  { %v1536_v51 = vpack.c.bf16 %v1528_v25, %v1528_v25 }
 0x54f   :  { %v893_v22 = vrot.slane %v885_v34, %v6040_v9  ;;  %v900_v26 = vrot.slane %v886_v11, %v6040_v9  ;;  %v909_v30 = vrot.slane %v901_v21, %v6040_v9  ;;  %v916_v35 = vrot.slane %v902_v2, %v6040_v9  ;;  %v5748_v49 = vpop.eup %5747 }
 0x550   :  { %v1529_v7 = vmul.f32 %v5748_v49, %v6253_v43 }
 0x551   :  { %v989_v36 = vcombine.low %v893_v22, %v900_v26  ;;  %v5124_v44 = vcombine.high %v893_v22, %v900_v26  ;;  %v1005_v46 = vcombine.low %v909_v30, %v916_v35  ;;  %v5125_v47 = vcombine.high %v909_v30, %v916_v35 }
 0x552   :  { %v1537_v17 = vpack.c.bf16 %v1529_v7, %v1529_v7 }
 0x553   :  { %v996_v13 = vrot.slane %v989_v36, %v6029_v63  ;;  %v1004_v14 = vrot.slane %v5124_v44, %v6029_v63  ;;  %v1012_v48 = vrot.slane %v1005_v46, %v6029_v63  ;;  %v1020_v56 = vrot.slane %v5125_v47, %v6029_v63 }
 0x555   :  { %v1021_v57 = vcombine.low %v996_v13, %v1004_v14  ;;  %v1037_v58 = vcombine.low %v1012_v48, %v1020_v56  ;;  %v1022_v54 = vcombine.high %v996_v13, %v1004_v14  ;;  %v1038_v59 = vcombine.high %v1012_v48, %v1020_v56 }
 0x557   :  { %v1029_v53 = vrot.slane %v1021_v57, %v6040_v9  ;;  %v1045_v62 = vrot.slane %v1037_v58, %v6040_v9  ;;  %v1036_v55 = vrot.slane %v1022_v54, %v6040_v9  ;;  %v1052_v0 = vrot.slane %v1038_v59, %v6040_v9 }
 0x559   :  { %v1053_v5 = vcombine.low %v1029_v53, %v1045_v62  ;;  %v1054_v61 = vcombine.high %v1029_v53, %v1045_v62  ;;  %v1055_v6 = vcombine.low %v1036_v55, %v1052_v0  ;;  %v1056_v23 = vcombine.high %v1036_v55, %v1052_v0 }
 0x55b   :  { %v1061_v40 = vpack.c.bf16 %v1053_v5, %v1053_v5  ;;  %v1062_v19 = vpack.c.bf16 %v1054_v61, %v1054_v61  ;;  %v1063_v12 = vpack.c.bf16 %v1055_v6, %v1055_v6  ;;  %v1064_v15 = vpack.c.bf16 %v1056_v23, %v1056_v23 }
 0x55d   :  { %v1729_v10 = vsel %vm1543_vm4, %v1061_v40, 0  ;;  %v1775_v32 = vsel %vm1543_vm4, %v1062_v19, 0  ;;  %v1821_v41 = vsel %vm1543_vm4, %v1063_v12, 0  ;;  %v1867_v43 = vsel %vm1543_vm4, %v1064_v15, 0 }
 0x55e   :  { %5436 = vmatpush3.bf16.msra.mxu1 %v1729_v10  ;;  %5442 = vmatpush3.bf16.msra.mxu0 %v1775_v32 }
 0x55f   :  { %5447 = vmatprep.subr.bf16.mxu1 %v5856_v18  ;;  %5453 = vmatprep.subr.bf16.mxu0 %v5856_v18 }
 0x561   :  { %5438 = vmatmul.mubr.msk.bf16.vlgmr.msra.gmra.mrb[28].mxu1 %vm1065_vm2, %v1536_v51  ;;  %5444 = vmatmul.mubr.msk.bf16.vlgmr.msra.gmra.mrb[24].mxu0 %vm1065_vm2, %v1537_v17 }
 0x562   :  { %5448 = vmatpush3.bf16.msra.mxu1 %v1821_v41  ;;  %5454 = vmatpush3.bf16.msra.mxu0 %v1867_v43 }
 0x563   :  { %5449 = vmatprep.mubr.msk.bf16.mxu1 %vm5857_vm1, %v5856_v18  ;;  %5455 = vmatprep.mubr.msk.bf16.mxu0 %vm5857_vm1, %v5856_v18 }
 0x564   :  { %5459 = vmatprep.subr.bf16.mxu1 %v5856_v18  ;;  %5467 = vmatprep.subr.bf16.mxu0 %v5856_v18 }
 0x578   :  { %v1515_v24 = vpop.xlane.xlu1 %1514 }
 0x579   :  { %5749 = vrcp.f32 %v1515_v24  ;;  %v1512_v50 = vpop.xlane.xlu0 %1511 }
 0x57a   :  { %5751 = vrcp.f32 %v1512_v50 }
 0x583   :  { %v5750_v37 = vpop.eup %5749 }
 0x584   :  { %v5752_v38 = vpop.eup %5751  ;;  %v1531_v39 = vmul.f32 %v5750_v37, %v6276_v45 }
 0x585   :  { %v1530_v1 = vmul.f32 %v5752_v38, %v6274_v16 }
 0x586   :  { %v1539_v29 = vpack.c.bf16 %v1531_v39, %v1531_v39 }
 0x587   :  { %v1538_v52 = vpack.c.bf16 %v1530_v1, %v1530_v1 }
 0x588   :  { %5456 = vmatmul.mubr.msk.bf16.vlgmr.msra.gmra.mrb[28].mxu0 %vm1065_vm2, %v1539_v29 }
 0x589   :  { %5450 = vmatmul.mubr.msk.bf16.vlgmr.msra.gmra.mrb[32].mxu1 %vm1065_vm2, %v1538_v52  ;;  %5471 = vmatprep.mubr.msk.bf16.mxu0 %vm5857_vm1, %v5856_v18 }
 0x58a   :  { %5463 = vmatprep.mubr.msk.bf16.mxu1 %vm5857_vm1, %v5856_v18 }
 0x612   :  { %v1627_v20 = vpop.f32.mrb[16].mxu0 }
 0x613   :  { %v1581_v31 = vpop.f32.mrb[20].mxu1  ;;  %v5421_v34 = vpop.f32.mrb[17].mxu0 }
 0x614   :  { %v5415_v11 = vpop.f32.mrb[21].mxu1  ;;  %v1630_v21 = vpop.f32.mrb[18].mxu0 }
 0x615   :  { %v1584_v45 = vpop.f32.mrb[22].mxu1  ;;  %v5422_v2 = vpop.f32.mrb[19].mxu0 }
 0x616   :  { %v5416_v16 = vpop.f32.mrb[23].mxu1 }
 0x61b   :  { %v1673_v22 = vpop.f32.mrb[24].mxu1 }
 0x61c   :  { %v1909_v26 = vcombine.low %v1581_v31, %v1673_v22  ;;  %v1910_v30 = vcombine.high %v1581_v31, %v1673_v22  ;;  %v5427_v35 = vpop.f32.mrb[25].mxu1 }
 0x61d   :  { %v1676_v36 = vpop.f32.mrb[26].mxu1 }
 0x61e   :  { %v5428_v44 = vpop.f32.mrb[27].mxu1  ;;  %v1719_v46 = vpop.f32.mrb[20].mxu0  ;;  %v1917_v56 = vrot.slane %v1909_v26, %v6029_v63  ;;  %v1924_v57 = vrot.slane %v1910_v30, %v6029_v63 }
 0x61f   :  { %v1925_v47 = vcombine.low %v1627_v20, %v1719_v46  ;;  %v1926_v13 = vcombine.high %v1627_v20, %v1719_v46  ;;  %v5433_v14 = vpop.f32.mrb[21].mxu0 }
 0x620   :  { %v1722_v48 = vpop.f32.mrb[22].mxu0 }
 0x621   :  { %v1933_v58 = vrot.slane %v1925_v47, %v6029_v63  ;;  %v1940_v54 = vrot.slane %v1926_v13, %v6029_v63  ;;  %v5434_v59 = vpop.f32.mrb[23].mxu0 }
 0x623   :  { %v1941_v60 = vcombine.low %v1917_v56, %v1933_v58  ;;  %v1942_v53 = vcombine.high %v1917_v56, %v1933_v58  ;;  %v1957_v62 = vcombine.low %v1924_v57, %v1940_v54  ;;  %v1958_v55 = vcombine.high %v1924_v57, %v1940_v54 }
 0x625   :  { %v1949_v0 = vrot.slane %v1941_v60, %v6040_v9  ;;  %v1956_v49 = vrot.slane %v1942_v53, %v6040_v9  ;;  %v1965_v5 = vrot.slane %v1957_v62, %v6040_v9  ;;  %v1972_v61 = vrot.slane %v1958_v55, %v6040_v9 }
 0x627   :  { %v2045_v6 = vcombine.low %v1949_v0, %v1956_v49  ;;  %v5142_v23 = vcombine.high %v1949_v0, %v1956_v49  ;;  %v2061_v25 = vcombine.low %v1965_v5, %v1972_v61  ;;  %v5143_v7 = vcombine.high %v1965_v5, %v1972_v61 }
 0x629   :  { %v2052_v40 = vrot.slane %v2045_v6, %v6029_v63  ;;  %v2060_v19 = vrot.slane %v5142_v23, %v6029_v63  ;;  %v2068_v10 = vrot.slane %v2061_v25, %v6029_v63  ;;  %v2076_v32 = vrot.slane %v5143_v7, %v6029_v63  ;;  %v5689_v25 = vld [vmem:[%s7095_s5] sm:$0xff]  }
 0x62a   :  { %5460 = vmatpush3.bf16.msra.mxu1 %v5689_v25 }
 0x62b   :  { %v2078_v12 = vcombine.high %v2052_v40, %v2060_v19  ;;  %v2094_v15 = vcombine.high %v2068_v10, %v2076_v32  ;;  %v2077_v51 = vcombine.low %v2052_v40, %v2060_v19  ;;  %v2093_v17 = vcombine.low %v2068_v10, %v2076_v32  ;;  %5461 = vmatprep.subr.bf16.mxu1 %v5856_v18 }
 0x62d   :  { %v6367_v41 = vrot.slane %v2078_v12, %v6040_v9  ;;  %v6370_v43 = vrot.slane %v2094_v15, %v6040_v9  ;;  %v6373_v24 = vrot.slane %v2077_v51, %v6040_v9  ;;  %v6376_v50 = vrot.slane %v2093_v17, %v6040_v9  ;;  %v5690_v17 = vld [vmem:[%s7095_s5 + $0x8] sm:$0xff]  }
 0x62e   :  { %5462 = vmatpush3.bf16.msra.mxu1 %v5690_v17 }
 0x62f   :  { %v2111_v37 = vcombine.low %v6367_v41, %v6370_v43  ;;  %v2109_v38 = vcombine.low %v6373_v24, %v6376_v50  ;;  %v2110_v39 = vcombine.high %v6373_v24, %v6376_v50  ;;  %v2112_v1 = vcombine.high %v6367_v41, %v6370_v43  ;;  %5475 = vmatprep.subr.bf16.mxu1 %v5856_v18  ;;  %v6429_v50 = vld [vmem:[%s7094_s4] sm:$0xff] }
 0x630   :  { %v2220_v24 = vsub.s32 5, %v5963_v27 }
 0x634   :  { %v1765_v29 = vpop.f32.mrb[28].mxu1  ;;  %v1811_v52 = vpop.f32.mrb[24].mxu0 }
 0x635   :  { %v5439_v20 = vpop.f32.mrb[29].mxu1  ;;  %v5445_v31 = vpop.f32.mrb[25].mxu0 }
 0x636   :  { %v1768_v34 = vpop.f32.mrb[30].mxu1  ;;  %v1814_v11 = vpop.f32.mrb[26].mxu0 }
 0x637   :  { %v5440_v21 = vpop.f32.mrb[31].mxu1  ;;  %v5446_v45 = vpop.f32.mrb[27].mxu0 }
 0x65b   :  { %v1903_v2 = vpop.f32.mrb[28].mxu0 }
 0x65c   :  { %v1857_v16 = vpop.f32.mrb[32].mxu1  ;;  %v1993_v22 = vcombine.low %v1811_v52, %v1903_v2  ;;  %v1994_v26 = vcombine.high %v1811_v52, %v1903_v2  ;;  %v5457_v30 = vpop.f32.mrb[29].mxu0 }
 0x65d   :  { %v1977_v35 = vcombine.low %v1765_v29, %v1857_v16  ;;  %v1978_v36 = vcombine.high %v1765_v29, %v1857_v16  ;;  %v5451_v44 = vpop.f32.mrb[33].mxu1  ;;  %v1906_v46 = vpop.f32.mrb[30].mxu0 }
 0x65e   :  { %v2001_v47 = vrot.slane %v1993_v22, %v6029_v63  ;;  %v2008_v13 = vrot.slane %v1994_v26, %v6029_v63  ;;  %v1860_v14 = vpop.f32.mrb[34].mxu1  ;;  %v5458_v48 = vpop.f32.mrb[31].mxu0 }
 0x65f   :  { %v1985_v56 = vrot.slane %v1977_v35, %v6029_v63  ;;  %v1992_v57 = vrot.slane %v1978_v36, %v6029_v63  ;;  %v5452_v58 = vpop.f32.mrb[35].mxu1 }
 0x661   :  { %v2009_v54 = vcombine.low %v1985_v56, %v2001_v47  ;;  %v2010_v59 = vcombine.high %v1985_v56, %v2001_v47  ;;  %v2025_v60 = vcombine.low %v1992_v57, %v2008_v13  ;;  %v2026_v53 = vcombine.high %v1992_v57, %v2008_v13 }
 0x663   :  { %v2017_v62 = vrot.slane %v2009_v54, %v6040_v9  ;;  %v2024_v55 = vrot.slane %v2010_v59, %v6040_v9  ;;  %v2033_v0 = vrot.slane %v2025_v60, %v6040_v9  ;;  %v2040_v49 = vrot.slane %v2026_v53, %v6040_v9 }
 0x665   :  { %v2113_v5 = vcombine.low %v2017_v62, %v2024_v55  ;;  %v5144_v61 = vcombine.high %v2017_v62, %v2024_v55  ;;  %v2129_v6 = vcombine.low %v2033_v0, %v2040_v49  ;;  %v5145_v23 = vcombine.high %v2033_v0, %v2040_v49 }
 0x667   :  { %v2120_v7 = vrot.slane %v2113_v5, %v6029_v63  ;;  %v2128_v40 = vrot.slane %v5144_v61, %v6029_v63  ;;  %v2136_v19 = vrot.slane %v2129_v6, %v6029_v63  ;;  %v2144_v10 = vrot.slane %v5145_v23, %v6029_v63 }
 0x669   :  { %v2146_v32 = vcombine.high %v2120_v7, %v2128_v40  ;;  %v2162_v12 = vcombine.high %v2136_v19, %v2144_v10  ;;  %v2145_v15 = vcombine.low %v2120_v7, %v2128_v40  ;;  %v2161_v51 = vcombine.low %v2136_v19, %v2144_v10  ;;  %v5691_v10 = vld [vmem:[%s7096_s6] sm:$0xff]  }
 0x66a   :  { %5468 = vmatpush3.bf16.msra.mxu0 %v5691_v10 }
 0x66b   :  { %v2160_v41 = vrot.slane %v2146_v32, %v6040_v9  ;;  %v2176_v43 = vrot.slane %v2162_v12, %v6040_v9  ;;  %v2153_v29 = vrot.slane %v2145_v15, %v6040_v9  ;;  %v2169_v52 = vrot.slane %v2161_v51, %v6040_v9  ;;  %v5692_v32 = vld [vmem:[%s7096_s6 + $0x8] sm:$0xff]   ;;  %5469 = vmatprep.subr.bf16.mxu0 %v5856_v18 }
 0x66d   :  { %v2179_v20 = vcombine.low %v2160_v41, %v2176_v43  ;;  %v2178_v31 = vcombine.high %v2153_v29, %v2169_v52  ;;  %v2177_v34 = vcombine.low %v2153_v29, %v2169_v52  ;;  %v2180_v11 = vcombine.high %v2160_v41, %v2176_v43 }
 0x66e   :  { %5470 = vmatpush3.bf16.msra.mxu0 %v5692_v32  ;;  %v2308_v29 = vsub.s32 2, %v5963_v27 }
 0x66f   :  { %v5662_v21 = vpack.i.bf16 %v2179_v20, %v2111_v37  ;;  %v5657_v45 = vpack.i.bf16 %v2178_v31, %v2110_v39  ;;  %v5667_v2 = vpack.i.bf16 %v2180_v11, %v2112_v1  ;;  %5495 = vmatprep.subr.bf16.mxu0 %v5856_v18 }
 0x670   :  { %v2309_v20 = vrot.slane %v6429_v50, %v2308_v29 }
 0x671   :  { %5663 = vrot.lane.b32.xlu1 %v5662_v21, %s5865_s16  ;;  %5658 = vrot.lane.b32.xlu0 %v5657_v45, %s5866_s17 }
 0x675   :  { %5668 = vrot.lane.b32.xlu0 %v5667_v2, %s5867_s18 }
 0x6e3   :  { %v5664_v16 = vpop.permute.xlu1 %5663  ;;  %v5659_v22 = vpop.permute.xlu0 %5658 }
 0x6e4   :  { %v5661_v26 = vunpack.i.h.bf16 %v5659_v22  ;;  %v5660_v30 = vunpack.i.l.bf16 %v5659_v22  ;;  %v5666_v35 = vunpack.i.h.bf16 %v5664_v16  ;;  %v5665_v36 = vunpack.i.l.bf16 %v5664_v16 }
 0x6e6   :  { %v2205_v37 = vsel %vm1065_vm2, %v2109_v38, %v5660_v30  ;;  %v2206_v39 = vsel %vm1065_vm2, %v2177_v34, %v5661_v26  ;;  %v2221_v38 = vrot.slane %v6429_v50, %v2220_v24  ;;  %v2314_v34 = vsub.s32 3, %v5963_v27 }
 0x6e7   :  { %v5669_v1 = vpop.permute.xlu0 %5668  ;;  %v2208_v47 = vsel %vm2207_vm5, %v2205_v37, %v5665_v36  ;;  %v2209_v13 = vsel %vm2207_vm5, %v2206_v39, %v5666_v35  ;;  %v5693_v35 = vld [vmem:[%s7097_s7] sm:$0xff]   ;;  %v5694_v36 = vld [vmem:[%s7097_s7 + $0x8] sm:$0xff]   ;;  %v5695_v37 = vld [vmem:[%s7097_s7 + $0x10] sm:$0xff]  }
 0x6e8   :  { %v5671_v44 = vunpack.i.h.bf16 %v5669_v1  ;;  %v5670_v46 = vunpack.i.l.bf16 %v5669_v1  ;;  %v2315_v2 = vrot.slane %v6429_v50, %v2314_v34  ;;  %v5696_v39 = vld [vmem:[%s7097_s7 + $0x18] sm:$0xff]   ;;  %v5697_v1 = vld [vmem:[%s7097_s7 + $0x20] sm:$0xff]  }
 0x6ea   :  { %v2211_v14 = vsel %vm2210_vm6, %v2208_v47, %v5670_v46  ;;  %v2212_v48 = vsel %vm2210_vm6, %v2209_v13, %v5671_v44  ;;  %v5698_v44 = vld [vmem:[%s7097_s7 + $0x28] sm:$0xff]   ;;  %v5699_v46 = vld [vmem:[%s7097_s7 + $0x30] sm:$0xff]   ;;  %v5700_v47 = vld [vmem:[%s7097_s7 + $0x38] sm:$0xff]   ;;  %v2325_v13 = vsub.s32 6, %v5963_v27 }
 0x6eb   :  { %v2213_v56 = vpack.c.bf16 %v2212_v48, %v2211_v14 }
 0x6ec   :  { %v2326_v14 = vrot.slane %v6429_v50, %v2325_v13 }
 0x6ed   :  { %5464 = vmatmul.mubr.msk.bf16.vlgmr.msra.gmra.mrb[36].mxu1 %vm52_vm0, %v2213_v56 }
 0x6ee   :  { %5491 = vmatprep.mubr.msk.bf16.mxu1 %vm5857_vm1, %v5856_v18  ;;  %5476 = vmatpush3.bf16.msra.mxu1 %v5693_v35 }
 0x6ef   :  { %5477 = vmatprep.subr.bf16.mxu1 %v5856_v18 }
 0x6f2   :  { %5478 = vmatpush3.bf16.msra.mxu1 %v5694_v36 }
 0x6f3   :  { %5479 = vmatprep.subr.bf16.mxu1 %v5856_v18 }
 0x6f6   :  { %5480 = vmatpush3.bf16.msra.mxu1 %v5695_v37 }
 0x6f7   :  { %5481 = vmatprep.subr.bf16.mxu1 %v5856_v18 }
 0x6fa   :  { %5482 = vmatpush3.bf16.msra.mxu1 %v5696_v39 }
 0x6fb   :  { %5483 = vmatprep.subr.bf16.mxu1 %v5856_v18 }
 0x6fe   :  { %5484 = vmatpush3.bf16.msra.mxu1 %v5697_v1 }
 0x6ff   :  { %5485 = vmatprep.subr.bf16.mxu1 %v5856_v18 }
 0x702   :  { %5486 = vmatpush3.bf16.msra.mxu1 %v5698_v44 }
 0x703   :  { %5487 = vmatprep.subr.bf16.mxu1 %v5856_v18 }
 0x706   :  { %5488 = vmatpush3.bf16.msra.mxu1 %v5699_v46  ;;  %v5162_v46 = vld [vmem:[%s7094_s4 + $0x8] sm:$0xff] }
 0x707   :  { %5489 = vmatprep.subr.bf16.mxu1 %v5856_v18 }
 0x70a   :  { %5490 = vmatpush3.bf16.msra.mxu1 %v5700_v47  ;;  %v2542_v47 = vrot.slane %v5162_v46, %v82_v28  ;;  %v2560_v28 = vrot.slane %v5162_v46, %v99_v42 }
 0x70b   :  { %5521 = vmatprep.subr.bf16.mxu1 %v5856_v18 }
 0x7c0   :  { %v2271_v57 = vpop.f32.mrb[36].mxu1 }
 0x7c1   :  { %v2272_v58 = vadd.f32 %v2271_v57, %v2221_v38  ;;  %v5465_v54 = vpop.f32.mrb[37].mxu1 }
 0x7c2   :  { %v2274_v59 = vpop.f32.mrb[38].mxu1 }
 0x7c3   :  { %v6435_v60 = vadd.f32 %v2272_v58, %v5936_v3  ;;  %v2275_v53 = vadd.f32 %v2274_v59, %v2221_v38  ;;  %v5466_v62 = vpop.f32.mrb[39].mxu1 }
 0x7c5   :  { %v6438_v55 = vadd.f32 %v2275_v53, %v5938_v4  ;;  %v2280_v0 = vsel %vm52_vm0, %v6435_v60, 0.0 }
 0x7c6   :  { %2281 = vadd.xlane.f32.xlu1 %v2280_v0 }
 0x7c7   :  { %v2283_v49 = vsel %vm52_vm0, %v6438_v55, 0.0 }
 0x7c8   :  { %2284 = vadd.xlane.f32.xlu0 %v2283_v49 }
 0x853   :  { %v2282_v5 = vpop.xlane.xlu1 %2281 }
 0x854   :  { %v2286_v61 = vmul.f32 0.03125, %v2282_v5 }
 0x855   :  { %v2285_v6 = vpop.xlane.xlu0 %2284 }
 0x856   :  { %v2288_v23 = vsub.f32 %v6435_v60, %v2286_v61  ;;  %v2287_v3 = vmul.f32 0.03125, %v2285_v6 }
 0x858   :  { %v2289_v25 = vsub.f32 %v6438_v55, %v2287_v3  ;;  %v2290_v7 = vmul.f32 %v2288_v23, %v2288_v23 }
 0x85a   :  { %v2292_v4 = vsel %vm52_vm0, %v2290_v7, 0.0  ;;  %v2291_v40 = vmul.f32 %v2289_v25, %v2289_v25 }
 0x85b   :  { %2293 = vadd.xlane.f32.xlu0 %v2292_v4 }
 0x85c   :  { %v2295_v19 = vsel %vm52_vm0, %v2291_v40, 0.0  ;;  %v2418_v40 = vsub.s32 7, %v5963_v27 }
 0x85f   :  { %2296 = vadd.xlane.f32.xlu0 %v2295_v19  ;;  %v2419_v19 = vrot.slane %v6429_v50, %v2418_v40 }
 0x8e8   :  { %v2294_v12 = vpop.xlane.xlu0 %2293 }
 0x8e9   :  { %v2298_v15 = vmul.f32 0.03125, %v2294_v12 }
 0x8eb   :  { %v2300_v51 = vadd.f32 1e-05, %v2298_v15 }
 0x8ec   :  { %v2297_v17 = vpop.xlane.xlu0 %2296 }
 0x8ed   :  { %5753 = vrsqrt.f32 %v2300_v51  ;;  %v2299_v41 = vmul.f32 0.03125, %v2297_v17 }
 0x8ef   :  { %v2301_v43 = vadd.f32 1e-05, %v2299_v41 }
 0x8f1   :  { %5755 = vrsqrt.f32 %v2301_v43 }
 0x8f7   :  { %v5754_v52 = vpop.eup %5753 }
 0x8f8   :  { %v2304_v31 = vmul.f32 %v5754_v52, %v2288_v23 }
 0x8fa   :  { %v2310_v21 = vmul.f32 %v2309_v20, %v2304_v31 }
 0x8fb   :  { %v5756_v11 = vpop.eup %5755 }
 0x8fc   :  { %v2305_v45 = vmul.f32 %v5756_v11, %v2289_v25  ;;  %v2316_v22 = vadd.f32 %v2315_v2, %v2310_v21 }
 0x8fe   :  { %v2311_v16 = vmul.f32 %v2309_v20, %v2305_v45 }
 0x900   :  { %v2317_v26 = vadd.f32 %v2315_v2, %v2311_v16 }
 0x902   :  { %v2318_v30 = vpack.c.bf16 %v2317_v26, %v2316_v22  ;;  %v5701_v26 = vld [vmem:[%s7093_s3 + $0x10] sm:$0xff]  }
 0x904   :  { %5472 = vmatmul.mubr.msk.bf16.vlgmr.msra.gmra.mrb[32].mxu0 %vm52_vm0, %v2318_v30  ;;  %v5702_v30 = vld [vmem:[%s7093_s3 + $0x18] sm:$0xff]  }
 0x905   :  { %5499 = vmatprep.mubr.msk.bf16.mxu0 %vm5857_vm1, %v5856_v18  ;;  %5496 = vmatpush3.bf16.msra.mxu0 %v5701_v26 }
 0x906   :  { %5497 = vmatprep.subr.bf16.mxu0 %v5856_v18 }
 0x909   :  { %5498 = vmatpush3.bf16.msra.mxu0 %v5702_v30 }
 0x90a   :  { %5503 = vmatprep.subr.bf16.mxu0 %v5856_v18 }
 0x9d7   :  { %v2376_v48 = vpop.f32.mrb[32].mxu0 }
 0x9d8   :  { %v2377_v56 = vadd.f32 %v2376_v48, %v2326_v14  ;;  %v5473_v38 = vpop.f32.mrb[33].mxu0 }
 0x9d9   :  { %v2379_v57 = vpop.f32.mrb[34].mxu0  ;;  %v2548_v38 = vrot.slane %v5162_v46, %v88_v33 }
 0x9da   :  { %v5152_v58 = vmul.f32 -1.702, %v2377_v56  ;;  %v2380_v54 = vadd.f32 %v2379_v57, %v2326_v14  ;;  %v5474_v59 = vpop.f32.mrb[35].mxu0 }
 0x9dc   :  { %v2387_v53 = vmul.f32 1.442695, %v5152_v58  ;;  %v5153_v62 = vmul.f32 -1.702, %v2380_v54 }
 0x9de   :  { %5757 = vpow2.f32 %v2387_v53  ;;  %v2389_v0 = vmul.f32 1.442695, %v5153_v62 }
 0x9e0   :  { %5759 = vpow2.f32 %v2389_v0 }
 0x9e8   :  { %v5758_v49 = vpop.eup %5757 }
 0x9e9   :  { %v2391_v5 = vadd.f32 1.0, %v5758_v49 }
 0x9ea   :  { %v5760_v61 = vpop.eup %5759 }
 0x9eb   :  { %5761 = vrcp.f32 %v2391_v5  ;;  %v2392_v6 = vadd.f32 1.0, %v5760_v61 }
 0x9ed   :  { %5763 = vrcp.f32 %v2392_v6 }
 0x9f5   :  { %v5762_v23 = vpop.eup %5761 }
 0x9f6   :  { %v2397_v25 = vmul.f32 %v5762_v23, %v2377_v56 }
 0x9f7   :  { %v5764_v3 = vpop.eup %5763 }
 0x9f8   :  { %v2398_v7 = vmul.f32 %v5764_v3, %v2380_v54 }
 0x9fa   :  { %v2399_v4 = vpack.c.bf16 %v2398_v7, %v2397_v25 }
 0x9fc   :  { %5492 = vmatmul.mubr.bf16.vlgmr.msra.gmra.mrb[40].mxu1 %v2399_v4 }
 0x9fd   :  { %5523 = vmatprep.mubr.msk.bf16.mxu1 %vm5857_vm1, %v5856_v18 }
 0xacf   :  { %v2502_v10 = vpop.f32.mrb[40].mxu1 }
 0xad0   :  { %v2503_v32 = vadd.f32 %v2502_v10, %v2419_v19  ;;  %v5493_v12 = vpop.f32.mrb[41].mxu1 }
 0xad1   :  { %v2505_v15 = vpop.f32.mrb[42].mxu1 }
 0xad2   :  { %v6510_v51 = vadd.f32 %v2503_v32, %v6435_v60  ;;  %v2506_v17 = vadd.f32 %v2505_v15, %v2419_v19  ;;  %v5494_v41 = vpop.f32.mrb[43].mxu1 }
 0xad4   :  { %v6513_v43 = vadd.f32 %v2506_v17, %v6438_v55  ;;  %v2513_v52 = vsel %vm52_vm0, %v6510_v51, 0.0 }
 0xad5   :  { %2514 = vadd.xlane.f32.xlu1 %v2513_v52 }
 0xad6   :  { %v2516_v20 = vsel %vm52_vm0, %v6513_v43, 0.0 }
 0xad7   :  { %2517 = vadd.xlane.f32.xlu0 %v2516_v20 }
 0xb62   :  { %v2515_v50 = vpop.xlane.xlu1 %2514 }
 0xb63   :  { %v2519_v31 = vmul.f32 0.03125, %v2515_v50 }
 0xb64   :  { %v2518_v11 = vpop.xlane.xlu0 %2517 }
 0xb65   :  { %v2521_v21 = vsub.f32 %v6510_v51, %v2519_v31  ;;  %v2520_v60 = vmul.f32 0.03125, %v2518_v11 }
 0xb67   :  { %v2522_v45 = vsub.f32 %v6513_v43, %v2520_v60  ;;  %v2523_v2 = vmul.f32 %v2521_v21, %v2521_v21 }
 0xb69   :  { %v2525_v55 = vsel %vm52_vm0, %v2523_v2, 0.0  ;;  %v2524_v16 = vmul.f32 %v2522_v45, %v2522_v45 }
 0xb6a   :  { %2526 = vadd.xlane.f32.xlu1 %v2525_v55 }
 0xb6b   :  { %v2528_v22 = vsel %vm52_vm0, %v2524_v16, 0.0 }
 0xb6c   :  { %2529 = vadd.xlane.f32.xlu0 %v2528_v22 }
 0xbf7   :  { %v2527_v35 = vpop.xlane.xlu1 %2526 }
 0xbf8   :  { %v2531_v36 = vmul.f32 0.03125, %v2527_v35 }
 0xbf9   :  { %v2530_v37 = vpop.xlane.xlu0 %2529 }
 0xbfa   :  { %v2533_v39 = vadd.f32 1e-05, %v2531_v36  ;;  %v2532_v1 = vmul.f32 0.03125, %v2530_v37 }
 0xbfc   :  { %5765 = vrsqrt.f32 %v2533_v39  ;;  %v2534_v44 = vadd.f32 1e-05, %v2532_v1 }
 0xbfe   :  { %5767 = vrsqrt.f32 %v2534_v44 }
 0xc06   :  { %v5766_v14 = vpop.eup %5765 }
 0xc07   :  { %v2537_v48 = vmul.f32 %v5766_v14, %v2521_v21 }
 0xc08   :  { %v5768_v56 = vpop.eup %5767 }
 0xc09   :  { %v2543_v57 = vmul.f32 %v2542_v47, %v2537_v48  ;;  %v2538_v58 = vmul.f32 %v5768_v56, %v2522_v45 }
 0xc0b   :  { %v2544_v54 = vmul.f32 %v2542_v47, %v2538_v58  ;;  %v2549_v59 = vadd.f32 %v2548_v38, %v2543_v57 }
 0xc0d   :  { %v2550_v53 = vadd.f32 %v2548_v38, %v2544_v54 }
 0xc0f   :  { %v2551_v62 = vpack.c.bf16 %v2550_v53, %v2549_v59 }
 0xc11   :  { %5500 = vmatmul.mubr.msk.bf16.vlgmr.msra.gmra.mrb[36].mxu0 %vm52_vm0, %v2551_v62 }
 0xc12   :  { %5505 = vmatprep.mubr.msk.bf16.mxu0 %vm5857_vm1, %v5856_v18 }
 0xce4   :  { %v2610_v0 = vpop.f32.mrb[36].mxu0 }
 0xce5   :  { %v2611_v49 = vadd.f32 %v2610_v0, %v2560_v28  ;;  %v5501_v5 = vpop.f32.mrb[37].mxu0 }
 0xce6   :  { %v2613_v61 = vpop.f32.mrb[38].mxu0 }
 0xce7   :  { %2625 = vrot.lane.b32.xlu0 %v2611_v49, %s5858_s27  ;;  %2619 = vrot.lane.b32.xlu1 %v2611_v49, %s5859_s28  ;;  %v5502_v33 = vpop.f32.mrb[39].mxu0  ;;  %v6545_v6 = vadd.f32 %v2613_v61, %v2560_v28 }
 0xceb   :  { %2631 = vrot.lane.b32.xlu1 %v2611_v49, %s5860_s29  ;;  %2633 = vrot.lane.b32.xlu0 %v6545_v6, %s5860_s29 }
 0xcef   :  { %2621 = vrot.lane.b32.xlu1 %v6545_v6, %s5859_s28 }
 0xcf3   :  { %2627 = vrot.lane.b32.xlu1 %v6545_v6, %s5858_s27 }
 0xcf7   :  { %2917 = vrot.lane.b32.xlu1 %v2611_v49, %s5861_s30 }
 0xd59   :  { %v6555_v42 = vpop.permute.xlu0 %2625  ;;  %v6557_v23 = vpop.permute.xlu1 %2619 }
 0xd5a   :  { %2921 = vrot.lane.b32.xlu0 %v6557_v23, %s5861_s30  ;;  %2925 = vrot.lane.b32.xlu1 %v6555_v42, %s5861_s30  ;;  %v2637_v32 = vcombine.low %v2611_v49, %v6555_v42  ;;  %v2638_v12 = vcombine.high %v2611_v49, %v6555_v42 }
 0xd5c   :  { %v2645_v41 = vrot.slane %v2637_v32, %v6029_v63  ;;  %v2652_v52 = vrot.slane %v2638_v12, %v6029_v63 }
 0xd5d   :  { %v6563_v3 = vpop.permute.xlu1 %2631  ;;  %v6573_v7 = vpop.permute.xlu0 %2633 }
 0xd5e   :  { %2929 = vrot.lane.b32.xlu0 %v6563_v3, %s5861_s30  ;;  %2919 = vrot.lane.b32.xlu1 %v6545_v6, %s5861_s30  ;;  %v2653_v19 = vcombine.low %v6557_v23, %v6563_v3  ;;  %v2654_v10 = vcombine.high %v6557_v23, %v6563_v3 }
 0xd60   :  { %v2661_v15 = vrot.slane %v2653_v19, %v6029_v63  ;;  %v2668_v17 = vrot.slane %v2654_v10, %v6029_v63 }
 0xd61   :  { %v6569_v25 = vpop.permute.xlu1 %2621 }
 0xd62   :  { %2923 = vrot.lane.b32.xlu0 %v6569_v25, %s5861_s30  ;;  %v2669_v20 = vcombine.low %v2645_v41, %v2661_v15  ;;  %v2670_v50 = vcombine.high %v2645_v41, %v2661_v15  ;;  %v2685_v31 = vcombine.low %v2652_v52, %v2668_v17  ;;  %v2686_v11 = vcombine.high %v2652_v52, %v2668_v17 }
 0xd63   :  { %v2721_v26 = vcombine.low %v6569_v25, %v6573_v7  ;;  %v2722_v30 = vcombine.high %v6569_v25, %v6573_v7 }
 0xd64   :  { %v2677_v21 = vrot.slane %v2669_v20, %v6040_v9  ;;  %v2684_v60 = vrot.slane %v2670_v50, %v6040_v9  ;;  %v2693_v45 = vrot.slane %v2685_v31, %v6040_v9  ;;  %v2700_v2 = vrot.slane %v2686_v11, %v6040_v9 }
 0xd65   :  { %v6575_v4 = vpop.permute.xlu1 %2627  ;;  %v2729_v14 = vrot.slane %v2721_v26, %v6029_v63  ;;  %v2736_v48 = vrot.slane %v2722_v30, %v6029_v63 }
 0xd66   :  { %2931 = vrot.lane.b32.xlu0 %v6573_v7, %s5861_s30  ;;  %2927 = vrot.lane.b32.xlu1 %v6575_v4, %s5861_s30  ;;  %v2705_v55 = vcombine.low %v6545_v6, %v6575_v4  ;;  %v2706_v16 = vcombine.high %v6545_v6, %v6575_v4  ;;  %v2773_v35 = vcombine.low %v2677_v21, %v2684_v60 }
 0xd67   :  { %v5170_v36 = vcombine.high %v2677_v21, %v2684_v60  ;;  %v2789_v37 = vcombine.low %v2693_v45, %v2700_v2  ;;  %v5171_v39 = vcombine.high %v2693_v45, %v2700_v2 }
 0xd68   :  { %v2713_v1 = vrot.slane %v2705_v55, %v6029_v63  ;;  %v2720_v44 = vrot.slane %v2706_v16, %v6029_v63  ;;  %v2780_v56 = vrot.slane %v2773_v35, %v6029_v63 }
 0xd69   :  { %v2918_v22 = vpop.permute.xlu1 %2917  ;;  %v2788_v38 = vrot.slane %v5170_v36, %v6029_v63  ;;  %v2796_v57 = vrot.slane %v2789_v37, %v6029_v63  ;;  %v2804_v58 = vrot.slane %v5171_v39, %v6029_v63 }
 0xd6a   :  { %3221 = vrot.lane.b32.xlu1 %v2611_v49, %s5864_s11  ;;  %v2737_v53 = vcombine.low %v2713_v1, %v2729_v14  ;;  %v2738_v62 = vcombine.high %v2713_v1, %v2729_v14  ;;  %v2753_v28 = vcombine.low %v2720_v44, %v2736_v48  ;;  %v2754_v0 = vcombine.high %v2720_v44, %v2736_v48 }
 0xd6b   :  { %v2805_v33 = vcombine.low %v2780_v56, %v2788_v38  ;;  %v2821_v19 = vcombine.low %v2796_v57, %v2804_v58  ;;  %v2806_v10 = vcombine.high %v2780_v56, %v2788_v38  ;;  %v2822_v32 = vcombine.high %v2796_v57, %v2804_v58 }
 0xd6c   :  { %v2745_v52 = vrot.slane %v2737_v53, %v6040_v9  ;;  %v2752_v20 = vrot.slane %v2738_v62, %v6040_v9  ;;  %v6619_v50 = vrot.slane %v2753_v28, %v6040_v9  ;;  %v6622_v31 = vrot.slane %v2754_v0, %v6040_v9 }
 0xd6d   :  { %v6625_v16 = vrot.slane %v2805_v33, %v6040_v9  ;;  %v6631_v26 = vrot.slane %v2806_v10, %v6040_v9  ;;  %v6634_v30 = vrot.slane %v2822_v32, %v6040_v9 }
 0xd6e   :  { %v2841_v1 = vcombine.low %v2745_v52, %v2752_v20  ;;  %v5172_v44 = vcombine.high %v2745_v52, %v2752_v20 }
 0xdcc   :  { %v2922_v46 = vpop.permute.xlu0 %2921  ;;  %v2926_v47 = vpop.permute.xlu1 %2925 }
 0xdcd   :  { %v2941_v54 = vcombine.low %v2918_v22, %v2926_v47  ;;  %v2942_v59 = vcombine.high %v2918_v22, %v2926_v47  ;;  %v6628_v22 = vrot.slane %v2821_v19, %v6040_v9  ;;  %v5173_v47 = vcombine.high %v6619_v50, %v6622_v31 }
 0xdcf   :  { %v2949_v12 = vrot.slane %v2941_v54, %v6029_v63  ;;  %v2956_v15 = vrot.slane %v2942_v59, %v6029_v63 }
 0xdd0   :  { %v2930_v49 = vpop.permute.xlu0 %2929  ;;  %v2920_v55 = vpop.permute.xlu1 %2919 }
 0xdd1   :  { %v2957_v5 = vcombine.low %v2922_v46, %v2930_v49  ;;  %v2958_v61 = vcombine.high %v2922_v46, %v2930_v49  ;;  %v2857_v46 = vcombine.low %v6619_v50, %v6622_v31 }
 0xdd3   :  { %v2965_v17 = vrot.slane %v2957_v5, %v6029_v63  ;;  %v2972_v41 = vrot.slane %v2958_v61, %v6029_v63 }
 0xdd4   :  { %v2924_v11 = vpop.permute.xlu0 %2923 }
 0xdd5   :  { %v2973_v21 = vcombine.low %v2949_v12, %v2965_v17  ;;  %v2974_v60 = vcombine.high %v2949_v12, %v2965_v17  ;;  %v2989_v45 = vcombine.low %v2956_v15, %v2972_v41  ;;  %v2990_v2 = vcombine.high %v2956_v15, %v2972_v41 }
 0xdd7   :  { %v2981_v35 = vrot.slane %v2973_v21, %v6040_v9  ;;  %v2988_v36 = vrot.slane %v2974_v60, %v6040_v9  ;;  %v2997_v37 = vrot.slane %v2989_v45, %v6040_v9  ;;  %v3004_v39 = vrot.slane %v2990_v2, %v6040_v9 }
 0xdd8   :  { %v2932_v14 = vpop.permute.xlu0 %2931  ;;  %v2928_v58 = vpop.permute.xlu1 %2927 }
 0xdd9   :  { %v3077_v48 = vcombine.low %v2981_v35, %v2988_v36  ;;  %v5174_v56 = vcombine.high %v2981_v35, %v2988_v36  ;;  %v3093_v38 = vcombine.low %v2997_v37, %v3004_v39  ;;  %v5175_v57 = vcombine.high %v2997_v37, %v3004_v39 }
 0xdda   :  { %v3025_v54 = vcombine.low %v2924_v11, %v2932_v14  ;;  %v3026_v59 = vcombine.high %v2924_v11, %v2932_v14  ;;  %v3009_v53 = vcombine.low %v2920_v55, %v2928_v58  ;;  %v3010_v62 = vcombine.high %v2920_v55, %v2928_v58 }
 0xddb   :  { %v3084_v28 = vrot.slane %v3077_v48, %v6029_v63  ;;  %v3092_v0 = vrot.slane %v5174_v56, %v6029_v63  ;;  %v3100_v49 = vrot.slane %v3093_v38, %v6029_v63  ;;  %v3108_v5 = vrot.slane %v5175_v57, %v6029_v63 }
 0xddc   :  { %v3033_v61 = vrot.slane %v3025_v54, %v6029_v63  ;;  %v3040_v33 = vrot.slane %v3026_v59, %v6029_v63  ;;  %v3017_v19 = vrot.slane %v3009_v53, %v6029_v63  ;;  %v3024_v10 = vrot.slane %v3010_v62, %v6029_v63 }
 0xddd   :  { %v3109_v32 = vcombine.low %v3084_v28, %v3092_v0  ;;  %v3125_v12 = vcombine.low %v3100_v49, %v3108_v5  ;;  %v3110_v15 = vcombine.high %v3084_v28, %v3092_v0  ;;  %v3126_v17 = vcombine.high %v3100_v49, %v3108_v5 }
 0xdde   :  { %v3041_v41 = vcombine.low %v3017_v19, %v3033_v61  ;;  %v3042_v52 = vcombine.high %v3017_v19, %v3033_v61  ;;  %v3057_v20 = vcombine.low %v3024_v10, %v3040_v33  ;;  %v3058_v50 = vcombine.high %v3024_v10, %v3040_v33 }
 0xddf   :  { %v3117_v31 = vrot.slane %v3109_v32, %v6040_v9  ;;  %v3133_v11 = vrot.slane %v3125_v12, %v6040_v9  ;;  %v3124_v21 = vrot.slane %v3110_v15, %v6040_v9  ;;  %v3140_v60 = vrot.slane %v3126_v17, %v6040_v9 }
 0xde0   :  { %v3049_v45 = vrot.slane %v3041_v41, %v6040_v9  ;;  %v3056_v2 = vrot.slane %v3042_v52, %v6040_v9  ;;  %v3065_v55 = vrot.slane %v3057_v20, %v6040_v9  ;;  %v3072_v35 = vrot.slane %v3058_v50, %v6040_v9 }
 0xde1   :  { %v6661_v36 = vrot.slane %v2841_v1, %v6029_v63  ;;  %v2856_v37 = vrot.slane %v5172_v44, %v6029_v63  ;;  %v3141_v39 = vcombine.low %v3117_v31, %v3133_v11  ;;  %v3144_v14 = vcombine.high %v3124_v21, %v3140_v60 }
 0xde2   :  { %v3145_v48 = vcombine.low %v3049_v45, %v3056_v2  ;;  %v5176_v56 = vcombine.high %v3049_v45, %v3056_v2  ;;  %v3161_v38 = vcombine.low %v3065_v55, %v3072_v35  ;;  %v5177_v57 = vcombine.high %v3065_v55, %v3072_v35 }
 0xde3   :  { %v2864_v58 = vrot.slane %v2857_v46, %v6029_v63  ;;  %v2872_v54 = vrot.slane %v5173_v47, %v6029_v63  ;;  %v3213_v59 = vpack.c.bf16 %v3141_v39, %v3141_v39  ;;  %v3216_v53 = vpack.c.bf16 %v3144_v14, %v3144_v14 }
 0xde4   :  { %v3152_v62 = vrot.slane %v3145_v48, %v6029_v63  ;;  %v3160_v28 = vrot.slane %v5176_v56, %v6029_v63  ;;  %v3168_v1 = vrot.slane %v3161_v38, %v6029_v63  ;;  %v3176_v44 = vrot.slane %v5177_v57, %v6029_v63 }
 0xde5   :  { %v3529_v0 = vsel %vm1065_vm2, %v3213_v59, 0  ;;  %v3667_v49 = vsel %vm1065_vm2, %v3216_v53, 0  ;;  %v3142_v5 = vcombine.high %v3117_v31, %v3133_v11  ;;  %v2837_v33 = vcombine.low %v6625_v16, %v6628_v22 }
 0xde6   :  { %5504 = vmatpush3.bf16.xpose.msra.mxu0 %v3529_v0  ;;  %5522 = vmatpush3.bf16.xpose.msra.mxu1 %v3667_v49  ;;  %v3177_v46 = vcombine.low %v3152_v62, %v3160_v28  ;;  %v3193_v61 = vcombine.low %v3168_v1, %v3176_v44  ;;  %v3178_v47 = vcombine.high %v3152_v62, %v3160_v28 }
 0xde7   :  { %5509 = vmatprep.subr.bf16.mxu0 %v5856_v18  ;;  %v2840_v19 = vcombine.high %v6631_v26, %v6634_v30  ;;  %5533 = vmatprep.subr.bf16.mxu1 %v5856_v18  ;;  %v3194_v10 = vcombine.high %v3168_v1, %v3176_v44  ;;  %v2873_v15 = vcombine.low %v6661_v36, %v2856_v37 }
 0xde8   :  { %v3185_v32 = vrot.slane %v3177_v46, %v6040_v9  ;;  %v3201_v12 = vrot.slane %v3193_v61, %v6040_v9  ;;  %v2889_v17 = vcombine.low %v2864_v58, %v2872_v54  ;;  %v3214_v41 = vpack.c.bf16 %v3142_v5, %v3142_v5 }
 0xde9   :  { %v3192_v20 = vrot.slane %v3178_v47, %v6040_v9  ;;  %v3208_v50 = vrot.slane %v3194_v10, %v6040_v9  ;;  %v2909_v31 = vpack.c.bf16 %v2837_v33, %v2837_v33  ;;  %v2912_v11 = vpack.c.bf16 %v2840_v19, %v2840_v19 }
 0xdea   :  { %v3210_v52 = vcombine.high %v3185_v32, %v3201_v12  ;;  %v2881_v2 = vrot.slane %v2873_v15, %v6040_v9  ;;  %v2897_v55 = vrot.slane %v2889_v17, %v6040_v9  ;;  %v3575_v35 = vsel %vm1065_vm2, %v3214_v41, 0 }
 0xdeb   :  { %v3143_v39 = vcombine.low %v3124_v21, %v3140_v60  ;;  %v3212_v48 = vcombine.high %v3192_v20, %v3208_v50  ;;  %v2838_v56 = vcombine.high %v6625_v16, %v6628_v22  ;;  %v2874_v21 = vcombine.high %v6661_v36, %v2856_v37 }
 0xdec   :  { %v3218_v45 = vpack.c.bf16 %v3210_v52, %v3210_v52  ;;  %v2906_v38 = vcombine.high %v2881_v2, %v2897_v55  ;;  %v2890_v60 = vcombine.high %v2864_v58, %v2872_v54  ;;  %v3209_v22 = vcombine.low %v3185_v32, %v3201_v12 }
 0xded   :  { %5506 = vmatmul.mubr.msk.bf16.vlgmr.msra.gmra.mrb[40].mxu0 %vm1065_vm2, %v2909_v31  ;;  %5524 = vmatmul.mubr.msk.bf16.vlgmr.msra.gmra.mrb[44].mxu1 %vm1065_vm2, %v2912_v11  ;;  %v3215_v57 = vpack.c.bf16 %v3143_v39, %v3143_v39  ;;  %v3220_v59 = vpack.c.bf16 %v3212_v48, %v3212_v48  ;;  %v2910_v53 = vpack.c.bf16 %v2838_v56, %v2838_v56 }
 0xdee   :  { %5510 = vmatpush3.bf16.xpose.msra.mxu0 %v3575_v35  ;;  %v3759_v14 = vsel %vm1065_vm2, %v3218_v45, 0  ;;  %5511 = vmatprep.mubr.msk.bf16.mxu0 %vm5857_vm1, %v5856_v18  ;;  %v2914_v62 = vpack.c.bf16 %v2906_v38, %v2906_v38  ;;  %v2888_v28 = vrot.slane %v2874_v21, %v6040_v9  ;;  %v2904_v1 = vrot.slane %v2890_v60, %v6040_v9 }
 0xdef   :  { %5534 = vmatpush3.bf16.xpose.msra.mxu1 %v3759_v14  ;;  %5535 = vmatprep.mubr.msk.bf16.mxu1 %vm5857_vm1, %v5856_v18  ;;  %v3621_v16 = vsel %vm1065_vm2, %v3215_v57, 0  ;;  %v3851_v44 = vsel %vm1065_vm2, %v3220_v59, 0  ;;  %v2839_v36 = vcombine.low %v6631_v26, %v6634_v30  ;;  %v3217_v58 = vpack.c.bf16 %v3209_v22, %v3209_v22 }
 0xdf0   :  { %5515 = vmatprep.subr.bf16.mxu0 %v5856_v18  ;;  %5545 = vmatprep.subr.bf16.mxu1 %v5856_v18  ;;  %v2908_v37 = vcombine.high %v2888_v28, %v2904_v1  ;;  %v3211_v5 = vcombine.low %v3192_v20, %v3208_v50  ;;  %v2905_v26 = vcombine.low %v2881_v2, %v2897_v55 }
 0xdf1   :  { %v2911_v54 = vpack.c.bf16 %v2839_v36, %v2839_v36  ;;  %v3713_v49 = vsel %vm1065_vm2, %v3217_v58, 0  ;;  %v2907_v47 = vcombine.low %v2888_v28, %v2904_v1 }
 0xdf2   :  { %v2916_v0 = vpack.c.bf16 %v2908_v37, %v2908_v37  ;;  %v3219_v30 = vpack.c.bf16 %v3211_v5, %v3211_v5  ;;  %v2913_v46 = vpack.c.bf16 %v2905_v26, %v2905_v26 }
 0xdf3   :  { %v2915_v33 = vpack.c.bf16 %v2907_v47, %v2907_v47 }
 0xdf4   :  { %v3805_v61 = vsel %vm1065_vm2, %v3219_v30, 0 }
 0xdf5   :  { %5512 = vmatmul.mubr.msk.bf16.vlgmr.msra.gmra.mrb[44].mxu0 %vm1065_vm2, %v2910_v53 }
 0xdf6   :  { %5536 = vmatmul.mubr.msk.bf16.vlgmr.msra.gmra.mrb[48].mxu1 %vm1065_vm2, %v2914_v62  ;;  %5516 = vmatpush3.bf16.xpose.msra.mxu0 %v3621_v16 }
 0xdf7   :  { %5546 = vmatpush3.bf16.xpose.msra.mxu1 %v3851_v44  ;;  %5517 = vmatprep.mubr.msk.bf16.mxu0 %vm5857_vm1, %v5856_v18 }
 0xdf8   :  { %5547 = vmatprep.mubr.msk.bf16.mxu1 %vm5857_vm1, %v5856_v18  ;;  %5527 = vmatprep.subr.bf16.mxu0 %v5856_v18 }
 0xdf9   :  { %5557 = vmatprep.subr.bf16.mxu1 %v5856_v18 }
 0xdfd   :  { %5518 = vmatmul.mubr.msk.bf16.vlgmr.msra.gmra.mrb[48].mxu0 %vm1065_vm2, %v2911_v54 }
 0xdfe   :  { %5548 = vmatmul.mubr.msk.bf16.vlgmr.msra.gmra.mrb[52].mxu1 %vm1065_vm2, %v2916_v0  ;;  %5528 = vmatpush3.bf16.xpose.msra.mxu0 %v3713_v49 }
 0xdff   :  { %5529 = vmatprep.mubr.msk.bf16.mxu0 %vm5857_vm1, %v5856_v18  ;;  %5539 = vmatprep.subr.bf16.mxu0 %v5856_v18 }
 0xe00   :  { %5559 = vmatprep.mubr.msk.bf16.mxu1 %vm5857_vm1, %v5856_v18 }
 0xe05   :  { %5530 = vmatmul.mubr.msk.bf16.vlgmr.msra.gmra.mrb[52].mxu0 %vm1065_vm2, %v2913_v46 }
 0xe06   :  { %5540 = vmatpush3.bf16.xpose.msra.mxu0 %v3805_v61  ;;  %5541 = vmatprep.mubr.msk.bf16.mxu0 %vm5857_vm1, %v5856_v18 }
 0xe07   :  { %5551 = vmatprep.subr.bf16.mxu0 %v5856_v18 }
 0xe0d   :  { %5542 = vmatmul.mubr.msk.bf16.vlgmr.msra.gmra.mrb[56].mxu0 %vm1065_vm2, %v2915_v33 }
 0xe0e   :  { %5553 = vmatprep.mubr.msk.bf16.mxu0 %vm5857_vm1, %v5856_v18 }
 0xec0   :  { %v3565_v19 = vpop.f32.mrb[40].mxu0  ;;  %v3703_v10 = vpop.f32.mrb[44].mxu1 }
 0xec1   :  { %v6730_v32 = vsel %vm6190_vm3, %v3565_v19, -1e+09  ;;  %v6734_v12 = vsel %vm6190_vm3, %v3703_v10, -1e+09  ;;  %v5507_v15 = vpop.f32.mrb[41].mxu0  ;;  %v5525_v17 = vpop.f32.mrb[45].mxu1 }
 0xec2   :  { %v3568_v41 = vpop.f32.mrb[42].mxu0  ;;  %v3706_v52 = vpop.f32.mrb[46].mxu1  ;;  %v3901_v20 = vsel %vm1065_vm2, %v6730_v32, -inf  ;;  %v3910_v50 = vsel %vm1065_vm2, %v6734_v12, -inf }
 0xec3   :  { %3902 = vmax.xlane.f32.xlu1 %v3901_v20  ;;  %v5508_v31 = vpop.f32.mrb[43].mxu0  ;;  %3911 = vmax.xlane.f32.xlu0 %v3910_v50  ;;  %v5526_v11 = vpop.f32.mrb[47].mxu1 }
 0xec8   :  { %v3611_v45 = vpop.f32.mrb[44].mxu0 }
 0xec9   :  { %v3894_v2 = vsel %vm6190_vm3, %v3611_v45, -1e+09  ;;  %v3795_v55 = vpop.f32.mrb[48].mxu1  ;;  %v5513_v35 = vpop.f32.mrb[45].mxu0 }
 0xeca   :  { %v5537_v39 = vpop.f32.mrb[49].mxu1  ;;  %v3614_v14 = vpop.f32.mrb[46].mxu0  ;;  %v3904_v48 = vsel %vm1065_vm2, %v3894_v2, -inf  ;;  %v3898_v56 = vsel %vm6190_vm3, %v3795_v55, -1e+09 }
 0xecb   :  { %v3798_v38 = vpop.f32.mrb[50].mxu1  ;;  %v5514_v21 = vpop.f32.mrb[47].mxu0  ;;  %3905 = vmax.xlane.f32.xlu0 %v3904_v48  ;;  %v3916_v57 = vsel %vm1065_vm2, %v3898_v56, -inf }
 0xecc   :  { %v5538_v60 = vpop.f32.mrb[51].mxu1 }
 0xecf   :  { %3917 = vmax.xlane.f32.xlu0 %v3916_v57 }
 0xed0   :  { %v3657_v59 = vpop.f32.mrb[48].mxu0 }
 0xed1   :  { %v3895_v53 = vsel %vm6190_vm3, %v3657_v59, -1e+09  ;;  %v3887_v62 = vpop.f32.mrb[52].mxu1  ;;  %v5519_v28 = vpop.f32.mrb[49].mxu0 }
 0xed2   :  { %v5549_v1 = vpop.f32.mrb[53].mxu1  ;;  %v3660_v16 = vpop.f32.mrb[50].mxu0  ;;  %v3907_v22 = vsel %vm1065_vm2, %v3895_v53, -inf  ;;  %v6751_v44 = vsel %vm6190_vm3, %v3887_v62, -1e+09 }
 0xed3   :  { %v3890_v36 = vpop.f32.mrb[54].mxu1  ;;  %v5520_v37 = vpop.f32.mrb[51].mxu0  ;;  %3908 = vmax.xlane.f32.xlu0 %v3907_v22  ;;  %v3922_v54 = vsel %vm1065_vm2, %v6751_v44, -inf }
 0xed4   :  { %v5550_v58 = vpop.f32.mrb[55].mxu1  ;;  %3229 = vrot.lane.b32.xlu1 %v6555_v42, %s5864_s11 }
 0xed7   :  { %3923 = vmax.xlane.f32.xlu0 %v3922_v54 }
 0xed8   :  { %3233 = vrot.lane.b32.xlu1 %v6563_v3, %s5864_s11  ;;  %v3749_v0 = vpop.f32.mrb[52].mxu0 }
 0xed9   :  { %v5531_v49 = vpop.f32.mrb[53].mxu0  ;;  %v6763_v42 = vsel %vm6190_vm3, %v3749_v0, -1e+09 }
 0xeda   :  { %v3752_v5 = vpop.f32.mrb[54].mxu0  ;;  %v3913_v33 = vsel %vm1065_vm2, %v6763_v42, -inf }
 0xedb   :  { %v5532_v26 = vpop.f32.mrb[55].mxu0 }
 0xee0   :  { %v3841_v30 = vpop.f32.mrb[56].mxu0 }
 0xee1   :  { %v5543_v46 = vpop.f32.mrb[57].mxu0  ;;  %v6769_v3 = vsel %vm6190_vm3, %v3841_v30, -1e+09 }
 0xee2   :  { %v3844_v61 = vpop.f32.mrb[58].mxu0  ;;  %v3919_v19 = vsel %vm1065_vm2, %v6769_v3, -inf }
 0xee3   :  { %v5544_v47 = vpop.f32.mrb[59].mxu0 }
 0xeed   :  { %3225 = vrot.lane.b32.xlu0 %v6557_v23, %s5864_s11  ;;  %v3222_v23 = vpop.permute.xlu1 %3221 }
 0xefc   :  { %3914 = vmax.xlane.f32.xlu1 %v3913_v33 }
 0xf00   :  { %3920 = vmax.xlane.f32.xlu1 %v3919_v19 }
 0xf11   :  { %3223 = vrot.lane.b32.xlu1 %v6545_v6, %s5864_s11 }
 0xf50   :  { %v3903_v10 = vpop.xlane.xlu1 %3902  ;;  %v3912_v15 = vpop.xlane.xlu0 %3911 }
 0xf51   :  { %v3925_v17 = vsub.f32 %v6730_v32, %v3903_v10  ;;  %v3928_v41 = vsub.f32 %v6734_v12, %v3912_v15 }
 0xf53   :  { %v3933_v52 = vmul.f32 1.442695, %v3925_v17  ;;  %v3939_v20 = vmul.f32 1.442695, %v3928_v41 }
 0xf55   :  { %5769 = vpow2.f32 %v3933_v52 }
 0xf56   :  { %5771 = vpow2.f32 %v3939_v20 }
 0xf58   :  { %v3906_v8 = vpop.xlane.xlu0 %3905 }
 0xf59   :  { %v3926_v50 = vsub.f32 %v3894_v2, %v3906_v8  ;;  %v3230_v2 = vpop.permute.xlu1 %3229 }
 0xf5a   :  { %v3245_v21 = vcombine.low %v3222_v23, %v3230_v2  ;;  %v3246_v60 = vcombine.high %v3222_v23, %v3230_v2 }
 0xf5b   :  { %v3935_v31 = vmul.f32 1.442695, %v3926_v50 }
 0xf5c   :  { %v3918_v11 = vpop.xlane.xlu0 %3917  ;;  %v3253_v16 = vrot.slane %v3245_v21, %v6029_v63  ;;  %v3260_v22 = vrot.slane %v3246_v60, %v6029_v63 }
 0xf5d   :  { %5773 = vpow2.f32 %v3935_v31  ;;  %v3930_v45 = vsub.f32 %v3898_v56, %v3918_v11  ;;  %v3234_v57 = vpop.permute.xlu1 %3233 }
 0xf5f   :  { %v6777_v55 = vpop.eup %5769  ;;  %v3943_v6 = vmul.f32 1.442695, %v3930_v45 }
 0xf60   :  { %v6779_v35 = vpop.eup %5771  ;;  %v3909_v39 = vpop.xlane.xlu0 %3908  ;;  %v3949_v32 = vsel %vm1065_vm2, %v6777_v55, 0.0 }
 0xf61   :  { %5775 = vpow2.f32 %v3943_v6  ;;  %v3927_v12 = vsub.f32 %v3895_v53, %v3909_v39  ;;  %3950 = vadd.xlane.f32.xlu1 %v3949_v32  ;;  %v3958_v14 = vsel %vm1065_vm2, %v6779_v35, 0.0 }
 0xf62   :  { %3959 = vadd.xlane.f32.xlu0 %v3958_v14 }
 0xf63   :  { %v3937_v48 = vmul.f32 1.442695, %v3927_v12 }
 0xf64   :  { %v6785_v38 = vpop.xlane.xlu0 %3923 }
 0xf65   :  { %5777 = vpow2.f32 %v3937_v48 }
 0xf67   :  { %v6787_v56 = vpop.eup %5773 }
 0xf68   :  { %v3226_v59 = vpop.permute.xlu0 %3225  ;;  %v3952_v62 = vsel %vm1065_vm2, %v6787_v56, 0.0 }
 0xf69   :  { %v3261_v53 = vcombine.low %v3226_v59, %v3234_v57  ;;  %v3262_v28 = vcombine.high %v3226_v59, %v3234_v57  ;;  %3953 = vadd.xlane.f32.xlu0 %v3952_v62 }
 0xf6b   :  { %v6791_v1 = vpop.eup %5775  ;;  %v3269_v36 = vrot.slane %v3261_v53, %v6029_v63  ;;  %v3276_v37 = vrot.slane %v3262_v28, %v6029_v63 }
 0xf6c   :  { %v3964_v58 = vsel %vm1065_vm2, %v6791_v1, 0.0 }
 0xf6d   :  { %v3277_v54 = vcombine.low %v3253_v16, %v3269_v36  ;;  %v3278_v0 = vcombine.high %v3253_v16, %v3269_v36  ;;  %v3293_v49 = vcombine.low %v3260_v22, %v3276_v37  ;;  %v3294_v5 = vcombine.high %v3260_v22, %v3276_v37  ;;  %3965 = vadd.xlane.f32.xlu0 %v3964_v58 }
 0xf6f   :  { %v6799_v26 = vpop.eup %5777  ;;  %v3285_v30 = vrot.slane %v3277_v54, %v6040_v9  ;;  %v3292_v46 = vrot.slane %v3278_v0, %v6040_v9  ;;  %v3301_v61 = vrot.slane %v3293_v49, %v6040_v9  ;;  %v3308_v47 = vrot.slane %v3294_v5, %v6040_v9 }
 0xf70   :  { %v3955_v33 = vsel %vm1065_vm2, %v6799_v26, 0.0 }
 0xf71   :  { %v3381_v19 = vcombine.low %v3285_v30, %v3292_v46  ;;  %v5178_v23 = vcombine.high %v3285_v30, %v3292_v46  ;;  %v3397_v10 = vcombine.low %v3301_v61, %v3308_v47  ;;  %v5179_v15 = vcombine.high %v3301_v61, %v3308_v47  ;;  %3956 = vadd.xlane.f32.xlu1 %v3955_v33 }
 0xf73   :  { %v3388_v17 = vrot.slane %v3381_v19, %v6029_v63  ;;  %v3396_v41 = vrot.slane %v5178_v23, %v6029_v63  ;;  %v3404_v52 = vrot.slane %v3397_v10, %v6029_v63  ;;  %v3412_v20 = vrot.slane %v5179_v15, %v6029_v63 }
 0xf75   :  { %v3413_v8 = vcombine.low %v3388_v17, %v3396_v41  ;;  %v3429_v50 = vcombine.low %v3404_v52, %v3412_v20  ;;  %v3414_v31 = vcombine.high %v3388_v17, %v3396_v41  ;;  %v3430_v11 = vcombine.high %v3404_v52, %v3412_v20 }
 0xf77   :  { %v3421_v45 = vrot.slane %v3413_v8, %v6040_v9  ;;  %v3437_v6 = vrot.slane %v3429_v50, %v6040_v9  ;;  %v3428_v39 = vrot.slane %v3414_v31, %v6040_v9  ;;  %v3444_v32 = vrot.slane %v3430_v11, %v6040_v9 }
 0xf79   :  { %v3445_v12 = vcombine.low %v3421_v45, %v3437_v6  ;;  %v3446_v14 = vcombine.high %v3421_v45, %v3437_v6  ;;  %v3447_v2 = vcombine.low %v3428_v39, %v3444_v32  ;;  %v3448_v48 = vcombine.high %v3428_v39, %v3444_v32 }
 0xf7b   :  { %v3517_v21 = vpack.c.bf16 %v3445_v12, %v3445_v12  ;;  %v3518_v60 = vpack.c.bf16 %v3446_v14, %v3446_v14  ;;  %v3519_v47 = vpack.c.bf16 %v3447_v2, %v3447_v2  ;;  %v3520_v10 = vpack.c.bf16 %v3448_v48, %v3448_v48 }
 0xf7d   :  { %v4001_v57 = vsel %vm1543_vm4, %v3517_v21, 0  ;;  %v4047_v59 = vsel %vm1543_vm4, %v3518_v60, 0  ;;  %v4093_v33 = vsel %vm1543_vm4, %v3519_v47, 0  ;;  %v4139_v17 = vsel %vm1543_vm4, %v3520_v10, 0 }
 0xf7e   :  { %5552 = vmatpush3.bf16.msra.mxu0 %v4001_v57  ;;  %5558 = vmatpush3.bf16.msra.mxu1 %v4047_v59 }
 0xf7f   :  { %5563 = vmatprep.subr.bf16.mxu0 %v5856_v18  ;;  %5569 = vmatprep.subr.bf16.mxu1 %v5856_v18 }
 0xf82   :  { %3231 = vrot.lane.b32.xlu1 %v6575_v4, %s5864_s11 }
 0xf86   :  { %3235 = vrot.lane.b32.xlu1 %v6573_v7, %s5864_s11 }
 0xf89   :  { %v3915_v62 = vpop.xlane.xlu1 %3914 }
 0xf8a   :  { %v3929_v53 = vsub.f32 %v6763_v42, %v3915_v62  ;;  %v3932_v42 = vsub.f32 %v6751_v44, %v6785_v38 }
 0xf8c   :  { %v3941_v28 = vmul.f32 1.442695, %v3929_v53 }
 0xf8d   :  { %v3921_v16 = vpop.xlane.xlu1 %3920 }
 0xf8e   :  { %5779 = vpow2.f32 %v3941_v28  ;;  %v3931_v22 = vsub.f32 %v6769_v3, %v3921_v16  ;;  %v3947_v3 = vmul.f32 1.442695, %v3932_v42 }
 0xf90   :  { %v3945_v37 = vmul.f32 1.442695, %v3931_v22 }
 0xf91   :  { %v3224_v49 = vpop.permute.xlu1 %3223 }
 0xf92   :  { %5781 = vpow2.f32 %v3945_v37 }
 0xf93   :  { %5783 = vpow2.f32 %v3947_v3 }
 0xf98   :  { %v6825_v36 = vpop.eup %5779 }
 0xf99   :  { %v3961_v58 = vsel %vm1065_vm2, %v6825_v36, 0.0 }
 0xf9a   :  { %3962 = vadd.xlane.f32.xlu0 %v3961_v58 }
 0xf9c   :  { %v6829_v4 = vpop.eup %5781 }
 0xf9d   :  { %v3967_v7 = vsel %vm1065_vm2, %v6829_v4, 0.0  ;;  %v6837_v54 = vpop.eup %5783 }
 0xf9e   :  { %v3970_v0 = vsel %vm1065_vm2, %v6837_v54, 0.0 }
 0xfaa   :  { %3968 = vadd.xlane.f32.xlu1 %v3967_v7 }
 0xfb0   :  { %3227 = vrot.lane.b32.xlu0 %v6569_v25, %s5864_s11 }
 0xfcf   :  { %3971 = vadd.xlane.f32.xlu0 %v3970_v0 }
 0xfee   :  { %v3951_v5 = vpop.xlane.xlu1 %3950 }
 0xfef   :  { %5785 = vrcp.f32 %v3951_v5  ;;  %v3960_v30 = vpop.xlane.xlu0 %3959 }
 0xff6   :  { %v3954_v46 = vpop.xlane.xlu0 %3953 }
 0xff7   :  { %5787 = vrcp.f32 %v3954_v46 }
 0xff8   :  { %5789 = vrcp.f32 %v3960_v30 }
 0xff9   :  { %v5786_v61 = vpop.eup %5785 }
 0xffa   :  { %v3981_v25 = vmul.f32 %v5786_v61, %v6777_v55  ;;  %v3966_v50 = vpop.xlane.xlu0 %3965 }
 0xffc   :  { %v3989_v44 = vpack.c.bf16 %v3981_v25, %v3981_v25 }
 0xffe   :  { %v3957_v38 = vpop.xlane.xlu1 %3956  ;;  %5554 = vmatmul.mubr.msk.bf16.vlgmr.msra.gmra.mrb[60].mxu0 %vm1065_vm2, %v3989_v44 }
 0xfff   :  { %5791 = vrcp.f32 %v3957_v38  ;;  %5564 = vmatpush3.bf16.msra.mxu0 %v4093_v33  ;;  %5565 = vmatprep.mubr.msk.bf16.mxu0 %vm5857_vm1, %v5856_v18 }
0x1000   :  { %5575 = vmatprep.subr.bf16.mxu0 %v5856_v18  ;;  %5793 = vrcp.f32 %v3966_v50 }
0x1001   :  { %v5788_v19 = vpop.eup %5787 }
0x1002   :  { %v3982_v23 = vmul.f32 %v5788_v19, %v6787_v56  ;;  %v5790_v15 = vpop.eup %5789  ;;  %v3232_v31 = vpop.permute.xlu1 %3231 }
0x1003   :  { %v3984_v41 = vmul.f32 %v5790_v15, %v6779_v35  ;;  %v3313_v11 = vcombine.low %v3224_v49, %v3232_v31  ;;  %v3314_v45 = vcombine.high %v3224_v49, %v3232_v31 }
0x1004   :  { %v3990_v55 = vpack.c.bf16 %v3982_v23, %v3982_v23 }
0x1005   :  { %v3992_v56 = vpack.c.bf16 %v3984_v41, %v3984_v41  ;;  %v3321_v12 = vrot.slane %v3313_v11, %v6029_v63  ;;  %v3328_v14 = vrot.slane %v3314_v45, %v6029_v63 }
0x1006   :  { %5560 = vmatmul.mubr.msk.bf16.vlgmr.msra.gmra.mrb[56].mxu1 %vm1065_vm2, %v3990_v55  ;;  %v3236_v6 = vpop.permute.xlu1 %3235 }
0x1007   :  { %5570 = vmatpush3.bf16.msra.mxu1 %v4139_v17  ;;  %5571 = vmatprep.mubr.msk.bf16.mxu1 %vm5857_vm1, %v5856_v18 }
0x1008   :  { %5581 = vmatprep.subr.bf16.mxu1 %v5856_v18 }
0x1009   :  { %v5792_v52 = vpop.eup %5791 }
0x100a   :  { %v3983_v20 = vmul.f32 %v5792_v52, %v6799_v26  ;;  %v5794_v25 = vpop.eup %5793 }
0x100b   :  { %v3986_v41 = vmul.f32 %v5794_v25, %v6791_v1 }
0x100c   :  { %v3991_v8 = vpack.c.bf16 %v3983_v20, %v3983_v20 }
0x100d   :  { %v3994_v45 = vpack.c.bf16 %v3986_v41, %v3986_v41 }
0x100e   :  { %5566 = vmatmul.mubr.msk.bf16.vlgmr.msra.gmra.mrb[64].mxu0 %vm1065_vm2, %v3991_v8  ;;  %5572 = vmatmul.mubr.msk.bf16.vlgmr.msra.gmra.mrb[60].mxu1 %vm1065_vm2, %v3992_v56 }
0x100f   :  { %5577 = vmatprep.mubr.msk.bf16.mxu0 %vm5857_vm1, %v5856_v18  ;;  %5583 = vmatprep.mubr.msk.bf16.mxu1 %vm5857_vm1, %v5856_v18 }
0x1027   :  { %v3963_v35 = vpop.xlane.xlu0 %3962 }
0x1028   :  { %5795 = vrcp.f32 %v3963_v35 }
0x102b   :  { %v3228_v39 = vpop.permute.xlu0 %3227 }
0x102c   :  { %v3329_v26 = vcombine.low %v3228_v39, %v3236_v6  ;;  %v3330_v32 = vcombine.high %v3228_v39, %v3236_v6 }
0x102e   :  { %v3337_v2 = vrot.slane %v3329_v26, %v6029_v63  ;;  %v3344_v48 = vrot.slane %v3330_v32, %v6029_v63 }
0x1030   :  { %v3345_v21 = vcombine.low %v3321_v12, %v3337_v2  ;;  %v3346_v60 = vcombine.high %v3321_v12, %v3337_v2  ;;  %v3361_v57 = vcombine.low %v3328_v14, %v3344_v48  ;;  %v3362_v59 = vcombine.high %v3328_v14, %v3344_v48 }
0x1032   :  { %v3353_v62 = vrot.slane %v3345_v21, %v6040_v9  ;;  %v3360_v53 = vrot.slane %v3346_v60, %v6040_v9  ;;  %v3369_v28 = vrot.slane %v3361_v57, %v6040_v9  ;;  %v3376_v16 = vrot.slane %v3362_v59, %v6040_v9  ;;  %v5796_v19 = vpop.eup %5795 }
0x1033   :  { %v3985_v52 = vmul.f32 %v5796_v19, %v6825_v36 }
0x1034   :  { %v3449_v22 = vcombine.low %v3353_v62, %v3360_v53  ;;  %v5180_v37 = vcombine.high %v3353_v62, %v3360_v53  ;;  %v3465_v58 = vcombine.low %v3369_v28, %v3376_v16  ;;  %v5181_v7 = vcombine.high %v3369_v28, %v3376_v16 }
0x1035   :  { %v3993_v11 = vpack.c.bf16 %v3985_v52, %v3985_v52 }
0x1036   :  { %v3456_v42 = vrot.slane %v3449_v22, %v6029_v63  ;;  %v3464_v3 = vrot.slane %v5180_v37, %v6029_v63  ;;  %v3472_v0 = vrot.slane %v3465_v58, %v6029_v63  ;;  %v3480_v49 = vrot.slane %v5181_v7, %v6029_v63 }
0x1037   :  { %v3969_v5 = vpop.xlane.xlu1 %3968 }
0x1038   :  { %v3481_v30 = vcombine.low %v3456_v42, %v3464_v3  ;;  %v3497_v46 = vcombine.low %v3472_v0, %v3480_v49  ;;  %v3482_v61 = vcombine.high %v3456_v42, %v3464_v3  ;;  %5797 = vrcp.f32 %v3969_v5 }
0x1039   :  { %v3498_v47 = vcombine.high %v3472_v0, %v3480_v49 }
0x103a   :  { %v3489_v44 = vrot.slane %v3481_v30, %v6040_v9  ;;  %v3505_v38 = vrot.slane %v3497_v46, %v6040_v9  ;;  %v3496_v33 = vrot.slane %v3482_v61, %v6040_v9 }
0x103b   :  { %v3512_v23 = vrot.slane %v3498_v47, %v6040_v9 }
0x103c   :  { %v3513_v10 = vcombine.low %v3489_v44, %v3505_v38  ;;  %v3514_v55 = vcombine.high %v3489_v44, %v3505_v38 }
0x103d   :  { %v3515_v15 = vcombine.low %v3496_v33, %v3512_v23  ;;  %v3516_v17 = vcombine.high %v3496_v33, %v3512_v23 }
0x103e   :  { %v3521_v20 = vpack.c.bf16 %v3513_v10, %v3513_v10  ;;  %v3522_v8 = vpack.c.bf16 %v3514_v55, %v3514_v55 }
0x103f   :  { %v3523_v31 = vpack.c.bf16 %v3515_v15, %v3515_v15  ;;  %v3524_v35 = vpack.c.bf16 %v3516_v17, %v3516_v17 }
0x1040   :  { %v4185_v56 = vsel %vm1543_vm4, %v3521_v20, 0  ;;  %v4231_v50 = vsel %vm1543_vm4, %v3522_v8, 0 }
0x1041   :  { %5576 = vmatpush3.bf16.msra.mxu0 %v4185_v56  ;;  %5582 = vmatpush3.bf16.msra.mxu1 %v4231_v50  ;;  %v4277_v1 = vsel %vm1543_vm4, %v3523_v31, 0  ;;  %v4323_v36 = vsel %vm1543_vm4, %v3524_v35, 0 }
0x1042   :  { %5587 = vmatprep.subr.bf16.mxu0 %v5856_v18  ;;  %5593 = vmatprep.subr.bf16.mxu1 %v5856_v18  ;;  %v5798_v6 = vpop.eup %5797 }
0x1043   :  { %v3987_v39 = vmul.f32 %v5798_v6, %v6829_v4 }
0x1044   :  { %5578 = vmatmul.mubr.msk.bf16.vlgmr.msra.gmra.mrb[68].mxu0 %vm1065_vm2, %v3993_v11  ;;  %5584 = vmatmul.mubr.msk.bf16.vlgmr.msra.gmra.mrb[64].mxu1 %vm1065_vm2, %v3994_v45 }
0x1045   :  { %5588 = vmatpush3.bf16.msra.mxu0 %v4277_v1  ;;  %5594 = vmatpush3.bf16.msra.mxu1 %v4323_v36  ;;  %v3995_v26 = vpack.c.bf16 %v3987_v39, %v3987_v39 }
0x1046   :  { %5589 = vmatprep.mubr.msk.bf16.mxu0 %vm5857_vm1, %v5856_v18  ;;  %5595 = vmatprep.mubr.msk.bf16.mxu1 %vm5857_vm1, %v5856_v18 }
0x1047   :  { %5599 = vmatprep.subr.bf16.mxu0 %v5856_v18  ;;  %5607 = vmatprep.subr.bf16.mxu1 %v5856_v18 }
0x104c   :  { %5590 = vmatmul.mubr.msk.bf16.vlgmr.msra.gmra.mrb[72].mxu0 %vm1065_vm2, %v3995_v26 }
0x104d   :  { %5603 = vmatprep.mubr.msk.bf16.mxu0 %vm5857_vm1, %v5856_v18 }
0x105c   :  { %v3972_v32 = vpop.xlane.xlu0 %3971 }
0x105d   :  { %5799 = vrcp.f32 %v3972_v32 }
0x1067   :  { %v5800_v12 = vpop.eup %5799 }
0x1068   :  { %v3988_v4 = vmul.f32 %v5800_v12, %v6837_v54 }
0x106a   :  { %v3996_v14 = vpack.c.bf16 %v3988_v4, %v3988_v4 }
0x106c   :  { %5596 = vmatmul.mubr.msk.bf16.vlgmr.msra.gmra.mrb[68].mxu1 %vm1065_vm2, %v3996_v14 }
0x106d   :  { %5611 = vmatprep.mubr.msk.bf16.mxu1 %vm5857_vm1, %v5856_v18 }
0x10d1   :  { %v4037_v2 = vpop.f32.mrb[60].mxu0 }
0x10d2   :  { %v5555_v48 = vpop.f32.mrb[61].mxu0 }
0x10d3   :  { %v4040_v21 = vpop.f32.mrb[62].mxu0 }
0x10d4   :  { %v5556_v60 = vpop.f32.mrb[63].mxu0 }
0x10d9   :  { %v4083_v57 = vpop.f32.mrb[56].mxu1 }
0x10da   :  { %v5561_v59 = vpop.f32.mrb[57].mxu1 }
0x10db   :  { %v4086_v62 = vpop.f32.mrb[58].mxu1 }
0x10dc   :  { %v5562_v53 = vpop.f32.mrb[59].mxu1 }
0x10e1   :  { %v4129_v28 = vpop.f32.mrb[64].mxu0  ;;  %v4175_v16 = vpop.f32.mrb[60].mxu1 }
0x10e2   :  { %v4365_v22 = vcombine.low %v4037_v2, %v4129_v28  ;;  %v4366_v37 = vcombine.high %v4037_v2, %v4129_v28  ;;  %v4381_v58 = vcombine.low %v4083_v57, %v4175_v16  ;;  %v4382_v54 = vcombine.high %v4083_v57, %v4175_v16  ;;  %v5567_v7 = vpop.f32.mrb[65].mxu0  ;;  %v5573_v42 = vpop.f32.mrb[61].mxu1 }
0x10e3   :  { %v4132_v3 = vpop.f32.mrb[66].mxu0  ;;  %v4178_v0 = vpop.f32.mrb[62].mxu1 }
0x10e4   :  { %v4373_v49 = vrot.slane %v4365_v22, %v6029_v63  ;;  %v4380_v5 = vrot.slane %v4366_v37, %v6029_v63  ;;  %v4389_v30 = vrot.slane %v4381_v58, %v6029_v63  ;;  %v4396_v46 = vrot.slane %v4382_v54, %v6029_v63  ;;  %v5568_v61 = vpop.f32.mrb[67].mxu0  ;;  %v5574_v25 = vpop.f32.mrb[63].mxu1 }
0x10e6   :  { %v4397_v47 = vcombine.low %v4373_v49, %v4389_v30  ;;  %v4398_v44 = vcombine.high %v4373_v49, %v4389_v30  ;;  %v4413_v38 = vcombine.low %v4380_v5, %v4396_v46  ;;  %v4414_v33 = vcombine.high %v4380_v5, %v4396_v46 }
0x10e8   :  { %v4405_v19 = vrot.slane %v4397_v47, %v6040_v9  ;;  %v4412_v23 = vrot.slane %v4398_v44, %v6040_v9  ;;  %v4421_v10 = vrot.slane %v4413_v38, %v6040_v9  ;;  %v4428_v55 = vrot.slane %v4414_v33, %v6040_v9 }
0x10ea   :  { %v4501_v15 = vcombine.low %v4405_v19, %v4412_v23  ;;  %v5198_v17 = vcombine.high %v4405_v19, %v4412_v23  ;;  %v4517_v41 = vcombine.low %v4421_v10, %v4428_v55  ;;  %v5199_v52 = vcombine.high %v4421_v10, %v4428_v55 }
0x10ec   :  { %v4508_v20 = vrot.slane %v4501_v15, %v6029_v63  ;;  %v4516_v8 = vrot.slane %v5198_v17, %v6029_v63  ;;  %v4524_v56 = vrot.slane %v4517_v41, %v6029_v63  ;;  %v4532_v50 = vrot.slane %v5199_v52, %v6029_v63  ;;  %v5703_v52 = vld [vmem:[%s7095_s5 + $0x10] sm:$0xff]  }
0x10ed   :  { %5600 = vmatpush3.bf16.msra.mxu0 %v5703_v52 }
0x10ee   :  { %v4534_v31 = vcombine.high %v4508_v20, %v4516_v8  ;;  %v4550_v35 = vcombine.high %v4524_v56, %v4532_v50  ;;  %v4533_v11 = vcombine.low %v4508_v20, %v4516_v8  ;;  %v4549_v45 = vcombine.low %v4524_v56, %v4532_v50  ;;  %5601 = vmatprep.subr.bf16.mxu0 %v5856_v18 }
0x10f0   :  { %v6914_v6 = vrot.slane %v4534_v31, %v6040_v9  ;;  %v6917_v1 = vrot.slane %v4550_v35, %v6040_v9  ;;  %v6920_v36 = vrot.slane %v4533_v11, %v6040_v9  ;;  %v6923_v39 = vrot.slane %v4549_v45, %v6040_v9 }
0x10f2   :  { %v4567_v26 = vcombine.low %v6914_v6, %v6917_v1  ;;  %v4565_v32 = vcombine.low %v6920_v36, %v6923_v39  ;;  %v4566_v12 = vcombine.high %v6920_v36, %v6923_v39  ;;  %v4568_v4 = vcombine.high %v6914_v6, %v6917_v1  ;;  %v5704_v6 = vld [vmem:[%s7095_s5 + $0x18] sm:$0xff]   ;;  %v6975_v36 = vld [vmem:[%s7094_s4 + $0x8] sm:$0xff] }
0x10f3   :  { %5602 = vmatpush3.bf16.msra.mxu0 %v5704_v6  ;;  %v4676_v39 = vrot.slane %v6975_v36, %v2220_v24 }
0x10f4   :  { %5615 = vmatprep.subr.bf16.mxu0 %v5856_v18 }
0x1117   :  { %v4221_v14 = vpop.f32.mrb[68].mxu0  ;;  %v4267_v2 = vpop.f32.mrb[64].mxu1 }
0x1118   :  { %v5579_v48 = vpop.f32.mrb[69].mxu0  ;;  %v5585_v21 = vpop.f32.mrb[65].mxu1 }
0x1119   :  { %v4224_v60 = vpop.f32.mrb[70].mxu0  ;;  %v4270_v57 = vpop.f32.mrb[66].mxu1 }
0x111a   :  { %v5580_v59 = vpop.f32.mrb[71].mxu0  ;;  %v5586_v62 = vpop.f32.mrb[67].mxu1 }
0x111f   :  { %v4313_v53 = vpop.f32.mrb[72].mxu0 }
0x1120   :  { %v4433_v28 = vcombine.low %v4221_v14, %v4313_v53  ;;  %v4434_v16 = vcombine.high %v4221_v14, %v4313_v53  ;;  %v5591_v22 = vpop.f32.mrb[73].mxu0 }
0x1121   :  { %v4316_v37 = vpop.f32.mrb[74].mxu0 }
0x1122   :  { %v5592_v58 = vpop.f32.mrb[75].mxu0  ;;  %v4441_v49 = vrot.slane %v4433_v28, %v6029_v63  ;;  %v4448_v5 = vrot.slane %v4434_v16, %v6029_v63 }
0x113f   :  { %v4359_v54 = vpop.f32.mrb[68].mxu1 }
0x1140   :  { %v4449_v7 = vcombine.low %v4267_v2, %v4359_v54  ;;  %v4450_v42 = vcombine.high %v4267_v2, %v4359_v54  ;;  %v5597_v3 = vpop.f32.mrb[69].mxu1 }
0x1141   :  { %v4362_v0 = vpop.f32.mrb[70].mxu1 }
0x1142   :  { %v4457_v30 = vrot.slane %v4449_v7, %v6029_v63  ;;  %v4464_v46 = vrot.slane %v4450_v42, %v6029_v63  ;;  %v5598_v61 = vpop.f32.mrb[71].mxu1 }
0x1144   :  { %v4465_v25 = vcombine.low %v4441_v49, %v4457_v30  ;;  %v4466_v47 = vcombine.high %v4441_v49, %v4457_v30  ;;  %v4481_v44 = vcombine.low %v4448_v5, %v4464_v46  ;;  %v4482_v38 = vcombine.high %v4448_v5, %v4464_v46 }
0x1146   :  { %v4473_v33 = vrot.slane %v4465_v25, %v6040_v9  ;;  %v4480_v19 = vrot.slane %v4466_v47, %v6040_v9  ;;  %v4489_v23 = vrot.slane %v4481_v44, %v6040_v9  ;;  %v4496_v10 = vrot.slane %v4482_v38, %v6040_v9 }
0x1148   :  { %v4569_v55 = vcombine.low %v4473_v33, %v4480_v19  ;;  %v5200_v15 = vcombine.high %v4473_v33, %v4480_v19  ;;  %v4585_v17 = vcombine.low %v4489_v23, %v4496_v10  ;;  %v5201_v41 = vcombine.high %v4489_v23, %v4496_v10 }
0x114a   :  { %v4576_v20 = vrot.slane %v4569_v55, %v6029_v63  ;;  %v4584_v8 = vrot.slane %v5200_v15, %v6029_v63  ;;  %v4592_v56 = vrot.slane %v4585_v17, %v6029_v63  ;;  %v4600_v50 = vrot.slane %v5201_v41, %v6029_v63 }
0x114c   :  { %v4602_v31 = vcombine.high %v4576_v20, %v4584_v8  ;;  %v4618_v35 = vcombine.high %v4592_v56, %v4600_v50  ;;  %v4601_v11 = vcombine.low %v4576_v20, %v4584_v8  ;;  %v4617_v45 = vcombine.low %v4592_v56, %v4600_v50  ;;  %v5705_v20 = vld [vmem:[%s7096_s6 + $0x10] sm:$0xff]   ;;  %v5706_v8 = vld [vmem:[%s7096_s6 + $0x18] sm:$0xff]  }
0x114d   :  { %5608 = vmatpush3.bf16.msra.mxu1 %v5705_v20 }
0x114e   :  { %v4616_v1 = vrot.slane %v4602_v31, %v6040_v9  ;;  %v4632_v14 = vrot.slane %v4618_v35, %v6040_v9  ;;  %v4609_v2 = vrot.slane %v4601_v11, %v6040_v9  ;;  %v4625_v48 = vrot.slane %v4617_v45, %v6040_v9  ;;  %5609 = vmatprep.subr.bf16.mxu1 %v5856_v18 }
0x1150   :  { %v4635_v63 = vcombine.low %v4616_v1, %v4632_v14  ;;  %v4634_v21 = vcombine.high %v4609_v2, %v4625_v48  ;;  %v4633_v60 = vcombine.low %v4609_v2, %v4625_v48  ;;  %v4636_v57 = vcombine.high %v4616_v1, %v4632_v14 }
0x1151   :  { %5610 = vmatpush3.bf16.msra.mxu1 %v5706_v8  ;;  %v4764_v1 = vrot.slane %v6975_v36, %v2308_v29  ;;  %v5707_v29 = vld [vmem:[%s7097_s7 + $0x40] sm:$0xff]  }
0x1152   :  { %v5677_v59 = vpack.i.bf16 %v4635_v63, %v4567_v26  ;;  %v5672_v62 = vpack.i.bf16 %v4634_v21, %v4566_v12  ;;  %v5682_v53 = vpack.i.bf16 %v4636_v57, %v4568_v4  ;;  %5635 = vmatprep.subr.bf16.mxu1 %v5856_v18  ;;  %v4770_v21 = vrot.slane %v6975_v36, %v2314_v34  ;;  %v5708_v34 = vld [vmem:[%s7097_s7 + $0x48] sm:$0xff]  }
0x1154   :  { %5678 = vrot.lane.b32.xlu1 %v5677_v59, %s5865_s16  ;;  %5673 = vrot.lane.b32.xlu0 %v5672_v62, %s5866_s17 }
0x1158   :  { %5683 = vrot.lane.b32.xlu1 %v5682_v53, %s5867_s18  ;;  %v5709_v53 = vld [vmem:[%s7097_s7 + $0x50] sm:$0xff]  }
0x11c6   :  { %v5679_v28 = vpop.permute.xlu1 %5678  ;;  %v5674_v16 = vpop.permute.xlu0 %5673 }
0x11c7   :  { %v5676_v22 = vunpack.i.h.bf16 %v5674_v16  ;;  %v5675_v9 = vunpack.i.l.bf16 %v5674_v16  ;;  %v5681_v37 = vunpack.i.h.bf16 %v5679_v28  ;;  %v5680_v58 = vunpack.i.l.bf16 %v5679_v28  ;;  %v5710_v28 = vld [vmem:[%s7097_s7 + $0x58] sm:$0xff]   ;;  %v5711_v16 = vld [vmem:[%s7097_s7 + $0x60] sm:$0xff]  }
0x11c9   :  { %v4661_v54 = vsel %vm1065_vm2, %v4565_v32, %v5675_v9  ;;  %v4662_v26 = vsel %vm1065_vm2, %v4633_v60, %v5676_v22  ;;  %v5712_v22 = vld [vmem:[%s7097_s7 + $0x68] sm:$0xff]   ;;  %v5713_v9 = vld [vmem:[%s7097_s7 + $0x70] sm:$0xff]  }
0x11ca   :  { %v5684_v12 = vpop.permute.xlu1 %5683  ;;  %v4663_v42 = vsel %vm2207_vm5, %v4661_v54, %v5680_v58  ;;  %v4664_v3 = vsel %vm2207_vm5, %v4662_v26, %v5681_v37  ;;  %v5714_v37 = vld [vmem:[%s7097_s7 + $0x78] sm:$0xff]   ;;  %v4782_v58 = vrot.slane %v6975_v36, %v2325_v13  ;;  %s5244_s7 = sld [smem:[#allocation3 + $0x1]] }
0x11cb   :  { %v5686_v4 = vunpack.i.h.bf16 %v5684_v12  ;;  %v5685_v7 = vunpack.i.l.bf16 %v5684_v12 }
0x11cd   :  { %v4665_v0 = vsel %vm2210_vm6, %v4663_v42, %v5685_v7  ;;  %v4666_v49 = vsel %vm2210_vm6, %v4664_v3, %v5686_v4 }
0x11ce   :  { %v4667_v5 = vpack.c.bf16 %v4666_v49, %v4665_v0 }
0x11d0   :  { %5604 = vmatmul.mubr.msk.bf16.vlgmr.msra.gmra.mrb[76].mxu0 %vm52_vm0, %v4667_v5  ;;  %s4989_s3 = sadd.s32 8, %s5244_s7 }
0x11d1   :  { %5631 = vmatprep.mubr.msk.bf16.mxu0 %vm5857_vm1, %v5856_v18  ;;  %5616 = vmatpush3.bf16.msra.mxu0 %v5707_v29 }
0x11d2   :  { %5617 = vmatprep.subr.bf16.mxu0 %v5856_v18 }
0x11d5   :  { %5618 = vmatpush3.bf16.msra.mxu0 %v5708_v34 }
0x11d6   :  { %5619 = vmatprep.subr.bf16.mxu0 %v5856_v18 }
0x11d9   :  { %5620 = vmatpush3.bf16.msra.mxu0 %v5709_v53 }
0x11da   :  { %5621 = vmatprep.subr.bf16.mxu0 %v5856_v18 }
0x11dd   :  { %5622 = vmatpush3.bf16.msra.mxu0 %v5710_v28 }
0x11de   :  { %5623 = vmatprep.subr.bf16.mxu0 %v5856_v18 }
0x11e1   :  { %5624 = vmatpush3.bf16.msra.mxu0 %v5711_v16 }
0x11e2   :  { %5625 = vmatprep.subr.bf16.mxu0 %v5856_v18 }
0x11e5   :  { %5626 = vmatpush3.bf16.msra.mxu0 %v5712_v22 }
0x11e6   :  { %5627 = vmatprep.subr.bf16.mxu0 %v5856_v18 }
0x11e9   :  { %5628 = vmatpush3.bf16.msra.mxu0 %v5713_v9 }
0x11ea   :  { %5629 = vmatprep.subr.bf16.mxu0 %v5856_v18 }
0x11ed   :  { %5630 = vmatpush3.bf16.msra.mxu0 %v5714_v37 }
0x12a3   :  { %v4726_v32 = vpop.f32.mrb[76].mxu0 }
0x12a4   :  { %v4727_v30 = vadd.f32 %v4726_v32, %v4676_v39  ;;  %v5605_v46 = vpop.f32.mrb[77].mxu0 }
0x12a5   :  { %v4729_v61 = vpop.f32.mrb[78].mxu0 }
0x12a6   :  { %v6981_v25 = vadd.f32 %v4727_v30, %v6510_v51  ;;  %v4730_v47 = vadd.f32 %v4729_v61, %v4676_v39  ;;  %v5606_v44 = vpop.f32.mrb[79].mxu0 }
0x12a8   :  { %v6984_v38 = vadd.f32 %v4730_v47, %v6513_v43  ;;  %v4735_v33 = vsel %vm52_vm0, %v6981_v25, 0.0 }
0x12a9   :  { %4736 = vadd.xlane.f32.xlu0 %v4735_v33 }
0x12aa   :  { %v4738_v19 = vsel %vm52_vm0, %v6984_v38, 0.0 }
0x12ab   :  { %4739 = vadd.xlane.f32.xlu1 %v4738_v19  ;;  %v4970_v19 = vstv %s4969_s13 }
0x12ac   :  { %vm4971_vm7 = vcmp.eq.s32.totalorder %v5963_v27, %v4970_v19 }
0x1336   :  { %v4737_v24 = vpop.xlane.xlu0 %4736 }
0x1337   :  { %v4741_v23 = vmul.f32 0.03125, %v4737_v24  ;;  %v4990_v24 = vstv %s4989_s3 }
0x1338   :  { %v4740_v10 = vpop.xlane.xlu1 %4739  ;;  %vm4991_vm8 = vcmp.eq.s32.totalorder %v5963_v27, %v4990_v24 }
0x1339   :  { %v4743_v55 = vsub.f32 %v6981_v25, %v4741_v23  ;;  %v4742_v51 = vmul.f32 0.03125, %v4740_v10  ;;  %v4876_v23 = vrot.slane %v6975_v36, %v2418_v40  ;;  %v4968_v10 = vadd.s32 8, %v5963_v27 }
0x133b   :  { %v4744_v15 = vsub.f32 %v6984_v38, %v4742_v51  ;;  %v4745_v17 = vmul.f32 %v4743_v55, %v4743_v55  ;;  %vm4972_vm9 = vcmp.eq.s32.totalorder %v4968_v10, %v4970_v19  ;;  %vm4992_vm10 = vcmp.eq.s32.totalorder %v4968_v10, %v4990_v24 }
0x133c   :  { %v5243_v36 = vsel %vm4972_vm9, 1.0, %v5856_v18  ;;  %v5246_v8 = vsel %vm4992_vm10, 1.0, %v5856_v18 }
0x133d   :  { %v4747_v43 = vsel %vm52_vm0, %v4745_v17, 0.0  ;;  %v4746_v41 = vmul.f32 %v4744_v15, %v4744_v15  ;;  %v5242_v17 = vsel %vm4971_vm7, 1.0, %v5856_v18 }
0x133e   :  { %4748 = vadd.xlane.f32.xlu0 %v4747_v43  ;;  %v5245_v43 = vsel %vm4991_vm8, 1.0, %v5856_v18 }
0x133f   :  { %v4750_v52 = vsel %vm52_vm0, %v4746_v41, 0.0 }
0x1342   :  { %4751 = vadd.xlane.f32.xlu0 %v4750_v52 }
0x13cb   :  { %v4749_v56 = vpop.xlane.xlu0 %4748 }
0x13cc   :  { %v4753_v50 = vmul.f32 0.03125, %v4749_v56 }
0x13ce   :  { %v4755_v31 = vadd.f32 1e-05, %v4753_v50 }
0x13cf   :  { %v4752_v35 = vpop.xlane.xlu0 %4751 }
0x13d0   :  { %5801 = vrsqrt.f32 %v4755_v31  ;;  %v4754_v11 = vmul.f32 0.03125, %v4752_v35 }
0x13d2   :  { %v4756_v45 = vadd.f32 1e-05, %v4754_v11 }
0x13d4   :  { %5803 = vrsqrt.f32 %v4756_v45 }
0x13da   :  { %v5802_v6 = vpop.eup %5801 }
0x13db   :  { %v4759_v14 = vmul.f32 %v5802_v6, %v4743_v55 }
0x13dd   :  { %v4765_v48 = vmul.f32 %v4764_v1, %v4759_v14 }
0x13de   :  { %v5804_v2 = vpop.eup %5803 }
0x13df   :  { %v4760_v63 = vmul.f32 %v5804_v2, %v4744_v15  ;;  %v4771_v57 = vadd.f32 %v4770_v21, %v4765_v48 }
0x13e1   :  { %v4766_v60 = vmul.f32 %v4764_v1, %v4760_v63 }
0x13e3   :  { %v4772_v59 = vadd.f32 %v4770_v21, %v4766_v60 }
0x13e5   :  { %v4773_v62 = vpack.c.bf16 %v4772_v59, %v4771_v57 }
0x13e7   :  { %5612 = vmatmul.mubr.msk.bf16.vlgmr.msra.gmra.mrb[72].mxu1 %vm52_vm0, %v4773_v62 }
0x13e8   :  { %5639 = vmatprep.mubr.msk.bf16.mxu1 %vm5857_vm1, %v5856_v18 }
0x14ba   :  { %v4832_v54 = vpop.f32.mrb[72].mxu1 }
0x14bb   :  { %v4833_v26 = vadd.f32 %v4832_v54, %v4782_v58  ;;  %v5613_v12 = vpop.f32.mrb[73].mxu1 }
0x14bc   :  { %v4835_v4 = vpop.f32.mrb[74].mxu1  ;;  %v5716_v12 = vld [vmem:[%s7099_s9 + $0x8] sm:$0xff]  }
0x14bd   :  { %v5216_v7 = vmul.f32 -1.702, %v4833_v26  ;;  %v4836_v42 = vadd.f32 %v4835_v4, %v4782_v58  ;;  %v5614_v3 = vpop.f32.mrb[75].mxu1 }
0x14bf   :  { %v4843_v0 = vmul.f32 1.442695, %v5216_v7  ;;  %v5217_v49 = vmul.f32 -1.702, %v4836_v42 }
0x14c1   :  { %5805 = vpow2.f32 %v4843_v0  ;;  %v4845_v5 = vmul.f32 1.442695, %v5217_v49  ;;  %v5247_v0 = vld [vmem:[%s7098_s8] ss:$0 sm:$0xff] }
0x14c3   :  { %5807 = vpow2.f32 %v4845_v5  ;;  %v5248_v5 = vld [vmem:[%s7098_s8 + $0x1] ss:$0 sm:$0xff] }
0x14cb   :  { %v5806_v39 = vpop.eup %5805 }
0x14cc   :  { %v4847_v32 = vadd.f32 1.0, %v5806_v39 }
0x14cd   :  { %v5808_v30 = vpop.eup %5807 }
0x14ce   :  { %5809 = vrcp.f32 %v4847_v32  ;;  %v4848_v46 = vadd.f32 1.0, %v5808_v30 }
0x14d0   :  { %5811 = vrcp.f32 %v4848_v46 }
0x14d8   :  { %v5810_v61 = vpop.eup %5809 }
0x14d9   :  { %v4853_v47 = vmul.f32 %v5810_v61, %v4833_v26  ;;  %v5715_v26 = vld [vmem:[%s7099_s9] sm:$0xff]   ;;  %s5868_s9 = smov [#allocation4]  }
0x14da   :  { %v5812_v13 = vpop.eup %5811  ;;  %5636 = vmatpush3.bf16.msra.mxu1 %v5715_v26  ;;  %s5103_s17 = sshll.u32 %s5868_s9, 4  ;;  %s5104_s17 = int_to_ptr.vmem [resolvable:$true] %s5103_s17 }
0x14db   :  { %v4854_v44 = vmul.f32 %v5812_v13, %v4836_v42  ;;  %5637 = vmatprep.subr.bf16.mxu1 %v5856_v18  ;;  %s5829_s6 = scalar_lea.vmem %s5104_s17, 32  ;;  %p5834_p6 = scmp.lt.s32.totalorder %s5104_s17, %s5104_s17 }
0x14dc   :  { %p5830_p5 = scmp.ne.s32.totalorder %s5104_s17, %s5829_s6  ;;  %p5835_p7 = scmp.lt.s32.totalorder %s5829_s6, %s5829_s6 }
0x14dd   :  { %v4855_v33 = vpack.c.bf16 %v4854_v44, %v4853_v47 }
0x14de   :  { %5638 = vmatpush3.bf16.msra.mxu1 %v5716_v12  ;;  %p5836_p8 = por %p5835_p7, %p5834_p6 }
0x14df   :  { %5632 = vmatmul.mubr.bf16.vlgmr.msra.gmra.mrb[80].mxu0 %v4855_v33 }
0x14e0   :  { %p5837_p9 = pnand %p5836_p8, %p5830_p5 }
0x15b2   :  { %v4959_v55 = vpop.f32.mrb[80].mxu0 }
0x15b3   :  { %v4960_v51 = vadd.f32 %v4959_v55, %v4876_v23  ;;  %v5633_v15 = vpop.f32.mrb[81].mxu0 }
0x15b4   :  { %v4962_v41 = vpop.f32.mrb[82].mxu0 }
0x15b5   :  { %v4966_v52 = vadd.f32 %v4960_v51, %v6981_v25  ;;  %v4963_v20 = vadd.f32 %v4962_v41, %v4876_v23  ;;  %v5634_v40 = vpop.f32.mrb[83].mxu0 }
0x15b7   :  { %v4977_v56 = vmul.f32 %v5242_v17, %v4966_v52  ;;  %v4997_v27 = vmul.f32 %v5245_v43, %v4966_v52  ;;  %v4967_v50 = vadd.f32 %v4963_v20, %v6984_v38 }
0x15b9   :  { %v4978_v31 = vmul.f32 %v5243_v36, %v4967_v50  ;;  %v4998_v35 = vmul.f32 %v5246_v8, %v4967_v50  ;;  %v4979_v11 = vsel %vm52_vm0, %v4977_v56, 0.0  ;;  %v4999_v45 = vsel %vm52_vm0, %v4997_v27, 0.0 }
0x15bb   :  { %v4980_v6 = vsel %vm52_vm0, %v4978_v31, 0.0  ;;  %v5000_v25 = vsel %vm52_vm0, %v4998_v35, 0.0 }
0x15bc   :  { %v4981_v1 = vadd.f32 %v4980_v6, %v4979_v11  ;;  %v5001_v14 = vadd.f32 %v5000_v25, %v4999_v45 }
0x15be   :  { %v4982_v2 = vrot.slane %v4981_v1, 4  ;;  %v5002_v48 = vrot.slane %v5001_v14, 4 }
0x15c0   :  { %v4983_v63 = vadd.f32 %v4982_v2, %v4981_v1  ;;  %v5003_v21 = vadd.f32 %v5002_v48, %v5001_v14 }
0x15c2   :  { %v4984_v60 = vrot.slane %v4983_v63, 2  ;;  %v5004_v57 = vrot.slane %v5003_v21, 2 }
0x15c4   :  { %v4985_v59 = vadd.f32 %v4984_v60, %v4983_v63  ;;  %v5005_v38 = vadd.f32 %v5004_v57, %v5003_v21 }
0x15c6   :  { %v4986_v62 = vrot.slane %v4985_v59, 1  ;;  %v5006_v29 = vrot.slane %v5005_v38, 1 }
0x15c8   :  { %v4987_v34 = vadd.f32 %v4986_v62, %v4985_v59  ;;  %v5007_v53 = vadd.f32 %v5006_v29, %v5005_v38 }
0x15ca   :  { %v5009_v28 = vsel %vm5008_vm11, %v4987_v34, %v5007_v53 }
0x15cb   :  { %v5013_v16 = vsel %vm5012_vm12, %v5009_v28, 0.0 }
0x15cc   :  { %5014 = vadd.xlane.f32.xlu0 %v5013_v16 }
0x1659   :  { %v5015_v22 = vpop.xlane.xlu0 %5014 }
0x165a   :  { %v5016_v9 = vmul.f32 0.03125, %v5015_v22 }
0x165c   :  { %v5017_v37 = vsub.f32 %v5009_v28, %v5016_v9 }
0x165e   :  { %v5018_v58 = vmul.f32 %v5017_v37, %v5017_v37 }
0x1660   :  { %v5019_v54 = vsel %vm5012_vm12, %v5018_v58, 0.0 }
0x1661   :  { %5020 = vadd.xlane.f32.xlu1 %v5019_v54 }
0x16ee   :  { %v5021_v4 = vpop.xlane.xlu1 %5020 }
0x16ef   :  { %v5022_v7 = vmul.f32 0.03125, %v5021_v4 }
0x16f1   :  { %v5023_v42 = vadd.f32 1e-05, %v5022_v7 }
0x16f3   :  { %5813 = vrsqrt.f32 %v5023_v42 }
0x16fd   :  { %v5814_v3 = vpop.eup %5813 }
0x16fe   :  { %v5025_v49 = vmul.f32 %v5814_v3, %v5017_v37 }
0x1700   :  { %v5030_v39 = vmul.f32 %v5247_v0, %v5025_v49 }
0x1702   :  { %v5035_v32 = vadd.f32 %v5248_v5, %v5030_v39 }
0x1704   :  { %v5036_v30 = vpack.c.bf16 %v5035_v32, %v5035_v32 }
0x1706   :  { %5640 = vmatmul.mubr.msk.bf16.vlgmr.msra.gmra.mrb[76].mxu1 %vm52_vm0, %v5036_v30 }
0x17d9   :  { %v5090_v18 = vpop.f32.mrb[76].mxu1 }
0x17da   :  { %5096 = vst.msk [vmem:[#allocation4] sm:$0x3] %vm5012_vm12, %v5090_v18  ;;  %v5641_v46 = vpop.f32.mrb[77].mxu1 }
0x17db   :  { %v5093_v61 = vpop.f32.mrb[78].mxu1 }
0x17dc   :  { %5840 = shalt.err (!%p5837_p9)
}
0x17dd   :  { %s5841_s14 = scalar_lea.hbm %s7100_s10, 32 }
0x17de   :  { %p5842_p10 = scmp.ne.s32.totalorder %s7100_s10, %s5841_s14  ;;  %p5845_p11 = scmp.lt.u32.totalorder %s5841_s14, %s7100_s10 }
0x17e0   :  { %p5847_p12 = pnand %p5845_p11, %p5842_p10 }
0x17e2   :  { %5850 = shalt.err (!%p5847_p12)
}
0x17e3   :  { %5106 = dma.vmem_to_hbm [thread:$0]  %s5104_s17, 32, %s7100_s10, [#allocation5]   ;;  %v5642_v13 = vpop.f32.mrb[79].mxu1 }
0x17e4   :  { %5853 = dma.done.wait [#allocation5], 32  }
0x17e5   :  { %5854 = vsyncadd [#allocation5], 4294967264 }
0x17e6   :  { %5110 = vsyncpa [#allocation5], 1 }

</bundles_post_ra>
